<compile_context>
chip_gen: v7x
topology: tpu7x:2x2x1
jax: 0.10.0
libtpu: 0.0.40
codegen_flags: <defaults>
</compile_context>

<pallas_src>
import math

import numpy as np
import jax
import jax.numpy as jnp
from jax.experimental import pallas as pl
from jax.experimental.pallas import tpu as pltpu


# ----------------------------------------------------------------------------
# In-kernel elementwise helpers (VPU/EUP friendly: exp / mul / where only).
# ----------------------------------------------------------------------------
def _erf(x):
    # Abramowitz & Stegun 7.1.26 (max abs error ~1.5e-7 -> f32-exact GELU).
    a1, a2, a3, a4, a5 = 0.254829592, -0.284496736, 1.421413741, -1.453152027, 1.061405429
    p = 0.3275911
    ax = jnp.abs(x)
    tt = 1.0 / (1.0 + p * ax)
    poly = ((((a5 * tt + a4) * tt + a3) * tt + a2) * tt + a1) * tt
    y = 1.0 - poly * jnp.exp(-ax * ax)
    return jnp.where(x >= 0, y, -y)


def _gelu(x):
    # Exact (erf-based) GELU, matching PyTorch F.gelu default.
    return 0.5 * x * (1.0 + _erf(x * (1.0 / math.sqrt(2.0))))


def _silu(x):
    return x * (1.0 / (1.0 + jnp.exp(-x)))


# ----------------------------------------------------------------------------
# Host-side constant operators (built once in prepare_params()).
# ----------------------------------------------------------------------------
def _interp_matrix(n_in, n_out):
    """Bilinear interpolation matrix, align_corners=True (as in nn.Upsample)."""
    if n_in == 1:
        return np.ones((n_out, 1), np.float32)
    src = np.arange(n_out, dtype=np.float64) * (n_in - 1) / (n_out - 1)
    i0 = np.clip(np.floor(src).astype(np.int64), 0, n_in - 2)
    frac = (src - i0).astype(np.float32)
    A = np.zeros((n_out, n_in), np.float32)
    rows = np.arange(n_out)
    A[rows, i0] += 1.0 - frac
    A[rows, i0 + 1] += frac
    return A


def _upsample_matrix(H, W):
    """(H*W, 4*H*W) operator: flat_lowres @ U == flat bilinear-x2 upsample."""
    A_h = _interp_matrix(H, 2 * H)            # (Ho, H)
    A_w = _interp_matrix(W, 2 * W)            # (Wo, W)
    U = np.einsum('oi,pj->ijop', A_h, A_w).reshape(H * W, 4 * H * W)
    return jnp.asarray(U)


def _edge_masks(Ho, Wo):
    """(9, P) 0/1 edge masks for a 3x3 'same' conv on the flattened P=Ho*Wo
    axis: row `tap` (tap = ky*3+kx) is 1 where the shifted source pixel
    (y+dy, x+dx) is inside the image, else 0 (matches zero padding)."""
    P = Ho * Wo
    p = np.arange(P)
    y, x = p // Wo, p % Wo
    masks = np.zeros((9, P), np.float32)
    tap = 0
    for ky in range(3):
        for kx in range(3):
            dy, dx = ky - 1, kx - 1
            valid = (y + dy >= 0) & (y + dy < Ho) & (x + dx >= 0) & (x + dx < Wo)
            masks[tap] = valid.astype(np.float32)
            tap += 1
    return jnp.asarray(masks)


def _flatten_conv_w(w):
    """torch conv weight (Cout, Cin, 3, 3) -> (Cout, 9*Cin), tap-major."""
    cout, cin = w.shape[0], w.shape[1]
    return jnp.transpose(w, (0, 2, 3, 1)).reshape(cout, 9 * cin)


def prepare_params(params, H, W, mxu_dtype=jnp.bfloat16):
    """Hoisted (one-time) layout transforms: flattened bf16 conv weights, GN
    affine as (C,1) columns, emb weights, plus the f32 upsample operator and
    the (9, P) edge-mask table for the roll-based im2col."""
    c1 = params["w11"].shape[0]
    co = params["w21"].shape[0]
    f32 = jnp.float32
    prep = {
        "U": _upsample_matrix(H, W).astype(f32),           # (H*W, P) f32 (exact interp)
        "M": _edge_masks(2 * H, 2 * W).astype(f32),        # (9, P) edge masks
        "w1": _flatten_conv_w(params["w11"]).astype(mxu_dtype),
        "w2": _flatten_conv_w(params["w12"]).astype(mxu_dtype),
        "w3": _flatten_conv_w(params["w21"]).astype(mxu_dtype),
        "w4": _flatten_conv_w(params["w22"]).astype(mxu_dtype),
        "g1": params["g11"].reshape(c1, 1).astype(f32), "b1": params["b11"].reshape(c1, 1).astype(f32),
        "g2": params["g12"].reshape(c1, 1).astype(f32), "b2": params["b12"].reshape(c1, 1).astype(f32),
        "g3": params["g21"].reshape(co, 1).astype(f32), "b3": params["b21"].reshape(co, 1).astype(f32),
        "g4": params["g22"].reshape(co, 1).astype(f32), "b4": params["b22"].reshape(co, 1).astype(f32),
        "we": params["w_emb"].astype(f32),                  # (co, Td)
        "be": params["b_emb"].reshape(co, 1).astype(f32),
    }
    return prep


# ----------------------------------------------------------------------------
# The fused per-sample kernel.
# ----------------------------------------------------------------------------
def _make_fused_kernel(C, c1, co, P, Wo, eps=1e-5):
    taps = [(ky - 1, kx - 1) for ky in range(3) for kx in range(3)]

    def kernel(x_ref, skip_ref, t_ref, u_ref, m_ref,
               w1_ref, g1_ref, b1_ref,
               w2_ref, g2_ref, b2_ref,
               w3_ref, g3_ref, b3_ref,
               w4_ref, g4_ref, b4_ref,
               we_ref, be_ref,
               out_ref, cat_ref, patch_ref):
        mxu = w1_ref.dtype  # bf16 MXU operands, f32 accumulation

        # Hoist the nine edge-mask rows once; reused by all four convs.
        masks = [m_ref[pl.ds(tap, 1), :] for tap in range(9)]

        # 1) Time-embedding head Linear(SiLU(t)) FIRST: its EUP exp + XLU
        #    reduce hide under the MXU conv work instead of the epilogue.
        e = jnp.sum(we_ref[...] * _silu(t_ref[...]), axis=1, keepdims=True) + be_ref[...]

        def conv_gn(x_val, w_ref, g_ref, b_ref, cin, cout):
            # In-kernel im2col: 9 XLU lane rolls on the flattened P axis plus
            # 0/1 edge masks (zero padding), rounded to bf16 exactly once at
            # the patch-buffer store.
            for tap, (dy, dx) in enumerate(taps):
                off = dy * Wo + dx
                if off == 0:
                    val = x_val
                else:
                    val = pltpu.roll(x_val, (-off) % P, axis=1) * masks[tap]
                patch_ref[pl.ds(tap * cin, cin), :] = val.astype(mxu)
            patches = patch_ref[pl.ds(0, 9 * cin), :]                 # (9*cin, P) bf16
            # The actual 3x3 conv: one flattened-weight MXU matmul.
            y = jnp.dot(w_ref[...], patches,
                        preferred_element_type=jnp.float32)           # (cout, P) f32
            # GroupNorm(num_groups=1): two-pass statistics (mean, then mean of
            # squared deviations) -> no E[y^2]-E[y]^2 cancellation / NaN risk.
            inv_n = 1.0 / (cout * P)
            m = jnp.sum(y) * inv_n
            d = y - m
            v = jnp.sum(d * d) * inv_n
            return d * jax.lax.rsqrt(v + eps) * g_ref[...] + b_ref[...]

        # 2) Bilinear x2 upsample (align_corners=True) as a single f32 matmul.
        up = jnp.dot(x_ref[...], u_ref[...],
                     preferred_element_type=jnp.float32)               # (C, P)

        # 3) Channel concat assembled in VMEM scratch (no wrapper zero-padding).
        cat_ref[pl.ds(0, C), :] = skip_ref[...]
        cat_ref[pl.ds(C, C), :] = up
        cat = cat_ref[...]                                             # (c1, P)

        # 4) DoubleConv1 (residual=True): gelu(GN(conv)) -> GN(conv) -> +cat -> gelu
        h = _gelu(conv_gn(cat, w1_ref, g1_ref, b1_ref, c1, c1))
        h = _gelu(conv_gn(h, w2_ref, g2_ref, b2_ref, c1, c1) + cat)
        #    DoubleConv2 (residual=False): gelu(GN(conv)) -> GN(conv)
        h = _gelu(conv_gn(h, w3_ref, g3_ref, b3_ref, c1, co))
        h = conv_gn(h, w4_ref, g4_ref, b4_ref, co, co)

        # 5) Broadcast-add the time embedding; lane-dense (co, P) store.
        out_ref[...] = (h + e).astype(out_ref.dtype)

    return kernel


# ----------------------------------------------------------------------------
# Public forward: NCHW in / NCHW out; only cheap reshapes outside the kernel.
# ----------------------------------------------------------------------------
def upsample_block_forward(x, skip, t, prep):
    B, C, H, W = x.shape
    Ho, Wo = 2 * H, 2 * W
    P = Ho * Wo
    c1 = 2 * C
    co = prep["w3"].shape[0]
    Td = t.shape[1]
    cmax = max(c1, co)

    # NCHW flattening keeps the spatial P axis in lanes; no transposes, no
    # zero padding, no host-side concat.
    x_flat = x.reshape(B, C, H * W)
    skip_flat = skip.reshape(B, C, P)
    t3 = t.reshape(B, 1, Td)

    const2 = lambda b: (0, 0)
    in_specs = [
        pl.BlockSpec((None, C, H * W), lambda b: (b, 0, 0)),   # x (low-res)
        pl.BlockSpec((None, C, P), lambda b: (b, 0, 0)),       # skip
        pl.BlockSpec((None, 1, Td), lambda b: (b, 0, 0)),      # t
        pl.BlockSpec((H * W, P), const2),                      # upsample operator (f32)
        pl.BlockSpec((9, P), const2),                          # 3x3 edge masks
    ]
    args = [x_flat, skip_flat, t3, prep["U"], prep["M"]]
    for i, cin, cout in ((1, c1, c1), (2, c1, c1), (3, c1, co), (4, co, co)):
        in_specs += [pl.BlockSpec((cout, 9 * cin), const2),
                     pl.BlockSpec((cout, 1), const2),
                     pl.BlockSpec((cout, 1), const2)]
        args += [prep[f"w{i}"], prep[f"g{i}"], prep[f"b{i}"]]
    in_specs += [pl.BlockSpec((co, Td), const2), pl.BlockSpec((co, 1), const2)]
    args += [prep["we"], prep["be"]]

    out = pl.pallas_call(
        _make_fused_kernel(C=C, c1=c1, co=co, P=P, Wo=Wo),
        grid=(B,),
        in_specs=in_specs,
        out_specs=pl.BlockSpec((None, co, P), lambda b: (b, 0, 0)),
        out_shape=jax.ShapeDtypeStruct((B, co, P), jnp.float32),
        scratch_shapes=[pltpu.VMEM((c1, P), jnp.float32),          # concat assembly
                        pltpu.VMEM((9 * cmax, P), jnp.bfloat16)],  # bf16 im2col patches
        compiler_params=pltpu.CompilerParams(
            dimension_semantics=("parallel",)),  # B>=2 -> both v7x TensorCores busy
        # VMEM footprint here (<0.5 MB) is far below every chip's scoped limit;
        # set vmem_limit_bytes + P-tiling only when scaling to production sizes.
    )(*args)
    return out.reshape(B, co, Ho, Wo)


# ----------------------------------------------------------------------------
# Pure-JAX f32 reference (for a structural correctness check).
# ----------------------------------------------------------------------------
def reference_forward(x, skip, t, params):
    hp = jax.lax.Precision.HIGHEST
    B, C, H, W = x.shape
    A_h = jnp.asarray(_interp_matrix(H, 2 * H))
    A_w = jnp.asarray(_interp_matrix(W, 2 * W))
    up = jnp.einsum('oh,bchw,pw->bcop', A_h, x, A_w, precision=hp)
    cat = jnp.concatenate([skip, up], axis=1)

    def conv(z, w):
        return jax.lax.conv_general_dilated(
            z, w, window_strides=(1, 1), padding='SAME',
            dimension_numbers=('NCHW', 'OIHW', 'NCHW'), precision=hp)

    def gn(z, g, b, eps=1e-5):
        m = jnp.mean(z, axis=(1, 2, 3), keepdims=True)
        v = jnp.mean(jnp.square(z - m), axis=(1, 2, 3), keepdims=True)
        zn = (z - m) * jax.lax.rsqrt(v + eps)
        return zn * g[None, :, None, None] + b[None, :, None, None]

    gelu = lambda z: jax.nn.gelu(z, approximate=False)

    h = gelu(gn(conv(cat, params["w11"]), params["g11"], params["b11"]))
    h = gelu(gn(conv(h, params["w12"]), params["g12"], params["b12"]) + cat)
    h = gelu(gn(conv(h, params["w21"]), params["g21"], params["b21"]))
    h = gn(conv(h, params["w22"]), params["g22"], params["b22"])
    emb = jnp.dot(jax.nn.silu(t), params["w_emb"].T, precision=hp) + params["b_emb"]
    return h + emb[:, :, None, None]


# ----------------------------------------------------------------------------
# Main
# ----------------------------------------------------------------------------
if __name__ == "__main__":
    B, C_in, out_ch, H, W, time_dim = 2, 8, 16, 8, 8, 32
    c1 = 2 * C_in

    key = jax.random.PRNGKey(0)
    ks = jax.random.split(key, 18)

    x = jax.random.normal(ks[0], (B, C_in, H, W), jnp.float32)
    skip_x = jax.random.normal(ks[1], (B, C_in, 2 * H, 2 * W), jnp.float32)
    t = jax.random.normal(ks[2], (B, time_dim), jnp.float32)

    params = dict(
        # DoubleConv1 (c1 -> c1, residual)
        w11=0.1 * jax.random.normal(ks[3], (c1, c1, 3, 3), jnp.float32),
        w12=0.1 * jax.random.normal(ks[4], (c1, c1, 3, 3), jnp.float32),
        g11=1.0 + 0.1 * jax.random.normal(ks[9], (c1,), jnp.float32),
        b11=0.05 * jax.random.normal(ks[10], (c1,), jnp.float32),
        g12=1.0 + 0.1 * jax.random.normal(ks[11], (c1,), jnp.float32),
        b12=0.05 * jax.random.normal(ks[12], (c1,), jnp.float32),
        # DoubleConv2 (c1 -> out_ch)
        w21=0.1 * jax.random.normal(ks[5], (out_ch, c1, 3, 3), jnp.float32),
        w22=0.1 * jax.random.normal(ks[6], (out_ch, out_ch, 3, 3), jnp.float32),
        g21=1.0 + 0.1 * jax.random.normal(ks[13], (out_ch,), jnp.float32),
        b21=0.05 * jax.random.normal(ks[14], (out_ch,), jnp.float32),
        g22=1.0 + 0.1 * jax.random.normal(ks[15], (out_ch,), jnp.float32),
        b22=0.05 * jax.random.normal(ks[16], (out_ch,), jnp.float32),
        # emb_layer: SiLU -> Linear(time_dim, out_ch)
        w_emb=0.1 * jax.random.normal(ks[7], (out_ch, time_dim), jnp.float32),
        b_emb=0.01 * jax.random.normal(ks[8], (out_ch,), jnp.float32),
    )

    prep = prepare_params(params, H, W)          # one-time hoisted layout transforms
    out = jax.jit(upsample_block_forward)(x, skip_x, t, prep)
    out = jax.block_until_ready(out)

    assert out.shape == (B, out_ch, 2 * H, 2 * W), out.shape
    assert bool(jnp.isfinite(out).all())

    # Structural check vs. an f32 pure-JAX reference; tolerance covers the
    # bf16 MXU operands in the four conv matmuls (f32 accumulation).
    ref = jax.jit(reference_forward)(x, skip_x, t, params)
    max_err = float(jnp.max(jnp.abs(out - ref)))
    assert max_err < 0.25, f"max abs error vs reference: {max_err}"

    print("KERNEL_OK")
</pallas_src>

<mosaic_0001>
module attributes {stable_mosaic.version = 11 : i64} {
  func.func @kernel(%arg0: i32, %arg1: memref<1x8x64xf32, #tpu.memory_space<vmem>>, %arg2: memref<1x8x256xf32, #tpu.memory_space<vmem>>, %arg3: memref<1x1x32xf32, #tpu.memory_space<vmem>>, %arg4: memref<64x256xf32, #tpu.memory_space<vmem>>, %arg5: memref<9x256xf32, #tpu.memory_space<vmem>>, %arg6: memref<16x144xbf16, #tpu.memory_space<vmem>>, %arg7: memref<16x1xf32, #tpu.memory_space<vmem>>, %arg8: memref<16x1xf32, #tpu.memory_space<vmem>>, %arg9: memref<16x144xbf16, #tpu.memory_space<vmem>>, %arg10: memref<16x1xf32, #tpu.memory_space<vmem>>, %arg11: memref<16x1xf32, #tpu.memory_space<vmem>>, %arg12: memref<16x144xbf16, #tpu.memory_space<vmem>>, %arg13: memref<16x1xf32, #tpu.memory_space<vmem>>, %arg14: memref<16x1xf32, #tpu.memory_space<vmem>>, %arg15: memref<16x144xbf16, #tpu.memory_space<vmem>>, %arg16: memref<16x1xf32, #tpu.memory_space<vmem>>, %arg17: memref<16x1xf32, #tpu.memory_space<vmem>>, %arg18: memref<16x32xf32, #tpu.memory_space<vmem>>, %arg19: memref<16x1xf32, #tpu.memory_space<vmem>>, %arg20: memref<1x16x256xf32, #tpu.memory_space<vmem>>, %arg21: memref<16x256xf32, #tpu.memory_space<vmem>>, %arg22: memref<144x256xbf16, #tpu.memory_space<vmem>>) attributes {dimension_semantics = [#tpu.dimension_semantics<parallel>], iteration_bounds = array<i64: 2>, scalar_prefetch = 0 : i64, scratch_operands = 2 : i64, tpu.core_type = #tpu.core_type<tc>, window_params = [{transform_indices = @transform_0, window_bounds = array<i64: 1, 8, 64>}, {transform_indices = @transform_1, window_bounds = array<i64: 1, 8, 256>}, {transform_indices = @transform_2, window_bounds = array<i64: 1, 1, 32>}, {pipeline_mode = #tpu.pipeline_mode<synchronous>, transform_indices = @transform_3, window_bounds = array<i64: 64, 256>}, {pipeline_mode = #tpu.pipeline_mode<synchronous>, transform_indices = @transform_4, window_bounds = array<i64: 9, 256>}, {pipeline_mode = #tpu.pipeline_mode<synchronous>, transform_indices = @transform_5, window_bounds = array<i64: 16, 144>}, {pipeline_mode = #tpu.pipeline_mode<synchronous>, transform_indices = @transform_6, window_bounds = array<i64: 16, 1>}, {pipeline_mode = #tpu.pipeline_mode<synchronous>, transform_indices = @transform_7, window_bounds = array<i64: 16, 1>}, {pipeline_mode = #tpu.pipeline_mode<synchronous>, transform_indices = @transform_8, window_bounds = array<i64: 16, 144>}, {pipeline_mode = #tpu.pipeline_mode<synchronous>, transform_indices = @transform_9, window_bounds = array<i64: 16, 1>}, {pipeline_mode = #tpu.pipeline_mode<synchronous>, transform_indices = @transform_10, window_bounds = array<i64: 16, 1>}, {pipeline_mode = #tpu.pipeline_mode<synchronous>, transform_indices = @transform_11, window_bounds = array<i64: 16, 144>}, {pipeline_mode = #tpu.pipeline_mode<synchronous>, transform_indices = @transform_12, window_bounds = array<i64: 16, 1>}, {pipeline_mode = #tpu.pipeline_mode<synchronous>, transform_indices = @transform_13, window_bounds = array<i64: 16, 1>}, {pipeline_mode = #tpu.pipeline_mode<synchronous>, transform_indices = @transform_14, window_bounds = array<i64: 16, 144>}, {pipeline_mode = #tpu.pipeline_mode<synchronous>, transform_indices = @transform_15, window_bounds = array<i64: 16, 1>}, {pipeline_mode = #tpu.pipeline_mode<synchronous>, transform_indices = @transform_16, window_bounds = array<i64: 16, 1>}, {pipeline_mode = #tpu.pipeline_mode<synchronous>, transform_indices = @transform_17, window_bounds = array<i64: 16, 32>}, {pipeline_mode = #tpu.pipeline_mode<synchronous>, transform_indices = @transform_18, window_bounds = array<i64: 16, 1>}, {transform_indices = @transform_19, window_bounds = array<i64: 1, 16, 256>}]} {
    %c0 = arith.constant 0 : index
    %c0_0 = arith.constant 0 : index
    %0 = vector.load %arg5[%c0, %c0_0] : memref<9x256xf32, #tpu.memory_space<vmem>>, vector<1x256xf32>
    %c1 = arith.constant 1 : index
    %c0_1 = arith.constant 0 : index
    %1 = vector.load %arg5[%c1, %c0_1] : memref<9x256xf32, #tpu.memory_space<vmem>>, vector<1x256xf32>
    %c2 = arith.constant 2 : index
    %c0_2 = arith.constant 0 : index
    %2 = vector.load %arg5[%c2, %c0_2] : memref<9x256xf32, #tpu.memory_space<vmem>>, vector<1x256xf32>
    %c3 = arith.constant 3 : index
    %c0_3 = arith.constant 0 : index
    %3 = vector.load %arg5[%c3, %c0_3] : memref<9x256xf32, #tpu.memory_space<vmem>>, vector<1x256xf32>
    %c5 = arith.constant 5 : index
    %c0_4 = arith.constant 0 : index
    %4 = vector.load %arg5[%c5, %c0_4] : memref<9x256xf32, #tpu.memory_space<vmem>>, vector<1x256xf32>
    %c6 = arith.constant 6 : index
    %c0_5 = arith.constant 0 : index
    %5 = vector.load %arg5[%c6, %c0_5] : memref<9x256xf32, #tpu.memory_space<vmem>>, vector<1x256xf32>
    %c7 = arith.constant 7 : index
    %c0_6 = arith.constant 0 : index
    %6 = vector.load %arg5[%c7, %c0_6] : memref<9x256xf32, #tpu.memory_space<vmem>>, vector<1x256xf32>
    %c8 = arith.constant 8 : index
    %c0_7 = arith.constant 0 : index
    %7 = vector.load %arg5[%c8, %c0_7] : memref<9x256xf32, #tpu.memory_space<vmem>>, vector<1x256xf32>
    %c0_8 = arith.constant 0 : index
    %c0_9 = arith.constant 0 : index
    %8 = vector.load %arg18[%c0_8, %c0_9] : memref<16x32xf32, #tpu.memory_space<vmem>>, vector<16x32xf32>
    %c0_10 = arith.constant 0 : index
    %c0_11 = arith.constant 0 : index
    %c0_12 = arith.constant 0 : index
    %9 = vector.load %arg3[%c0_10, %c0_11, %c0_12] : memref<1x1x32xf32, #tpu.memory_space<vmem>>, vector<1x1x32xf32>
    %10 = vector.shape_cast %9 : vector<1x1x32xf32> to vector<1x32xf32>
    %cst = arith.constant 0.000000e+00 : f32
    %11 = vector.broadcast %cst : f32 to vector<1x32xf32>
    %12 = arith.subf %11, %10 : vector<1x32xf32>
    %13 = math.exp %12 : vector<1x32xf32>
    %cst_13 = arith.constant 1.000000e+00 : f32
    %14 = vector.broadcast %cst_13 : f32 to vector<1x32xf32>
    %15 = arith.addf %14, %13 : vector<1x32xf32>
    %cst_14 = arith.constant 1.000000e+00 : f32
    %16 = vector.broadcast %cst_14 : f32 to vector<1x32xf32>
    %17 = arith.divf %16, %15 : vector<1x32xf32>
    %18 = arith.mulf %10, %17 : vector<1x32xf32>
    %19 = vector.broadcast %18 : vector<1x32xf32> to vector<16x32xf32>
    %20 = arith.mulf %8, %19 : vector<16x32xf32>
    %cst_15 = arith.constant dense<0.000000e+00> : vector<16xf32>
    %21 = vector.multi_reduction <add>, %20, %cst_15 [1] : vector<16x32xf32> to vector<16xf32>
    %22 = vector.shape_cast %21 : vector<16xf32> to vector<16x1xf32>
    %c0_16 = arith.constant 0 : index
    %c0_17 = arith.constant 0 : index
    %23 = vector.load %arg19[%c0_16, %c0_17] : memref<16x1xf32, #tpu.memory_space<vmem>>, vector<16x1xf32>
    %24 = arith.addf %22, %23 : vector<16x1xf32>
    %c0_18 = arith.constant 0 : index
    %c0_19 = arith.constant 0 : index
    %c0_20 = arith.constant 0 : index
    %25 = vector.load %arg1[%c0_18, %c0_19, %c0_20] : memref<1x8x64xf32, #tpu.memory_space<vmem>>, vector<1x8x64xf32>
    %26 = vector.shape_cast %25 : vector<1x8x64xf32> to vector<8x64xf32>
    %c0_21 = arith.constant 0 : index
    %c0_22 = arith.constant 0 : index
    %27 = vector.load %arg4[%c0_21, %c0_22] : memref<64x256xf32, #tpu.memory_space<vmem>>, vector<64x256xf32>
    %cst_23 = arith.constant dense<0.000000e+00> : vector<8x256xf32>
    %28 = tpu.matmul %26, %27, %cst_23 {dimension_numbers = #tpu.dot_dimension_numbers<[1], [0], [0], [1], [0, 0, 1, 1], [], []>} : vector<8x64xf32>, vector<64x256xf32>, vector<8x256xf32> -> vector<8x256xf32>
    %c0_24 = arith.constant 0 : index
    %c0_25 = arith.constant 0 : index
    %c0_26 = arith.constant 0 : index
    %29 = vector.load %arg2[%c0_24, %c0_25, %c0_26] : memref<1x8x256xf32, #tpu.memory_space<vmem>>, vector<1x8x256xf32>
    %30 = vector.shape_cast %29 : vector<1x8x256xf32> to vector<8x256xf32>
    %c0_27 = arith.constant 0 : index
    %c0_28 = arith.constant 0 : index
    %31 = vector.load %arg21[%c0_27, %c0_28] : memref<16x256xf32, #tpu.memory_space<vmem>>, vector<8x256xf32>
    tpu.vector_store %arg21[%c0_27, %c0_28], %30 {strides = array<i32>} : memref<16x256xf32, #tpu.memory_space<vmem>>, vector<8x256xf32>,
    %c8_29 = arith.constant 8 : index
    %c0_30 = arith.constant 0 : index
    %32 = vector.load %arg21[%c8_29, %c0_30] : memref<16x256xf32, #tpu.memory_space<vmem>>, vector<8x256xf32>
    tpu.vector_store %arg21[%c8_29, %c0_30], %28 {strides = array<i32>} : memref<16x256xf32, #tpu.memory_space<vmem>>, vector<8x256xf32>,
    %c0_31 = arith.constant 0 : index
    %c0_32 = arith.constant 0 : index
    %33 = vector.load %arg21[%c0_31, %c0_32] : memref<16x256xf32, #tpu.memory_space<vmem>>, vector<16x256xf32>
    %c17_i32 = arith.constant 17 : i32
    %34 = tpu.dynamic_rotate %33 by %c17_i32 dim 1 : vector<16x256xf32>, i32 -> vector<16x256xf32>
    %35 = vector.broadcast %0 : vector<1x256xf32> to vector<16x256xf32>
    %36 = arith.mulf %34, %35 : vector<16x256xf32>
    %37 = arith.truncf %36 : vector<16x256xf32> to vector<16x256xbf16>
    %c0_33 = arith.constant 0 : index
    %c0_34 = arith.constant 0 : index
    %38 = vector.load %arg22[%c0_33, %c0_34] : memref<144x256xbf16, #tpu.memory_space<vmem>>, vector<16x256xbf16>
    tpu.vector_store %arg22[%c0_33, %c0_34], %37 {strides = array<i32>} : memref<144x256xbf16, #tpu.memory_space<vmem>>, vector<16x256xbf16>,
    %c16_i32 = arith.constant 16 : i32
    %39 = tpu.dynamic_rotate %33 by %c16_i32 dim 1 : vector<16x256xf32>, i32 -> vector<16x256xf32>
    %40 = vector.broadcast %1 : vector<1x256xf32> to vector<16x256xf32>
    %41 = arith.mulf %39, %40 : vector<16x256xf32>
    %42 = arith.truncf %41 : vector<16x256xf32> to vector<16x256xbf16>
    %c16 = arith.constant 16 : index
    %c0_35 = arith.constant 0 : index
    %43 = vector.load %arg22[%c16, %c0_35] : memref<144x256xbf16, #tpu.memory_space<vmem>>, vector<16x256xbf16>
    tpu.vector_store %arg22[%c16, %c0_35], %42 {strides = array<i32>} : memref<144x256xbf16, #tpu.memory_space<vmem>>, vector<16x256xbf16>,
    %c15_i32 = arith.constant 15 : i32
    %44 = tpu.dynamic_rotate %33 by %c15_i32 dim 1 : vector<16x256xf32>, i32 -> vector<16x256xf32>
    %45 = vector.broadcast %2 : vector<1x256xf32> to vector<16x256xf32>
    %46 = arith.mulf %44, %45 : vector<16x256xf32>
    %47 = arith.truncf %46 : vector<16x256xf32> to vector<16x256xbf16>
    %c32 = arith.constant 32 : index
    %c0_36 = arith.constant 0 : index
    %48 = vector.load %arg22[%c32, %c0_36] : memref<144x256xbf16, #tpu.memory_space<vmem>>, vector<16x256xbf16>
    tpu.vector_store %arg22[%c32, %c0_36], %47 {strides = array<i32>} : memref<144x256xbf16, #tpu.memory_space<vmem>>, vector<16x256xbf16>,
    %c1_i32 = arith.constant 1 : i32
    %49 = tpu.dynamic_rotate %33 by %c1_i32 dim 1 : vector<16x256xf32>, i32 -> vector<16x256xf32>
    %50 = vector.broadcast %3 : vector<1x256xf32> to vector<16x256xf32>
    %51 = arith.mulf %49, %50 : vector<16x256xf32>
    %52 = arith.truncf %51 : vector<16x256xf32> to vector<16x256xbf16>
    %c48 = arith.constant 48 : index
    %c0_37 = arith.constant 0 : index
    %53 = vector.load %arg22[%c48, %c0_37] : memref<144x256xbf16, #tpu.memory_space<vmem>>, vector<16x256xbf16>
    tpu.vector_store %arg22[%c48, %c0_37], %52 {strides = array<i32>} : memref<144x256xbf16, #tpu.memory_space<vmem>>, vector<16x256xbf16>,
    %54 = arith.truncf %33 : vector<16x256xf32> to vector<16x256xbf16>
    %c64 = arith.constant 64 : index
    %c0_38 = arith.constant 0 : index
    %55 = vector.load %arg22[%c64, %c0_38] : memref<144x256xbf16, #tpu.memory_space<vmem>>, vector<16x256xbf16>
    tpu.vector_store %arg22[%c64, %c0_38], %54 {strides = array<i32>} : memref<144x256xbf16, #tpu.memory_space<vmem>>, vector<16x256xbf16>,
    %c255_i32 = arith.constant 255 : i32
    %56 = tpu.dynamic_rotate %33 by %c255_i32 dim 1 : vector<16x256xf32>, i32 -> vector<16x256xf32>
    %57 = vector.broadcast %4 : vector<1x256xf32> to vector<16x256xf32>
    %58 = arith.mulf %56, %57 : vector<16x256xf32>
    %59 = arith.truncf %58 : vector<16x256xf32> to vector<16x256xbf16>
    %c80 = arith.constant 80 : index
    %c0_39 = arith.constant 0 : index
    %60 = vector.load %arg22[%c80, %c0_39] : memref<144x256xbf16, #tpu.memory_space<vmem>>, vector<16x256xbf16>
    tpu.vector_store %arg22[%c80, %c0_39], %59 {strides = array<i32>} : memref<144x256xbf16, #tpu.memory_space<vmem>>, vector<16x256xbf16>,
    %c241_i32 = arith.constant 241 : i32
    %61 = tpu.dynamic_rotate %33 by %c241_i32 dim 1 : vector<16x256xf32>, i32 -> vector<16x256xf32>
    %62 = vector.broadcast %5 : vector<1x256xf32> to vector<16x256xf32>
    %63 = arith.mulf %61, %62 : vector<16x256xf32>
    %64 = arith.truncf %63 : vector<16x256xf32> to vector<16x256xbf16>
    %c96 = arith.constant 96 : index
    %c0_40 = arith.constant 0 : index
    %65 = vector.load %arg22[%c96, %c0_40] : memref<144x256xbf16, #tpu.memory_space<vmem>>, vector<16x256xbf16>
    tpu.vector_store %arg22[%c96, %c0_40], %64 {strides = array<i32>} : memref<144x256xbf16, #tpu.memory_space<vmem>>, vector<16x256xbf16>,
    %c240_i32 = arith.constant 240 : i32
    %66 = tpu.dynamic_rotate %33 by %c240_i32 dim 1 : vector<16x256xf32>, i32 -> vector<16x256xf32>
    %67 = vector.broadcast %6 : vector<1x256xf32> to vector<16x256xf32>
    %68 = arith.mulf %66, %67 : vector<16x256xf32>
    %69 = arith.truncf %68 : vector<16x256xf32> to vector<16x256xbf16>
    %c112 = arith.constant 112 : index
    %c0_41 = arith.constant 0 : index
    %70 = vector.load %arg22[%c112, %c0_41] : memref<144x256xbf16, #tpu.memory_space<vmem>>, vector<16x256xbf16>
    tpu.vector_store %arg22[%c112, %c0_41], %69 {strides = array<i32>} : memref<144x256xbf16, #tpu.memory_space<vmem>>, vector<16x256xbf16>,
    %c239_i32 = arith.constant 239 : i32
    %71 = tpu.dynamic_rotate %33 by %c239_i32 dim 1 : vector<16x256xf32>, i32 -> vector<16x256xf32>
    %72 = vector.broadcast %7 : vector<1x256xf32> to vector<16x256xf32>
    %73 = arith.mulf %71, %72 : vector<16x256xf32>
    %74 = arith.truncf %73 : vector<16x256xf32> to vector<16x256xbf16>
    %c128 = arith.constant 128 : index
    %c0_42 = arith.constant 0 : index
    %75 = vector.load %arg22[%c128, %c0_42] : memref<144x256xbf16, #tpu.memory_space<vmem>>, vector<16x256xbf16>
    tpu.vector_store %arg22[%c128, %c0_42], %74 {strides = array<i32>} : memref<144x256xbf16, #tpu.memory_space<vmem>>, vector<16x256xbf16>,
    %c0_43 = arith.constant 0 : index
    %c0_44 = arith.constant 0 : index
    %76 = vector.load %arg22[%c0_43, %c0_44] : memref<144x256xbf16, #tpu.memory_space<vmem>>, vector<144x256xbf16>
    %c0_45 = arith.constant 0 : index
    %c0_46 = arith.constant 0 : index
    %77 = vector.load %arg6[%c0_45, %c0_46] : memref<16x144xbf16, #tpu.memory_space<vmem>>, vector<16x144xbf16>
    %cst_47 = arith.constant dense<0.000000e+00> : vector<16x256xf32>
    %78 = tpu.matmul %77, %76, %cst_47 {dimension_numbers = #tpu.dot_dimension_numbers<[1], [0], [0], [1], [0, 0, 1, 1], [], []>} : vector<16x144xbf16>, vector<144x256xbf16>, vector<16x256xf32> -> vector<16x256xf32>
    %79 = vector.shape_cast %78 : vector<16x256xf32> to vector<1x16x256xf32>
    %cst_48 = arith.constant dense<0.000000e+00> : vector<1xf32>
    %80 = vector.multi_reduction <add>, %79, %cst_48 [1, 2] : vector<1x16x256xf32> to vector<1xf32>
    %81 = vector.shape_cast %80 : vector<1xf32> to vector<1x1x1xf32>
    %82 = vector.extract %81[0, 0, 0] : f32 from vector<1x1x1xf32>
    %cst_49 = arith.constant 2.44140625E-4 : f32
    %83 = arith.mulf %82, %cst_49 : f32
    %84 = vector.broadcast %83 : f32 to vector<16x256xf32>
    %85 = arith.subf %78, %84 : vector<16x256xf32>
    %86 = arith.mulf %85, %85 : vector<16x256xf32>
    %87 = vector.shape_cast %86 : vector<16x256xf32> to vector<1x16x256xf32>
    %cst_50 = arith.constant dense<0.000000e+00> : vector<1xf32>
    %88 = vector.multi_reduction <add>, %87, %cst_50 [1, 2] : vector<1x16x256xf32> to vector<1xf32>
    %89 = vector.shape_cast %88 : vector<1xf32> to vector<1x1x1xf32>
    %90 = vector.extract %89[0, 0, 0] : f32 from vector<1x1x1xf32>
    %cst_51 = arith.constant 2.44140625E-4 : f32
    %91 = arith.mulf %90, %cst_51 : f32
    %cst_52 = arith.constant 9.99999974E-6 : f32
    %92 = arith.addf %91, %cst_52 : f32
    %93 = math.rsqrt %92 : f32
    %94 = vector.broadcast %93 : f32 to vector<16x256xf32>
    %95 = arith.mulf %85, %94 : vector<16x256xf32>
    %c0_53 = arith.constant 0 : index
    %c0_54 = arith.constant 0 : index
    %96 = vector.load %arg7[%c0_53, %c0_54] : memref<16x1xf32, #tpu.memory_space<vmem>>, vector<16x1xf32>
    %97 = vector.broadcast %96 : vector<16x1xf32> to vector<16x256xf32>
    %98 = arith.mulf %95, %97 : vector<16x256xf32>
    %c0_55 = arith.constant 0 : index
    %c0_56 = arith.constant 0 : index
    %99 = vector.load %arg8[%c0_55, %c0_56] : memref<16x1xf32, #tpu.memory_space<vmem>>, vector<16x1xf32>
    %100 = vector.broadcast %99 : vector<16x1xf32> to vector<16x256xf32>
    %101 = arith.addf %98, %100 : vector<16x256xf32>
    %cst_57 = arith.constant 5.000000e-01 : f32
    %102 = vector.broadcast %cst_57 : f32 to vector<16x256xf32>
    %103 = arith.mulf %102, %101 : vector<16x256xf32>
    %cst_58 = arith.constant 0.707106769 : f32
    %104 = vector.broadcast %cst_58 : f32 to vector<16x256xf32>
    %105 = arith.mulf %101, %104 : vector<16x256xf32>
    %106 = math.absf %105 : vector<16x256xf32>
    %cst_59 = arith.constant 0.327591091 : f32
    %107 = vector.broadcast %cst_59 : f32 to vector<16x256xf32>
    %108 = arith.mulf %107, %106 : vector<16x256xf32>
    %cst_60 = arith.constant 1.000000e+00 : f32
    %109 = vector.broadcast %cst_60 : f32 to vector<16x256xf32>
    %110 = arith.addf %109, %108 : vector<16x256xf32>
    %cst_61 = arith.constant 1.000000e+00 : f32
    %111 = vector.broadcast %cst_61 : f32 to vector<16x256xf32>
    %112 = arith.divf %111, %110 : vector<16x256xf32>
    %cst_62 = arith.constant 1.06140542 : f32
    %113 = vector.broadcast %cst_62 : f32 to vector<16x256xf32>
    %114 = arith.mulf %113, %112 : vector<16x256xf32>
    %cst_63 = arith.constant -1.45315206 : f32
    %115 = vector.broadcast %cst_63 : f32 to vector<16x256xf32>
    %116 = arith.addf %114, %115 : vector<16x256xf32>
    %117 = arith.mulf %116, %112 : vector<16x256xf32>
    %cst_64 = arith.constant 1.42141378 : f32
    %118 = vector.broadcast %cst_64 : f32 to vector<16x256xf32>
    %119 = arith.addf %117, %118 : vector<16x256xf32>
    %120 = arith.mulf %119, %112 : vector<16x256xf32>
    %cst_65 = arith.constant -0.284496725 : f32
    %121 = vector.broadcast %cst_65 : f32 to vector<16x256xf32>
    %122 = arith.addf %120, %121 : vector<16x256xf32>
    %123 = arith.mulf %122, %112 : vector<16x256xf32>
    %cst_66 = arith.constant 0.254829586 : f32
    %124 = vector.broadcast %cst_66 : f32 to vector<16x256xf32>
    %125 = arith.addf %123, %124 : vector<16x256xf32>
    %126 = arith.mulf %125, %112 : vector<16x256xf32>
    %cst_67 = arith.constant 0.000000e+00 : f32
    %127 = vector.broadcast %cst_67 : f32 to vector<16x256xf32>
    %128 = arith.subf %127, %106 : vector<16x256xf32>
    %129 = arith.mulf %128, %106 : vector<16x256xf32>
    %130 = math.exp %129 : vector<16x256xf32>
    %131 = arith.mulf %126, %130 : vector<16x256xf32>
    %cst_68 = arith.constant 1.000000e+00 : f32
    %132 = vector.broadcast %cst_68 : f32 to vector<16x256xf32>
    %133 = arith.subf %132, %131 : vector<16x256xf32>
    %cst_69 = arith.constant 0.000000e+00 : f32
    %134 = vector.broadcast %cst_69 : f32 to vector<16x256xf32>
    %135 = arith.cmpf oge, %105, %134 : vector<16x256xf32>
    %cst_70 = arith.constant 0.000000e+00 : f32
    %136 = vector.broadcast %cst_70 : f32 to vector<16x256xf32>
    %137 = arith.subf %136, %133 : vector<16x256xf32>
    %138 = arith.select %135, %133, %137 : vector<16x256xi1>, vector<16x256xf32>
    %cst_71 = arith.constant 1.000000e+00 : f32
    %139 = vector.broadcast %cst_71 : f32 to vector<16x256xf32>
    %140 = arith.addf %139, %138 : vector<16x256xf32>
    %141 = arith.mulf %103, %140 : vector<16x256xf32>
    %c17_i32_72 = arith.constant 17 : i32
    %142 = tpu.dynamic_rotate %141 by %c17_i32_72 dim 1 : vector<16x256xf32>, i32 -> vector<16x256xf32>
    %143 = vector.broadcast %0 : vector<1x256xf32> to vector<16x256xf32>
    %144 = arith.mulf %142, %143 : vector<16x256xf32>
    %145 = arith.truncf %144 : vector<16x256xf32> to vector<16x256xbf16>
    %c0_73 = arith.constant 0 : index
    %c0_74 = arith.constant 0 : index
    %146 = vector.load %arg22[%c0_73, %c0_74] : memref<144x256xbf16, #tpu.memory_space<vmem>>, vector<16x256xbf16>
    tpu.vector_store %arg22[%c0_73, %c0_74], %145 {strides = array<i32>} : memref<144x256xbf16, #tpu.memory_space<vmem>>, vector<16x256xbf16>,
    %c16_i32_75 = arith.constant 16 : i32
    %147 = tpu.dynamic_rotate %141 by %c16_i32_75 dim 1 : vector<16x256xf32>, i32 -> vector<16x256xf32>
    %148 = vector.broadcast %1 : vector<1x256xf32> to vector<16x256xf32>
    %149 = arith.mulf %147, %148 : vector<16x256xf32>
    %150 = arith.truncf %149 : vector<16x256xf32> to vector<16x256xbf16>
    %c16_76 = arith.constant 16 : index
    %c0_77 = arith.constant 0 : index
    %151 = vector.load %arg22[%c16_76, %c0_77] : memref<144x256xbf16, #tpu.memory_space<vmem>>, vector<16x256xbf16>
    tpu.vector_store %arg22[%c16_76, %c0_77], %150 {strides = array<i32>} : memref<144x256xbf16, #tpu.memory_space<vmem>>, vector<16x256xbf16>,
    %c15_i32_78 = arith.constant 15 : i32
    %152 = tpu.dynamic_rotate %141 by %c15_i32_78 dim 1 : vector<16x256xf32>, i32 -> vector<16x256xf32>
    %153 = vector.broadcast %2 : vector<1x256xf32> to vector<16x256xf32>
    %154 = arith.mulf %152, %153 : vector<16x256xf32>
    %155 = arith.truncf %154 : vector<16x256xf32> to vector<16x256xbf16>
    %c32_79 = arith.constant 32 : index
    %c0_80 = arith.constant 0 : index
    %156 = vector.load %arg22[%c32_79, %c0_80] : memref<144x256xbf16, #tpu.memory_space<vmem>>, vector<16x256xbf16>
    tpu.vector_store %arg22[%c32_79, %c0_80], %155 {strides = array<i32>} : memref<144x256xbf16, #tpu.memory_space<vmem>>, vector<16x256xbf16>,
    %c1_i32_81 = arith.constant 1 : i32
    %157 = tpu.dynamic_rotate %141 by %c1_i32_81 dim 1 : vector<16x256xf32>, i32 -> vector<16x256xf32>
    %158 = vector.broadcast %3 : vector<1x256xf32> to vector<16x256xf32>
    %159 = arith.mulf %157, %158 : vector<16x256xf32>
    %160 = arith.truncf %159 : vector<16x256xf32> to vector<16x256xbf16>
    %c48_82 = arith.constant 48 : index
    %c0_83 = arith.constant 0 : index
    %161 = vector.load %arg22[%c48_82, %c0_83] : memref<144x256xbf16, #tpu.memory_space<vmem>>, vector<16x256xbf16>
    tpu.vector_store %arg22[%c48_82, %c0_83], %160 {strides = array<i32>} : memref<144x256xbf16, #tpu.memory_space<vmem>>, vector<16x256xbf16>,
    %162 = arith.truncf %141 : vector<16x256xf32> to vector<16x256xbf16>
    %c64_84 = arith.constant 64 : index
    %c0_85 = arith.constant 0 : index
    %163 = vector.load %arg22[%c64_84, %c0_85] : memref<144x256xbf16, #tpu.memory_space<vmem>>, vector<16x256xbf16>
    tpu.vector_store %arg22[%c64_84, %c0_85], %162 {strides = array<i32>} : memref<144x256xbf16, #tpu.memory_space<vmem>>, vector<16x256xbf16>,
    %c255_i32_86 = arith.constant 255 : i32
    %164 = tpu.dynamic_rotate %141 by %c255_i32_86 dim 1 : vector<16x256xf32>, i32 -> vector<16x256xf32>
    %165 = vector.broadcast %4 : vector<1x256xf32> to vector<16x256xf32>
    %166 = arith.mulf %164, %165 : vector<16x256xf32>
    %167 = arith.truncf %166 : vector<16x256xf32> to vector<16x256xbf16>
    %c80_87 = arith.constant 80 : index
    %c0_88 = arith.constant 0 : index
    %168 = vector.load %arg22[%c80_87, %c0_88] : memref<144x256xbf16, #tpu.memory_space<vmem>>, vector<16x256xbf16>
    tpu.vector_store %arg22[%c80_87, %c0_88], %167 {strides = array<i32>} : memref<144x256xbf16, #tpu.memory_space<vmem>>, vector<16x256xbf16>,
    %c241_i32_89 = arith.constant 241 : i32
    %169 = tpu.dynamic_rotate %141 by %c241_i32_89 dim 1 : vector<16x256xf32>, i32 -> vector<16x256xf32>
    %170 = vector.broadcast %5 : vector<1x256xf32> to vector<16x256xf32>
    %171 = arith.mulf %169, %170 : vector<16x256xf32>
    %172 = arith.truncf %171 : vector<16x256xf32> to vector<16x256xbf16>
    %c96_90 = arith.constant 96 : index
    %c0_91 = arith.constant 0 : index
    %173 = vector.load %arg22[%c96_90, %c0_91] : memref<144x256xbf16, #tpu.memory_space<vmem>>, vector<16x256xbf16>
    tpu.vector_store %arg22[%c96_90, %c0_91], %172 {strides = array<i32>} : memref<144x256xbf16, #tpu.memory_space<vmem>>, vector<16x256xbf16>,
    %c240_i32_92 = arith.constant 240 : i32
    %174 = tpu.dynamic_rotate %141 by %c240_i32_92 dim 1 : vector<16x256xf32>, i32 -> vector<16x256xf32>
    %175 = vector.broadcast %6 : vector<1x256xf32> to vector<16x256xf32>
    %176 = arith.mulf %174, %175 : vector<16x256xf32>
    %177 = arith.truncf %176 : vector<16x256xf32> to vector<16x256xbf16>
    %c112_93 = arith.constant 112 : index
    %c0_94 = arith.constant 0 : index
    %178 = vector.load %arg22[%c112_93, %c0_94] : memref<144x256xbf16, #tpu.memory_space<vmem>>, vector<16x256xbf16>
    tpu.vector_store %arg22[%c112_93, %c0_94], %177 {strides = array<i32>} : memref<144x256xbf16, #tpu.memory_space<vmem>>, vector<16x256xbf16>,
    %c239_i32_95 = arith.constant 239 : i32
    %179 = tpu.dynamic_rotate %141 by %c239_i32_95 dim 1 : vector<16x256xf32>, i32 -> vector<16x256xf32>
    %180 = vector.broadcast %7 : vector<1x256xf32> to vector<16x256xf32>
    %181 = arith.mulf %179, %180 : vector<16x256xf32>
    %182 = arith.truncf %181 : vector<16x256xf32> to vector<16x256xbf16>
    %c128_96 = arith.constant 128 : index
    %c0_97 = arith.constant 0 : index
    %183 = vector.load %arg22[%c128_96, %c0_97] : memref<144x256xbf16, #tpu.memory_space<vmem>>, vector<16x256xbf16>
    tpu.vector_store %arg22[%c128_96, %c0_97], %182 {strides = array<i32>} : memref<144x256xbf16, #tpu.memory_space<vmem>>, vector<16x256xbf16>,
    %c0_98 = arith.constant 0 : index
    %c0_99 = arith.constant 0 : index
    %184 = vector.load %arg22[%c0_98, %c0_99] : memref<144x256xbf16, #tpu.memory_space<vmem>>, vector<144x256xbf16>
    %c0_100 = arith.constant 0 : index
    %c0_101 = arith.constant 0 : index
    %185 = vector.load %arg9[%c0_100, %c0_101] : memref<16x144xbf16, #tpu.memory_space<vmem>>, vector<16x144xbf16>
    %cst_102 = arith.constant dense<0.000000e+00> : vector<16x256xf32>
    %186 = tpu.matmul %185, %184, %cst_102 {dimension_numbers = #tpu.dot_dimension_numbers<[1], [0], [0], [1], [0, 0, 1, 1], [], []>} : vector<16x144xbf16>, vector<144x256xbf16>, vector<16x256xf32> -> vector<16x256xf32>
    %187 = vector.shape_cast %186 : vector<16x256xf32> to vector<1x16x256xf32>
    %cst_103 = arith.constant dense<0.000000e+00> : vector<1xf32>
    %188 = vector.multi_reduction <add>, %187, %cst_103 [1, 2] : vector<1x16x256xf32> to vector<1xf32>
    %189 = vector.shape_cast %188 : vector<1xf32> to vector<1x1x1xf32>
    %190 = vector.extract %189[0, 0, 0] : f32 from vector<1x1x1xf32>
    %cst_104 = arith.constant 2.44140625E-4 : f32
    %191 = arith.mulf %190, %cst_104 : f32
    %192 = vector.broadcast %191 : f32 to vector<16x256xf32>
    %193 = arith.subf %186, %192 : vector<16x256xf32>
    %194 = arith.mulf %193, %193 : vector<16x256xf32>
    %195 = vector.shape_cast %194 : vector<16x256xf32> to vector<1x16x256xf32>
    %cst_105 = arith.constant dense<0.000000e+00> : vector<1xf32>
    %196 = vector.multi_reduction <add>, %195, %cst_105 [1, 2] : vector<1x16x256xf32> to vector<1xf32>
    %197 = vector.shape_cast %196 : vector<1xf32> to vector<1x1x1xf32>
    %198 = vector.extract %197[0, 0, 0] : f32 from vector<1x1x1xf32>
    %cst_106 = arith.constant 2.44140625E-4 : f32
    %199 = arith.mulf %198, %cst_106 : f32
    %cst_107 = arith.constant 9.99999974E-6 : f32
    %200 = arith.addf %199, %cst_107 : f32
    %201 = math.rsqrt %200 : f32
    %202 = vector.broadcast %201 : f32 to vector<16x256xf32>
    %203 = arith.mulf %193, %202 : vector<16x256xf32>
    %c0_108 = arith.constant 0 : index
    %c0_109 = arith.constant 0 : index
    %204 = vector.load %arg10[%c0_108, %c0_109] : memref<16x1xf32, #tpu.memory_space<vmem>>, vector<16x1xf32>
    %205 = vector.broadcast %204 : vector<16x1xf32> to vector<16x256xf32>
    %206 = arith.mulf %203, %205 : vector<16x256xf32>
    %c0_110 = arith.constant 0 : index
    %c0_111 = arith.constant 0 : index
    %207 = vector.load %arg11[%c0_110, %c0_111] : memref<16x1xf32, #tpu.memory_space<vmem>>, vector<16x1xf32>
    %208 = vector.broadcast %207 : vector<16x1xf32> to vector<16x256xf32>
    %209 = arith.addf %206, %208 : vector<16x256xf32>
    %210 = arith.addf %209, %33 : vector<16x256xf32>
    %cst_112 = arith.constant 5.000000e-01 : f32
    %211 = vector.broadcast %cst_112 : f32 to vector<16x256xf32>
    %212 = arith.mulf %211, %210 : vector<16x256xf32>
    %cst_113 = arith.constant 0.707106769 : f32
    %213 = vector.broadcast %cst_113 : f32 to vector<16x256xf32>
    %214 = arith.mulf %210, %213 : vector<16x256xf32>
    %215 = math.absf %214 : vector<16x256xf32>
    %cst_114 = arith.constant 0.327591091 : f32
    %216 = vector.broadcast %cst_114 : f32 to vector<16x256xf32>
    %217 = arith.mulf %216, %215 : vector<16x256xf32>
    %cst_115 = arith.constant 1.000000e+00 : f32
    %218 = vector.broadcast %cst_115 : f32 to vector<16x256xf32>
    %219 = arith.addf %218, %217 : vector<16x256xf32>
    %cst_116 = arith.constant 1.000000e+00 : f32
    %220 = vector.broadcast %cst_116 : f32 to vector<16x256xf32>
    %221 = arith.divf %220, %219 : vector<16x256xf32>
    %cst_117 = arith.constant 1.06140542 : f32
    %222 = vector.broadcast %cst_117 : f32 to vector<16x256xf32>
    %223 = arith.mulf %222, %221 : vector<16x256xf32>
    %cst_118 = arith.constant -1.45315206 : f32
    %224 = vector.broadcast %cst_118 : f32 to vector<16x256xf32>
    %225 = arith.addf %223, %224 : vector<16x256xf32>
    %226 = arith.mulf %225, %221 : vector<16x256xf32>
    %cst_119 = arith.constant 1.42141378 : f32
    %227 = vector.broadcast %cst_119 : f32 to vector<16x256xf32>
    %228 = arith.addf %226, %227 : vector<16x256xf32>
    %229 = arith.mulf %228, %221 : vector<16x256xf32>
    %cst_120 = arith.constant -0.284496725 : f32
    %230 = vector.broadcast %cst_120 : f32 to vector<16x256xf32>
    %231 = arith.addf %229, %230 : vector<16x256xf32>
    %232 = arith.mulf %231, %221 : vector<16x256xf32>
    %cst_121 = arith.constant 0.254829586 : f32
    %233 = vector.broadcast %cst_121 : f32 to vector<16x256xf32>
    %234 = arith.addf %232, %233 : vector<16x256xf32>
    %235 = arith.mulf %234, %221 : vector<16x256xf32>
    %cst_122 = arith.constant 0.000000e+00 : f32
    %236 = vector.broadcast %cst_122 : f32 to vector<16x256xf32>
    %237 = arith.subf %236, %215 : vector<16x256xf32>
    %238 = arith.mulf %237, %215 : vector<16x256xf32>
    %239 = math.exp %238 : vector<16x256xf32>
    %240 = arith.mulf %235, %239 : vector<16x256xf32>
    %cst_123 = arith.constant 1.000000e+00 : f32
    %241 = vector.broadcast %cst_123 : f32 to vector<16x256xf32>
    %242 = arith.subf %241, %240 : vector<16x256xf32>
    %cst_124 = arith.constant 0.000000e+00 : f32
    %243 = vector.broadcast %cst_124 : f32 to vector<16x256xf32>
    %244 = arith.cmpf oge, %214, %243 : vector<16x256xf32>
    %cst_125 = arith.constant 0.000000e+00 : f32
    %245 = vector.broadcast %cst_125 : f32 to vector<16x256xf32>
    %246 = arith.subf %245, %242 : vector<16x256xf32>
    %247 = arith.select %244, %242, %246 : vector<16x256xi1>, vector<16x256xf32>
    %cst_126 = arith.constant 1.000000e+00 : f32
    %248 = vector.broadcast %cst_126 : f32 to vector<16x256xf32>
    %249 = arith.addf %248, %247 : vector<16x256xf32>
    %250 = arith.mulf %212, %249 : vector<16x256xf32>
    %c17_i32_127 = arith.constant 17 : i32
    %251 = tpu.dynamic_rotate %250 by %c17_i32_127 dim 1 : vector<16x256xf32>, i32 -> vector<16x256xf32>
    %252 = vector.broadcast %0 : vector<1x256xf32> to vector<16x256xf32>
    %253 = arith.mulf %251, %252 : vector<16x256xf32>
    %254 = arith.truncf %253 : vector<16x256xf32> to vector<16x256xbf16>
    %c0_128 = arith.constant 0 : index
    %c0_129 = arith.constant 0 : index
    %255 = vector.load %arg22[%c0_128, %c0_129] : memref<144x256xbf16, #tpu.memory_space<vmem>>, vector<16x256xbf16>
    tpu.vector_store %arg22[%c0_128, %c0_129], %254 {strides = array<i32>} : memref<144x256xbf16, #tpu.memory_space<vmem>>, vector<16x256xbf16>,
    %c16_i32_130 = arith.constant 16 : i32
    %256 = tpu.dynamic_rotate %250 by %c16_i32_130 dim 1 : vector<16x256xf32>, i32 -> vector<16x256xf32>
    %257 = vector.broadcast %1 : vector<1x256xf32> to vector<16x256xf32>
    %258 = arith.mulf %256, %257 : vector<16x256xf32>
    %259 = arith.truncf %258 : vector<16x256xf32> to vector<16x256xbf16>
    %c16_131 = arith.constant 16 : index
    %c0_132 = arith.constant 0 : index
    %260 = vector.load %arg22[%c16_131, %c0_132] : memref<144x256xbf16, #tpu.memory_space<vmem>>, vector<16x256xbf16>
    tpu.vector_store %arg22[%c16_131, %c0_132], %259 {strides = array<i32>} : memref<144x256xbf16, #tpu.memory_space<vmem>>, vector<16x256xbf16>,
    %c15_i32_133 = arith.constant 15 : i32
    %261 = tpu.dynamic_rotate %250 by %c15_i32_133 dim 1 : vector<16x256xf32>, i32 -> vector<16x256xf32>
    %262 = vector.broadcast %2 : vector<1x256xf32> to vector<16x256xf32>
    %263 = arith.mulf %261, %262 : vector<16x256xf32>
    %264 = arith.truncf %263 : vector<16x256xf32> to vector<16x256xbf16>
    %c32_134 = arith.constant 32 : index
    %c0_135 = arith.constant 0 : index
    %265 = vector.load %arg22[%c32_134, %c0_135] : memref<144x256xbf16, #tpu.memory_space<vmem>>, vector<16x256xbf16>
    tpu.vector_store %arg22[%c32_134, %c0_135], %264 {strides = array<i32>} : memref<144x256xbf16, #tpu.memory_space<vmem>>, vector<16x256xbf16>,
    %c1_i32_136 = arith.constant 1 : i32
    %266 = tpu.dynamic_rotate %250 by %c1_i32_136 dim 1 : vector<16x256xf32>, i32 -> vector<16x256xf32>
    %267 = vector.broadcast %3 : vector<1x256xf32> to vector<16x256xf32>
    %268 = arith.mulf %266, %267 : vector<16x256xf32>
    %269 = arith.truncf %268 : vector<16x256xf32> to vector<16x256xbf16>
    %c48_137 = arith.constant 48 : index
    %c0_138 = arith.constant 0 : index
    %270 = vector.load %arg22[%c48_137, %c0_138] : memref<144x256xbf16, #tpu.memory_space<vmem>>, vector<16x256xbf16>
    tpu.vector_store %arg22[%c48_137, %c0_138], %269 {strides = array<i32>} : memref<144x256xbf16, #tpu.memory_space<vmem>>, vector<16x256xbf16>,
    %271 = arith.truncf %250 : vector<16x256xf32> to vector<16x256xbf16>
    %c64_139 = arith.constant 64 : index
    %c0_140 = arith.constant 0 : index
    %272 = vector.load %arg22[%c64_139, %c0_140] : memref<144x256xbf16, #tpu.memory_space<vmem>>, vector<16x256xbf16>
    tpu.vector_store %arg22[%c64_139, %c0_140], %271 {strides = array<i32>} : memref<144x256xbf16, #tpu.memory_space<vmem>>, vector<16x256xbf16>,
    %c255_i32_141 = arith.constant 255 : i32
    %273 = tpu.dynamic_rotate %250 by %c255_i32_141 dim 1 : vector<16x256xf32>, i32 -> vector<16x256xf32>
    %274 = vector.broadcast %4 : vector<1x256xf32> to vector<16x256xf32>
    %275 = arith.mulf %273, %274 : vector<16x256xf32>
    %276 = arith.truncf %275 : vector<16x256xf32> to vector<16x256xbf16>
    %c80_142 = arith.constant 80 : index
    %c0_143 = arith.constant 0 : index
    %277 = vector.load %arg22[%c80_142, %c0_143] : memref<144x256xbf16, #tpu.memory_space<vmem>>, vector<16x256xbf16>
    tpu.vector_store %arg22[%c80_142, %c0_143], %276 {strides = array<i32>} : memref<144x256xbf16, #tpu.memory_space<vmem>>, vector<16x256xbf16>,
    %c241_i32_144 = arith.constant 241 : i32
    %278 = tpu.dynamic_rotate %250 by %c241_i32_144 dim 1 : vector<16x256xf32>, i32 -> vector<16x256xf32>
    %279 = vector.broadcast %5 : vector<1x256xf32> to vector<16x256xf32>
    %280 = arith.mulf %278, %279 : vector<16x256xf32>
    %281 = arith.truncf %280 : vector<16x256xf32> to vector<16x256xbf16>
    %c96_145 = arith.constant 96 : index
    %c0_146 = arith.constant 0 : index
    %282 = vector.load %arg22[%c96_145, %c0_146] : memref<144x256xbf16, #tpu.memory_space<vmem>>, vector<16x256xbf16>
    tpu.vector_store %arg22[%c96_145, %c0_146], %281 {strides = array<i32>} : memref<144x256xbf16, #tpu.memory_space<vmem>>, vector<16x256xbf16>,
    %c240_i32_147 = arith.constant 240 : i32
    %283 = tpu.dynamic_rotate %250 by %c240_i32_147 dim 1 : vector<16x256xf32>, i32 -> vector<16x256xf32>
    %284 = vector.broadcast %6 : vector<1x256xf32> to vector<16x256xf32>
    %285 = arith.mulf %283, %284 : vector<16x256xf32>
    %286 = arith.truncf %285 : vector<16x256xf32> to vector<16x256xbf16>
    %c112_148 = arith.constant 112 : index
    %c0_149 = arith.constant 0 : index
    %287 = vector.load %arg22[%c112_148, %c0_149] : memref<144x256xbf16, #tpu.memory_space<vmem>>, vector<16x256xbf16>
    tpu.vector_store %arg22[%c112_148, %c0_149], %286 {strides = array<i32>} : memref<144x256xbf16, #tpu.memory_space<vmem>>, vector<16x256xbf16>,
    %c239_i32_150 = arith.constant 239 : i32
    %288 = tpu.dynamic_rotate %250 by %c239_i32_150 dim 1 : vector<16x256xf32>, i32 -> vector<16x256xf32>
    %289 = vector.broadcast %7 : vector<1x256xf32> to vector<16x256xf32>
    %290 = arith.mulf %288, %289 : vector<16x256xf32>
    %291 = arith.truncf %290 : vector<16x256xf32> to vector<16x256xbf16>
    %c128_151 = arith.constant 128 : index
    %c0_152 = arith.constant 0 : index
    %292 = vector.load %arg22[%c128_151, %c0_152] : memref<144x256xbf16, #tpu.memory_space<vmem>>, vector<16x256xbf16>
    tpu.vector_store %arg22[%c128_151, %c0_152], %291 {strides = array<i32>} : memref<144x256xbf16, #tpu.memory_space<vmem>>, vector<16x256xbf16>,
    %c0_153 = arith.constant 0 : index
    %c0_154 = arith.constant 0 : index
    %293 = vector.load %arg22[%c0_153, %c0_154] : memref<144x256xbf16, #tpu.memory_space<vmem>>, vector<144x256xbf16>
    %c0_155 = arith.constant 0 : index
    %c0_156 = arith.constant 0 : index
    %294 = vector.load %arg12[%c0_155, %c0_156] : memref<16x144xbf16, #tpu.memory_space<vmem>>, vector<16x144xbf16>
    %cst_157 = arith.constant dense<0.000000e+00> : vector<16x256xf32>
    %295 = tpu.matmul %294, %293, %cst_157 {dimension_numbers = #tpu.dot_dimension_numbers<[1], [0], [0], [1], [0, 0, 1, 1], [], []>} : vector<16x144xbf16>, vector<144x256xbf16>, vector<16x256xf32> -> vector<16x256xf32>
    %296 = vector.shape_cast %295 : vector<16x256xf32> to vector<1x16x256xf32>
    %cst_158 = arith.constant dense<0.000000e+00> : vector<1xf32>
    %297 = vector.multi_reduction <add>, %296, %cst_158 [1, 2] : vector<1x16x256xf32> to vector<1xf32>
    %298 = vector.shape_cast %297 : vector<1xf32> to vector<1x1x1xf32>
    %299 = vector.extract %298[0, 0, 0] : f32 from vector<1x1x1xf32>
    %cst_159 = arith.constant 2.44140625E-4 : f32
    %300 = arith.mulf %299, %cst_159 : f32
    %301 = vector.broadcast %300 : f32 to vector<16x256xf32>
    %302 = arith.subf %295, %301 : vector<16x256xf32>
    %303 = arith.mulf %302, %302 : vector<16x256xf32>
    %304 = vector.shape_cast %303 : vector<16x256xf32> to vector<1x16x256xf32>
    %cst_160 = arith.constant dense<0.000000e+00> : vector<1xf32>
    %305 = vector.multi_reduction <add>, %304, %cst_160 [1, 2] : vector<1x16x256xf32> to vector<1xf32>
    %306 = vector.shape_cast %305 : vector<1xf32> to vector<1x1x1xf32>
    %307 = vector.extract %306[0, 0, 0] : f32 from vector<1x1x1xf32>
    %cst_161 = arith.constant 2.44140625E-4 : f32
    %308 = arith.mulf %307, %cst_161 : f32
    %cst_162 = arith.constant 9.99999974E-6 : f32
    %309 = arith.addf %308, %cst_162 : f32
    %310 = math.rsqrt %309 : f32
    %311 = vector.broadcast %310 : f32 to vector<16x256xf32>
    %312 = arith.mulf %302, %311 : vector<16x256xf32>
    %c0_163 = arith.constant 0 : index
    %c0_164 = arith.constant 0 : index
    %313 = vector.load %arg13[%c0_163, %c0_164] : memref<16x1xf32, #tpu.memory_space<vmem>>, vector<16x1xf32>
    %314 = vector.broadcast %313 : vector<16x1xf32> to vector<16x256xf32>
    %315 = arith.mulf %312, %314 : vector<16x256xf32>
    %c0_165 = arith.constant 0 : index
    %c0_166 = arith.constant 0 : index
    %316 = vector.load %arg14[%c0_165, %c0_166] : memref<16x1xf32, #tpu.memory_space<vmem>>, vector<16x1xf32>
    %317 = vector.broadcast %316 : vector<16x1xf32> to vector<16x256xf32>
    %318 = arith.addf %315, %317 : vector<16x256xf32>
    %cst_167 = arith.constant 5.000000e-01 : f32
    %319 = vector.broadcast %cst_167 : f32 to vector<16x256xf32>
    %320 = arith.mulf %319, %318 : vector<16x256xf32>
    %cst_168 = arith.constant 0.707106769 : f32
    %321 = vector.broadcast %cst_168 : f32 to vector<16x256xf32>
    %322 = arith.mulf %318, %321 : vector<16x256xf32>
    %323 = math.absf %322 : vector<16x256xf32>
    %cst_169 = arith.constant 0.327591091 : f32
    %324 = vector.broadcast %cst_169 : f32 to vector<16x256xf32>
    %325 = arith.mulf %324, %323 : vector<16x256xf32>
    %cst_170 = arith.constant 1.000000e+00 : f32
    %326 = vector.broadcast %cst_170 : f32 to vector<16x256xf32>
    %327 = arith.addf %326, %325 : vector<16x256xf32>
    %cst_171 = arith.constant 1.000000e+00 : f32
    %328 = vector.broadcast %cst_171 : f32 to vector<16x256xf32>
    %329 = arith.divf %328, %327 : vector<16x256xf32>
    %cst_172 = arith.constant 1.06140542 : f32
    %330 = vector.broadcast %cst_172 : f32 to vector<16x256xf32>
    %331 = arith.mulf %330, %329 : vector<16x256xf32>
    %cst_173 = arith.constant -1.45315206 : f32
    %332 = vector.broadcast %cst_173 : f32 to vector<16x256xf32>
    %333 = arith.addf %331, %332 : vector<16x256xf32>
    %334 = arith.mulf %333, %329 : vector<16x256xf32>
    %cst_174 = arith.constant 1.42141378 : f32
    %335 = vector.broadcast %cst_174 : f32 to vector<16x256xf32>
    %336 = arith.addf %334, %335 : vector<16x256xf32>
    %337 = arith.mulf %336, %329 : vector<16x256xf32>
    %cst_175 = arith.constant -0.284496725 : f32
    %338 = vector.broadcast %cst_175 : f32 to vector<16x256xf32>
    %339 = arith.addf %337, %338 : vector<16x256xf32>
    %340 = arith.mulf %339, %329 : vector<16x256xf32>
    %cst_176 = arith.constant 0.254829586 : f32
    %341 = vector.broadcast %cst_176 : f32 to vector<16x256xf32>
    %342 = arith.addf %340, %341 : vector<16x256xf32>
    %343 = arith.mulf %342, %329 : vector<16x256xf32>
    %cst_177 = arith.constant 0.000000e+00 : f32
    %344 = vector.broadcast %cst_177 : f32 to vector<16x256xf32>
    %345 = arith.subf %344, %323 : vector<16x256xf32>
    %346 = arith.mulf %345, %323 : vector<16x256xf32>
    %347 = math.exp %346 : vector<16x256xf32>
    %348 = arith.mulf %343, %347 : vector<16x256xf32>
    %cst_178 = arith.constant 1.000000e+00 : f32
    %349 = vector.broadcast %cst_178 : f32 to vector<16x256xf32>
    %350 = arith.subf %349, %348 : vector<16x256xf32>
    %cst_179 = arith.constant 0.000000e+00 : f32
    %351 = vector.broadcast %cst_179 : f32 to vector<16x256xf32>
    %352 = arith.cmpf oge, %322, %351 : vector<16x256xf32>
    %cst_180 = arith.constant 0.000000e+00 : f32
    %353 = vector.broadcast %cst_180 : f32 to vector<16x256xf32>
    %354 = arith.subf %353, %350 : vector<16x256xf32>
    %355 = arith.select %352, %350, %354 : vector<16x256xi1>, vector<16x256xf32>
    %cst_181 = arith.constant 1.000000e+00 : f32
    %356 = vector.broadcast %cst_181 : f32 to vector<16x256xf32>
    %357 = arith.addf %356, %355 : vector<16x256xf32>
    %358 = arith.mulf %320, %357 : vector<16x256xf32>
    %c17_i32_182 = arith.constant 17 : i32
    %359 = tpu.dynamic_rotate %358 by %c17_i32_182 dim 1 : vector<16x256xf32>, i32 -> vector<16x256xf32>
    %360 = vector.broadcast %0 : vector<1x256xf32> to vector<16x256xf32>
    %361 = arith.mulf %359, %360 : vector<16x256xf32>
    %362 = arith.truncf %361 : vector<16x256xf32> to vector<16x256xbf16>
    %c0_183 = arith.constant 0 : index
    %c0_184 = arith.constant 0 : index
    %363 = vector.load %arg22[%c0_183, %c0_184] : memref<144x256xbf16, #tpu.memory_space<vmem>>, vector<16x256xbf16>
    tpu.vector_store %arg22[%c0_183, %c0_184], %362 {strides = array<i32>} : memref<144x256xbf16, #tpu.memory_space<vmem>>, vector<16x256xbf16>,
    %c16_i32_185 = arith.constant 16 : i32
    %364 = tpu.dynamic_rotate %358 by %c16_i32_185 dim 1 : vector<16x256xf32>, i32 -> vector<16x256xf32>
    %365 = vector.broadcast %1 : vector<1x256xf32> to vector<16x256xf32>
    %366 = arith.mulf %364, %365 : vector<16x256xf32>
    %367 = arith.truncf %366 : vector<16x256xf32> to vector<16x256xbf16>
    %c16_186 = arith.constant 16 : index
    %c0_187 = arith.constant 0 : index
    %368 = vector.load %arg22[%c16_186, %c0_187] : memref<144x256xbf16, #tpu.memory_space<vmem>>, vector<16x256xbf16>
    tpu.vector_store %arg22[%c16_186, %c0_187], %367 {strides = array<i32>} : memref<144x256xbf16, #tpu.memory_space<vmem>>, vector<16x256xbf16>,
    %c15_i32_188 = arith.constant 15 : i32
    %369 = tpu.dynamic_rotate %358 by %c15_i32_188 dim 1 : vector<16x256xf32>, i32 -> vector<16x256xf32>
    %370 = vector.broadcast %2 : vector<1x256xf32> to vector<16x256xf32>
    %371 = arith.mulf %369, %370 : vector<16x256xf32>
    %372 = arith.truncf %371 : vector<16x256xf32> to vector<16x256xbf16>
    %c32_189 = arith.constant 32 : index
    %c0_190 = arith.constant 0 : index
    %373 = vector.load %arg22[%c32_189, %c0_190] : memref<144x256xbf16, #tpu.memory_space<vmem>>, vector<16x256xbf16>
    tpu.vector_store %arg22[%c32_189, %c0_190], %372 {strides = array<i32>} : memref<144x256xbf16, #tpu.memory_space<vmem>>, vector<16x256xbf16>,
    %c1_i32_191 = arith.constant 1 : i32
    %374 = tpu.dynamic_rotate %358 by %c1_i32_191 dim 1 : vector<16x256xf32>, i32 -> vector<16x256xf32>
    %375 = vector.broadcast %3 : vector<1x256xf32> to vector<16x256xf32>
    %376 = arith.mulf %374, %375 : vector<16x256xf32>
    %377 = arith.truncf %376 : vector<16x256xf32> to vector<16x256xbf16>
    %c48_192 = arith.constant 48 : index
    %c0_193 = arith.constant 0 : index
    %378 = vector.load %arg22[%c48_192, %c0_193] : memref<144x256xbf16, #tpu.memory_space<vmem>>, vector<16x256xbf16>
    tpu.vector_store %arg22[%c48_192, %c0_193], %377 {strides = array<i32>} : memref<144x256xbf16, #tpu.memory_space<vmem>>, vector<16x256xbf16>,
    %379 = arith.truncf %358 : vector<16x256xf32> to vector<16x256xbf16>
    %c64_194 = arith.constant 64 : index
    %c0_195 = arith.constant 0 : index
    %380 = vector.load %arg22[%c64_194, %c0_195] : memref<144x256xbf16, #tpu.memory_space<vmem>>, vector<16x256xbf16>
    tpu.vector_store %arg22[%c64_194, %c0_195], %379 {strides = array<i32>} : memref<144x256xbf16, #tpu.memory_space<vmem>>, vector<16x256xbf16>,
    %c255_i32_196 = arith.constant 255 : i32
    %381 = tpu.dynamic_rotate %358 by %c255_i32_196 dim 1 : vector<16x256xf32>, i32 -> vector<16x256xf32>
    %382 = vector.broadcast %4 : vector<1x256xf32> to vector<16x256xf32>
    %383 = arith.mulf %381, %382 : vector<16x256xf32>
    %384 = arith.truncf %383 : vector<16x256xf32> to vector<16x256xbf16>
    %c80_197 = arith.constant 80 : index
    %c0_198 = arith.constant 0 : index
    %385 = vector.load %arg22[%c80_197, %c0_198] : memref<144x256xbf16, #tpu.memory_space<vmem>>, vector<16x256xbf16>
    tpu.vector_store %arg22[%c80_197, %c0_198], %384 {strides = array<i32>} : memref<144x256xbf16, #tpu.memory_space<vmem>>, vector<16x256xbf16>,
    %c241_i32_199 = arith.constant 241 : i32
    %386 = tpu.dynamic_rotate %358 by %c241_i32_199 dim 1 : vector<16x256xf32>, i32 -> vector<16x256xf32>
    %387 = vector.broadcast %5 : vector<1x256xf32> to vector<16x256xf32>
    %388 = arith.mulf %386, %387 : vector<16x256xf32>
    %389 = arith.truncf %388 : vector<16x256xf32> to vector<16x256xbf16>
    %c96_200 = arith.constant 96 : index
    %c0_201 = arith.constant 0 : index
    %390 = vector.load %arg22[%c96_200, %c0_201] : memref<144x256xbf16, #tpu.memory_space<vmem>>, vector<16x256xbf16>
    tpu.vector_store %arg22[%c96_200, %c0_201], %389 {strides = array<i32>} : memref<144x256xbf16, #tpu.memory_space<vmem>>, vector<16x256xbf16>,
    %c240_i32_202 = arith.constant 240 : i32
    %391 = tpu.dynamic_rotate %358 by %c240_i32_202 dim 1 : vector<16x256xf32>, i32 -> vector<16x256xf32>
    %392 = vector.broadcast %6 : vector<1x256xf32> to vector<16x256xf32>
    %393 = arith.mulf %391, %392 : vector<16x256xf32>
    %394 = arith.truncf %393 : vector<16x256xf32> to vector<16x256xbf16>
    %c112_203 = arith.constant 112 : index
    %c0_204 = arith.constant 0 : index
    %395 = vector.load %arg22[%c112_203, %c0_204] : memref<144x256xbf16, #tpu.memory_space<vmem>>, vector<16x256xbf16>
    tpu.vector_store %arg22[%c112_203, %c0_204], %394 {strides = array<i32>} : memref<144x256xbf16, #tpu.memory_space<vmem>>, vector<16x256xbf16>,
    %c239_i32_205 = arith.constant 239 : i32
    %396 = tpu.dynamic_rotate %358 by %c239_i32_205 dim 1 : vector<16x256xf32>, i32 -> vector<16x256xf32>
    %397 = vector.broadcast %7 : vector<1x256xf32> to vector<16x256xf32>
    %398 = arith.mulf %396, %397 : vector<16x256xf32>
    %399 = arith.truncf %398 : vector<16x256xf32> to vector<16x256xbf16>
    %c128_206 = arith.constant 128 : index
    %c0_207 = arith.constant 0 : index
    %400 = vector.load %arg22[%c128_206, %c0_207] : memref<144x256xbf16, #tpu.memory_space<vmem>>, vector<16x256xbf16>
    tpu.vector_store %arg22[%c128_206, %c0_207], %399 {strides = array<i32>} : memref<144x256xbf16, #tpu.memory_space<vmem>>, vector<16x256xbf16>,
    %c0_208 = arith.constant 0 : index
    %c0_209 = arith.constant 0 : index
    %401 = vector.load %arg22[%c0_208, %c0_209] : memref<144x256xbf16, #tpu.memory_space<vmem>>, vector<144x256xbf16>
    %c0_210 = arith.constant 0 : index
    %c0_211 = arith.constant 0 : index
    %402 = vector.load %arg15[%c0_210, %c0_211] : memref<16x144xbf16, #tpu.memory_space<vmem>>, vector<16x144xbf16>
    %cst_212 = arith.constant dense<0.000000e+00> : vector<16x256xf32>
    %403 = tpu.matmul %402, %401, %cst_212 {dimension_numbers = #tpu.dot_dimension_numbers<[1], [0], [0], [1], [0, 0, 1, 1], [], []>} : vector<16x144xbf16>, vector<144x256xbf16>, vector<16x256xf32> -> vector<16x256xf32>
    %404 = vector.shape_cast %403 : vector<16x256xf32> to vector<1x16x256xf32>
    %cst_213 = arith.constant dense<0.000000e+00> : vector<1xf32>
    %405 = vector.multi_reduction <add>, %404, %cst_213 [1, 2] : vector<1x16x256xf32> to vector<1xf32>
    %406 = vector.shape_cast %405 : vector<1xf32> to vector<1x1x1xf32>
    %407 = vector.extract %406[0, 0, 0] : f32 from vector<1x1x1xf32>
    %cst_214 = arith.constant 2.44140625E-4 : f32
    %408 = arith.mulf %407, %cst_214 : f32
    %409 = vector.broadcast %408 : f32 to vector<16x256xf32>
    %410 = arith.subf %403, %409 : vector<16x256xf32>
    %411 = arith.mulf %410, %410 : vector<16x256xf32>
    %412 = vector.shape_cast %411 : vector<16x256xf32> to vector<1x16x256xf32>
    %cst_215 = arith.constant dense<0.000000e+00> : vector<1xf32>
    %413 = vector.multi_reduction <add>, %412, %cst_215 [1, 2] : vector<1x16x256xf32> to vector<1xf32>
    %414 = vector.shape_cast %413 : vector<1xf32> to vector<1x1x1xf32>
    %415 = vector.extract %414[0, 0, 0] : f32 from vector<1x1x1xf32>
    %cst_216 = arith.constant 2.44140625E-4 : f32
    %416 = arith.mulf %415, %cst_216 : f32
    %cst_217 = arith.constant 9.99999974E-6 : f32
    %417 = arith.addf %416, %cst_217 : f32
    %418 = math.rsqrt %417 : f32
    %419 = vector.broadcast %418 : f32 to vector<16x256xf32>
    %420 = arith.mulf %410, %419 : vector<16x256xf32>
    %c0_218 = arith.constant 0 : index
    %c0_219 = arith.constant 0 : index
    %421 = vector.load %arg16[%c0_218, %c0_219] : memref<16x1xf32, #tpu.memory_space<vmem>>, vector<16x1xf32>
    %422 = vector.broadcast %421 : vector<16x1xf32> to vector<16x256xf32>
    %423 = arith.mulf %420, %422 : vector<16x256xf32>
    %c0_220 = arith.constant 0 : index
    %c0_221 = arith.constant 0 : index
    %424 = vector.load %arg17[%c0_220, %c0_221] : memref<16x1xf32, #tpu.memory_space<vmem>>, vector<16x1xf32>
    %425 = vector.broadcast %424 : vector<16x1xf32> to vector<16x256xf32>
    %426 = arith.addf %423, %425 : vector<16x256xf32>
    %427 = vector.broadcast %24 : vector<16x1xf32> to vector<16x256xf32>
    %428 = arith.addf %426, %427 : vector<16x256xf32>
    %c0_222 = arith.constant 0 : index
    %c0_223 = arith.constant 0 : index
    %c0_224 = arith.constant 0 : index
    %429 = vector.load %arg20[%c0_222, %c0_223, %c0_224] : memref<1x16x256xf32, #tpu.memory_space<vmem>>, vector<1x16x256xf32>
    %430 = vector.shape_cast %429 : vector<1x16x256xf32> to vector<16x256xf32>
    %431 = vector.shape_cast %428 : vector<16x256xf32> to vector<1x16x256xf32>
    tpu.vector_store %arg20[%c0_222, %c0_223, %c0_224], %431 {strides = array<i32>} : memref<1x16x256xf32, #tpu.memory_space<vmem>>, vector<1x16x256xf32>,
    return
  }
  func.func @transform_0(%arg0: i32) -> (i32, i32, i32) {
    %c0_i32 = arith.constant 0 : i32
    %c0_i32_0 = arith.constant 0 : i32
    %c0_i32_1 = arith.constant 0 : i32
    return %arg0, %c0_i32, %c0_i32_0 : i32, i32, i32
  }
  func.func @transform_1(%arg0: i32) -> (i32, i32, i32) {
    %c0_i32 = arith.constant 0 : i32
    %c0_i32_0 = arith.constant 0 : i32
    %c0_i32_1 = arith.constant 0 : i32
    return %arg0, %c0_i32, %c0_i32_0 : i32, i32, i32
  }
  func.func @transform_2(%arg0: i32) -> (i32, i32, i32) {
    %c0_i32 = arith.constant 0 : i32
    %c0_i32_0 = arith.constant 0 : i32
    %c0_i32_1 = arith.constant 0 : i32
    return %arg0, %c0_i32, %c0_i32_0 : i32, i32, i32
  }
  func.func @transform_3(%arg0: i32) -> (i32, i32) {
    %c0_i32 = arith.constant 0 : i32
    %c0_i32_0 = arith.constant 0 : i32
    %c0_i32_1 = arith.constant 0 : i32
    return %c0_i32, %c0_i32_0 : i32, i32
  }
  func.func @transform_4(%arg0: i32) -> (i32, i32) {
    %c0_i32 = arith.constant 0 : i32
    %c0_i32_0 = arith.constant 0 : i32
    %c0_i32_1 = arith.constant 0 : i32
    return %c0_i32, %c0_i32_0 : i32, i32
  }
  func.func @transform_5(%arg0: i32) -> (i32, i32) {
    %c0_i32 = arith.constant 0 : i32
    %c0_i32_0 = arith.constant 0 : i32
    %c0_i32_1 = arith.constant 0 : i32
    return %c0_i32, %c0_i32_0 : i32, i32
  }
  func.func @transform_6(%arg0: i32) -> (i32, i32) {
    %c0_i32 = arith.constant 0 : i32
    %c0_i32_0 = arith.constant 0 : i32
    %c0_i32_1 = arith.constant 0 : i32
    return %c0_i32, %c0_i32_0 : i32, i32
  }
  func.func @transform_7(%arg0: i32) -> (i32, i32) {
    %c0_i32 = arith.constant 0 : i32
    %c0_i32_0 = arith.constant 0 : i32
    %c0_i32_1 = arith.constant 0 : i32
    return %c0_i32, %c0_i32_0 : i32, i32
  }
  func.func @transform_8(%arg0: i32) -> (i32, i32) {
    %c0_i32 = arith.constant 0 : i32
    %c0_i32_0 = arith.constant 0 : i32
    %c0_i32_1 = arith.constant 0 : i32
    return %c0_i32, %c0_i32_0 : i32, i32
  }
  func.func @transform_9(%arg0: i32) -> (i32, i32) {
    %c0_i32 = arith.constant 0 : i32
    %c0_i32_0 = arith.constant 0 : i32
    %c0_i32_1 = arith.constant 0 : i32
    return %c0_i32, %c0_i32_0 : i32, i32
  }
  func.func @transform_10(%arg0: i32) -> (i32, i32) {
    %c0_i32 = arith.constant 0 : i32
    %c0_i32_0 = arith.constant 0 : i32
    %c0_i32_1 = arith.constant 0 : i32
    return %c0_i32, %c0_i32_0 : i32, i32
  }
  func.func @transform_11(%arg0: i32) -> (i32, i32) {
    %c0_i32 = arith.constant 0 : i32
    %c0_i32_0 = arith.constant 0 : i32
    %c0_i32_1 = arith.constant 0 : i32
    return %c0_i32, %c0_i32_0 : i32, i32
  }
  func.func @transform_12(%arg0: i32) -> (i32, i32) {
    %c0_i32 = arith.constant 0 : i32
    %c0_i32_0 = arith.constant 0 : i32
    %c0_i32_1 = arith.constant 0 : i32
    return %c0_i32, %c0_i32_0 : i32, i32
  }
  func.func @transform_13(%arg0: i32) -> (i32, i32) {
    %c0_i32 = arith.constant 0 : i32
    %c0_i32_0 = arith.constant 0 : i32
    %c0_i32_1 = arith.constant 0 : i32
    return %c0_i32, %c0_i32_0 : i32, i32
  }
  func.func @transform_14(%arg0: i32) -> (i32, i32) {
    %c0_i32 = arith.constant 0 : i32
    %c0_i32_0 = arith.constant 0 : i32
    %c0_i32_1 = arith.constant 0 : i32
    return %c0_i32, %c0_i32_0 : i32, i32
  }
  func.func @transform_15(%arg0: i32) -> (i32, i32) {
    %c0_i32 = arith.constant 0 : i32
    %c0_i32_0 = arith.constant 0 : i32
    %c0_i32_1 = arith.constant 0 : i32
    return %c0_i32, %c0_i32_0 : i32, i32
  }
  func.func @transform_16(%arg0: i32) -> (i32, i32) {
    %c0_i32 = arith.constant 0 : i32
    %c0_i32_0 = arith.constant 0 : i32
    %c0_i32_1 = arith.constant 0 : i32
    return %c0_i32, %c0_i32_0 : i32, i32
  }
  func.func @transform_17(%arg0: i32) -> (i32, i32) {
    %c0_i32 = arith.constant 0 : i32
    %c0_i32_0 = arith.constant 0 : i32
    %c0_i32_1 = arith.constant 0 : i32
    return %c0_i32, %c0_i32_0 : i32, i32
  }
  func.func @transform_18(%arg0: i32) -> (i32, i32) {
    %c0_i32 = arith.constant 0 : i32
    %c0_i32_0 = arith.constant 0 : i32
    %c0_i32_1 = arith.constant 0 : i32
    return %c0_i32, %c0_i32_0 : i32, i32
  }
  func.func @transform_19(%arg0: i32) -> (i32, i32, i32) {
    %c0_i32 = arith.constant 0 : i32
    %c0_i32_0 = arith.constant 0 : i32
    %c0_i32_1 = arith.constant 0 : i32
    return %arg0, %c0_i32, %c0_i32_0 : i32, i32, i32
  }
}

</mosaic_0001>

<bundles_post_ra>
// kernel: upsample_block_forward.1
= control target key start
LH: loop header
LB: loop body
LE: loop exit
PB: predicated region body
PF: predicated region fallthrough
CT: control target
= control target key end

     0   :  { %s3951_s0 = inlined_call_operand.vmem [shape: f32[2,8,64], index: 0, kind: input, shape index: {}]   ;;  %s3952_s1 = inlined_call_operand.vmem [shape: f32[2,8,256], index: 1, kind: input, shape index: {}]   ;;  %s3953_s2 = inlined_call_operand.vmem [shape: f32[2,1,32], index: 2, kind: input, shape index: {}]   ;;  %s3954_s3 = inlined_call_operand.vmem [shape: f32[64,256], index: 3, kind: input, shape index: {}]   ;;  %s3955_s4 = inlined_call_operand.vmem [shape: f32[9,256], index: 4, kind: input, shape index: {}]   ;;  %s3956_s5 = inlined_call_operand.vmem [shape: bf16[16,144], index: 5, kind: input, shape index: {}]   ;;  %s3957_s6 = inlined_call_operand.vmem [shape: f32[16,1], index: 6, kind: input, shape index: {}]   ;;  %s3958_s7 = inlined_call_operand.vmem [shape: f32[16,1], index: 7, kind: input, shape index: {}]   ;;  %s3959_s8 = inlined_call_operand.vmem [shape: bf16[16,144], index: 8, kind: input, shape index: {}]   ;;  %s3960_s9 = inlined_call_operand.vmem [shape: f32[16,1], index: 9, kind: input, shape index: {}]   ;;  %s3961_s10 = inlined_call_operand.vmem [shape: f32[16,1], index: 10, kind: input, shape index: {}]   ;;  %s3962_s11 = inlined_call_operand.vmem [shape: bf16[16,144], index: 11, kind: input, shape index: {}]   ;;  %s3963_s12 = inlined_call_operand.vmem [shape: f32[16,1], index: 12, kind: input, shape index: {}]   ;;  %s3964_s13 = inlined_call_operand.vmem [shape: f32[16,1], index: 13, kind: input, shape index: {}]   ;;  %s3965_s14 = inlined_call_operand.vmem [shape: bf16[16,144], index: 14, kind: input, shape index: {}]   ;;  %s3966_s15 = inlined_call_operand.vmem [shape: f32[16,1], index: 15, kind: input, shape index: {}]   ;;  %s3967_s16 = inlined_call_operand.vmem [shape: f32[16,1], index: 16, kind: input, shape index: {}]   ;;  %s3968_s17 = inlined_call_operand.vmem [shape: f32[16,32], index: 17, kind: input, shape index: {}]   ;;  %s3969_s18 = inlined_call_operand.vmem [shape: f32[16,1], index: 18, kind: input, shape index: {}]   ;;  %s3970_s19 = inlined_call_operand.vmem [shape: f32[2,16,256], index: 19, kind: output, shape index: {}]  }
   0x1   :  { %3989 = sst [smem:[#allocation4_spill]] %s3951_s0  ;;  %s2848_s0 = smov 0  }
   0x2   :  { %3990 = sst [smem:[#allocation5_spill]] %s3952_s1 }
   0x3   :  { %3991 = sst [smem:[#allocation6_spill]] %s3953_s2 }
   0x4   :  { %3992 = sst [smem:[#allocation7_spill]] %s3954_s3 }
   0x5   :  { %3993 = sst [smem:[#allocation8_spill]] %s3955_s4 }
   0x6   :  { %3994 = sst [smem:[#allocation9_spill]] %s3956_s5 }
   0x7 LB: > { %s2562_s30 = sadd.s32 4294967295, %s2736_s0   ;;  %p2566_p0 = scmp.ge.s32.totalorder %s2736_s0, 1  ;;  %s2736_s0 = sphi %s2848_s0, %s29_s0  }
   0x8   : > { %p554_p1 = scmp.lt.s32.totalorder %s2736_s0, 3 }
   0xa   : > { %p555_p2 = pnand %p2566_p0, %p554_p1 }
   0xb   : > { %s3995_s1 = sld [smem:[#allocation7_spill]] (!%p555_p2)  ;;  %p617_p3 = scmp.lt.s32.totalorder (!%p555_p2), %s2562_s30, 1  ;;  %v2738_v7 = vmov (!%p555_p2), 0.0   ;;  %vm696_vm0 = vcmask (!%p555_p2), 523264   ;;  %vm1072_vm1 = vcmask (!%p555_p2), 130048   ;;  %v661_v43 = vlaneseq (!%p555_p2) }
   0xc   : > { %558 = sbr.rel (%p555_p2) target bundleno = 3996 (0xf9c), region = 96  ;;  %764 = vmatprep.mubr.f32.mxu0 (!%p555_p2), %v2738_v7  ;;  %s3996_s24 = sld [smem:[#allocation5_spill]] (!%p555_p2) }
   0xd   : > { %s3986_s27 = smov (!%p555_p2), 17   ;;  %s3984_s2 = smov (!%p555_p2), 16   ;;  %v662_v46 = vshrl.u32 (!%p555_p2), %v661_v43, 7  ;;  %v3004_v47 = vand.u32 (!%p555_p2), 127, %v661_v43 }
   0xe   : > { %s3997_s3 = sld [smem:[#allocation4_spill]] (!%p555_p2)  ;;  %s3982_s28 = smov (!%p555_p2), 15  }
   0xf   : > { %s3980_s29 = smov (!%p555_p2), 1   ;;  %s3976_s21 = smov (!%p555_p2), 113   ;;  %v3010_v50 = vsub.s32 (!%p555_p2), 0, %v662_v46  ;;  %v3012_v51 = vsub.s32 (!%p555_p2), 1, %v662_v46  ;;  %vm791_vm2 = vcmp.lt.s32.totalorder (!%p555_p2), %v3004_v47, 17  ;;  %vm823_vm3 = vcmp.lt.s32.totalorder (!%p555_p2), %v3004_v47, 16 }
  0x10   : > { %s3972_s23 = smov (!%p555_p2), 111   ;;  %s3998_s5 = sld [smem:[#allocation9_spill]] (!%p555_p2)  ;;  %vm855_vm4 = vcmp.lt.s32.totalorder (!%p555_p2), %v3004_v47, 15  ;;  %vm887_vm5 = vcmp.lt.s32.totalorder (!%p555_p2), %v3004_v47, 1  ;;  %vm923_vm6 = vcmp.lt.s32.totalorder (!%p555_p2), %v3004_v47, 127  ;;  %vm955_vm7 = vcmp.lt.s32.totalorder (!%p555_p2), %v3004_v47, 113 }
  0x11   : > { %v681_v0 = vld [vmem:[%s3995_s1 + $0x8] sm:$0xff] (!%p555_p2)  ;;  %v683_v1 = vld [vmem:[%s3995_s1 + $0x18] sm:$0xff] (!%p555_p2)  ;;  %v680_v2 = vld [vmem:[%s3995_s1] sm:$0xff] (!%p555_p2)  ;;  %s3999_s4 = sld [smem:[#allocation8_spill]] (!%p555_p2)  ;;  %vm987_vm8 = vcmp.lt.s32.totalorder (!%p555_p2), %v3004_v47, 112  ;;  %vm1019_vm9 = vcmp.lt.s32.totalorder (!%p555_p2), %v3004_v47, 111 }
  0x12   : > { %v2596_v3 = vpack.c.bf16 (!%p555_p2), %v683_v1, %v681_v0  ;;  %v682_v4 = vld [vmem:[%s3995_s1 + $0x10] sm:$0xff] (!%p555_p2)  ;;  %v685_v5 = vld [vmem:[%s3995_s1 + $0x28] sm:$0xff] (!%p555_p2)  ;;  %v687_v6 = vld [vmem:[%s3995_s1 + $0x38] sm:$0xff] (!%p555_p2) }
  0x13   : > { %v2598_v8 = vpack.c.bf16 %v682_v4, %v680_v2  ;;  %v2600_v9 = vpack.c.bf16 %v687_v6, %v685_v5  ;;  %v684_v10 = vld [vmem:[%s3995_s1 + $0x20] sm:$0xff]  ;;  %v686_v11 = vld [vmem:[%s3995_s1 + $0x30] sm:$0xff]  ;;  %v689_v12 = vld [vmem:[%s3995_s1 + $0x48] sm:$0xff]  ;;  %s4010_s30 = smov (!%p617_p3, %s2562_s30), 1 }
  0x14   : > { %2597 = vmatprep.subr.bf16.mxu0 %v2596_v3  ;;  %v691_v13 = vld [vmem:[%s3995_s1 + $0x58] sm:$0xff]  ;;  %v2602_v14 = vpack.c.bf16 %v686_v11, %v684_v10  ;;  %v688_v15 = vld [vmem:[%s3995_s1 + $0x40] sm:$0xff]  ;;  %v690_v16 = vld [vmem:[%s3995_s1 + $0x50] sm:$0xff]  ;;  %s2594_s20 = sshll.u32 %s4010_s30, 4  ;;  %s2567_s22 = sshll.u32 %s4010_s30, 3 }
  0x15   : > { %2599 = vmatpush1.bf16.msra.mxu0 %v2598_v8  ;;  %v2604_v17 = vpack.c.bf16 %v691_v13, %v689_v12  ;;  %v693_v18 = vld [vmem:[%s3995_s1 + $0x68] sm:$0xff]  ;;  %s2901_s25 = scalar_lea.vmem %s3996_s24, %s2594_s20  ;;  %v695_v19 = vld [vmem:[%s3995_s1 + $0x78] sm:$0xff]  ;;  %v2606_v22 = vpack.c.bf16 %v690_v16, %v688_v15  ;;  %v692_v24 = vld [vmem:[%s3995_s1 + $0x60] sm:$0xff]  ;;  %s620_s26 = scalar_lea.vmem %s3997_s3, %s2567_s22 }
  0x16   : > { %2601 = vmatprep.subr.bf16.mxu0 %v2600_v9  ;;  %v2907_v20 = vld [vmem:[%s2901_s25] sm:$0xff]  ;;  %v2910_v21 = vld [vmem:[%s2901_s25 + $0x8] sm:$0xff]  ;;  %v2608_v23 = vpack.c.bf16 %v695_v19, %v693_v18  ;;  %v694_v25 = vld [vmem:[%s3995_s1 + $0x70] sm:$0xff]  ;;  %s3978_s20 = smov 127   ;;  %s3974_s22 = smov 112  }
  0x17   : > { %781 = vrot.lane.b32.xlu0 %v2907_v20, %s3986_s27  ;;  %785 = vrot.lane.b32.xlu1 %v2910_v21, %s3986_s27  ;;  %v2610_v26 = vpack.c.bf16 %v694_v25, %v692_v24  ;;  %v679_v27 = vld [vmem:[%s620_s26] sm:$0xff]  ;;  %s4001_s26 = smov 127  }
  0x18   : > { %v2658_v30 = vld [vmem:[%s3998_s5 + $0x4] ss:$8 sps:$4 sm:$0xff]   ;;  %v635_v52 = vld [vmem:[%s3999_s4] ss:$8 sm:$0x3] }
  0x19   : > { %2603 = vmatpush1.bf16.msra.mxu0 %v2602_v14  ;;  %2582 = vmatprep.mubr.msk.bf16.mxu1 %vm1072_vm1, %v2658_v30  ;;  %v2572_v54 = vld [vmem:[%s3999_s4 + $0x1] ss:$8 sm:$0x3]  ;;  %v3024_v55 = vrot.slane %v635_v52, %v3012_v51  ;;  %v3027_v56 = vrot.slane %v635_v52, %v3010_v50  ;;  %v2573_v1 = vld [vmem:[%s3999_s4 + $0x2] ss:$8 sm:$0x3] }
  0x1a   : > { %2605 = vmatprep.subr.bf16.mxu0 %v2604_v17  ;;  %v3037_v61 = vrot.slane %v2572_v54, %v3010_v50  ;;  %v3040_v62 = vrot.slane %v2572_v54, %v3012_v51  ;;  %v3061_v12 = vrot.slane %v2573_v1, %v3010_v50  ;;  %v3064_v13 = vrot.slane %v2573_v1, %v3012_v51  ;;  %v2574_v18 = vld [vmem:[%s3999_s4 + $0x3] ss:$8 sm:$0x3] }
  0x1b   : > { %815 = vrot.lane.b32.xlu0 %v2907_v20, %s3984_s2  ;;  %v3083_v30 = vrot.slane %v2574_v18, %v3010_v50 }
  0x1d   : > { %2607 = vmatpush1.bf16.msra.mxu0 %v2606_v22 }
  0x1e   : > { %2609 = vmatprep.subr.bf16.mxu0 %v2608_v23 }
  0x1f   : > { %819 = vrot.lane.b32.xlu0 %v2910_v21, %s3984_s2 }
  0x21   : > { %2611 = vmatpush1.bf16.msra.mxu0 %v2610_v26 }
  0x23   : > { %847 = vrot.lane.b32.xlu0 %v2907_v20, %s3982_s28 }
  0x24   : > { %2579 = vmatmul.mubr.msk.f32.vlgmr.msra.gmra.mrb[0].mxu0 %vm696_vm0, %v679_v27 }
  0x27   : > { %851 = vrot.lane.b32.xlu0 %v2910_v21, %s3982_s28 }
  0x2b   : > { %879 = vrot.lane.b32.xlu0 %v2907_v20, %s3980_s29 }
  0x2f   : > { %883 = vrot.lane.b32.xlu0 %v2910_v21, %s3980_s29 }
  0x89   : > { %v782_v31 = vpop.permute.xlu0 %781  ;;  %v786_v37 = vpop.permute.xlu1 %785 }
  0x8a   : > { %v794_v58 = vsel %vm791_vm2, %v786_v37, %v782_v31  ;;  %v792_v59 = vsel %vm791_vm2, %v782_v31, %v786_v37  ;;  %v3086_v31 = vrot.slane %v2574_v18, %v3012_v51 }
  0x8b   : > { %v808_v2 = vmul.f32 %v3024_v55, %v792_v59  ;;  %v807_v4 = vmul.f32 %v3027_v56, %v794_v58 }
  0x8d   : > { %v816_v32 = vpop.permute.xlu0 %815 }
  0x91   : > { %v820_v33 = vpop.permute.xlu0 %819 }
  0x92   : > { %v824_v6 = vsel %vm823_vm3, %v816_v32, %v820_v33  ;;  %v826_v7 = vsel %vm823_vm3, %v820_v33, %v816_v32 }
  0x93   : > { %v839_v16 = vmul.f32 %v3037_v61, %v826_v7  ;;  %v840_v17 = vmul.f32 %v3040_v62, %v824_v6  ;;  %v2576_v6 = vld [vmem:[%s3999_s4 + $0x6] ss:$8 sm:$0x3] }
  0x95   : > { %v848_v34 = vpop.permute.xlu0 %847 }
  0x99   : > { %v852_v35 = vpop.permute.xlu0 %851 }
  0x9a   : > { %v856_v23 = vsel %vm855_vm4, %v848_v34, %v852_v35  ;;  %v858_v24 = vsel %vm855_vm4, %v852_v35, %v848_v34 }
  0x9b   : > { %v871_v34 = vmul.f32 %v3061_v12, %v858_v24  ;;  %v872_v35 = vmul.f32 %v3064_v13, %v856_v23 }
  0x9d   : > { %v2994_v36 = vpop.permute.xlu0 %879 }
  0xa1   : > { %v2996_v38 = vpop.permute.xlu0 %883 }
  0xa2   : > { %v888_v43 = vsel %vm887_vm5, %v2994_v36, %v2996_v38 }
  0xf7   : > { %v2938_v28 = vpop.f32.mrb[0].mxu0 }
  0xf8   : > { %817 = vrot.lane.b32.xlu1 %v2938_v28, %s3984_s2  ;;  %783 = vrot.lane.b32.xlu0 %v2938_v28, %s3986_s27  ;;  %v2944_v29 = vpop.f32.mrb[1].mxu0 }
  0xf9   : > { %v912_v7 = vpack.c.bf16 %v2944_v29, %v2910_v21 }
  0xfc   : > { %849 = vrot.lane.b32.xlu1 %v2938_v28, %s3982_s28  ;;  %915 = vrot.lane.b32.xlu0 %v2907_v20, %s3978_s20 }
 0x100   : > { %881 = vrot.lane.b32.xlu1 %v2938_v28, %s3980_s29  ;;  %919 = vrot.lane.b32.xlu0 %v2910_v21, %s3978_s20 }
 0x104   : > { %917 = vrot.lane.b32.xlu1 %v2938_v28, %s3978_s20  ;;  %947 = vrot.lane.b32.xlu0 %v2907_v20, %s3976_s21 }
 0x108   : > { %949 = vrot.lane.b32.xlu1 %v2938_v28, %s3976_s21  ;;  %951 = vrot.lane.b32.xlu0 %v2910_v21, %s3976_s21 }
 0x10c   : > { %981 = vrot.lane.b32.xlu1 %v2938_v28, %s3974_s22  ;;  %979 = vrot.lane.b32.xlu0 %v2907_v20, %s3974_s22 }
 0x110   : > { %787 = vrot.lane.b32.xlu1 %v2944_v29, %s3986_s27  ;;  %983 = vrot.lane.b32.xlu0 %v2910_v21, %s3974_s22 }
 0x114   : > { %821 = vrot.lane.b32.xlu1 %v2944_v29, %s3984_s2  ;;  %1011 = vrot.lane.b32.xlu0 %v2907_v20, %s3972_s23 }
 0x118   : > { %853 = vrot.lane.b32.xlu1 %v2944_v29, %s3982_s28  ;;  %1015 = vrot.lane.b32.xlu0 %v2910_v21, %s3972_s23  ;;  %v3143_v21 = vrot.slane %v2576_v6, %v3010_v50 }
 0x11c   : > { %885 = vrot.lane.b32.xlu1 %v2944_v29, %s3980_s29 }
 0x120   : > { %1013 = vrot.lane.b32.xlu1 %v2938_v28, %s3972_s23 }
 0x124   : > { %921 = vrot.lane.b32.xlu1 %v2944_v29, %s3978_s20  ;;  %s4000_s20 = smov 1  }
 0x128   : > { %953 = vrot.lane.b32.xlu1 %v2944_v29, %s3976_s21 }
 0x12c   : > { %985 = vrot.lane.b32.xlu1 %v2944_v29, %s3974_s22 }
 0x130   : > { %1017 = vrot.lane.b32.xlu1 %v2944_v29, %s3972_s23 }
 0x16a   : > { %v818_v39 = vpop.permute.xlu1 %817  ;;  %v784_v41 = vpop.permute.xlu0 %783 }
 0x16e   : > { %v850_v40 = vpop.permute.xlu1 %849  ;;  %v3000_v44 = vpop.permute.xlu0 %915 }
 0x172   : > { %v2998_v42 = vpop.permute.xlu1 %881  ;;  %v3008_v49 = vpop.permute.xlu0 %919 }
 0x176   : > { %v3002_v45 = vpop.permute.xlu1 %917  ;;  %v3029_v57 = vpop.permute.xlu0 %947 }
 0x17a   : > { %v3006_v48 = vpop.permute.xlu1 %949  ;;  %v3058_v11 = vpop.permute.xlu0 %951 }
 0x17b   : > { %v956_v23 = vsel %vm955_vm7, %v3029_v57, %v3058_v11 }
 0x17e   : > { %v3018_v53 = vpop.permute.xlu1 %981 }
 0x182   : > { %v788_v60 = vpop.permute.xlu1 %787 }
 0x183   : > { %v795_v63 = vsel %vm791_vm2, %v788_v60, %v784_v41  ;;  %v793_v0 = vsel %vm791_vm2, %v784_v41, %v788_v60  ;;  %v980_v41 = vpop.permute.xlu0 %979 }
 0x184   : > { %v810_v3 = vmul.f32 %v3024_v55, %v793_v0  ;;  %v809_v5 = vmul.f32 %v3027_v56, %v795_v63  ;;  %v904_v63 = vmul.f32 %v3086_v31, %v888_v43 }
 0x186   : > { %v822_v8 = vpop.permute.xlu1 %821  ;;  %v812_v9 = vpack.c.bf16 %v810_v3, %v808_v2  ;;  %v811_v10 = vpack.c.bf16 %v809_v5, %v807_v4 }
 0x187   : > { %v825_v14 = vsel %vm823_vm3, %v818_v39, %v822_v8  ;;  %v827_v15 = vsel %vm823_vm3, %v822_v8, %v818_v39  ;;  %v984_v3 = vpop.permute.xlu0 %983  ;;  %v924_v8 = vsel %vm923_vm6, %v3000_v44, %v3008_v49 }
 0x188   : > { %v841_v19 = vmul.f32 %v3037_v61, %v827_v15  ;;  %v842_v22 = vmul.f32 %v3040_v62, %v825_v14  ;;  %1076 = vmatprep.subr.bf16.mxu1 %v812_v9  ;;  %v926_v9 = vsel %vm923_vm6, %v3008_v49, %v3000_v44  ;;  %v911_v14 = vpack.c.bf16 %v2938_v28, %v2907_v20  ;;  %v2577_v20 = vld [vmem:[%s3999_s4 + $0x7] ss:$8 sm:$0x3] }
 0x189   : > { %1077 = vmatpush1.bf16.msra.mxu1 %v811_v10  ;;  %v3146_v15 = vrot.slane %v2576_v6, %v3012_v51  ;;  %v988_v43 = vsel %vm987_vm8, %v980_v41, %v984_v3 }
 0x18a   : > { %v854_v25 = vpop.permute.xlu1 %853  ;;  %v844_v26 = vpack.c.bf16 %v842_v22, %v840_v17  ;;  %v843_v27 = vpack.c.bf16 %v841_v19, %v839_v16 }
 0x18b   : > { %v857_v32 = vsel %vm855_vm4, %v850_v40, %v854_v25  ;;  %v859_v33 = vsel %vm855_vm4, %v854_v25, %v850_v40  ;;  %v890_v40 = vsel %vm887_vm5, %v2996_v38, %v2994_v36  ;;  %v2575_v38 = vld [vmem:[%s3999_s4 + $0x5] ss:$8 sm:$0x3]  ;;  %v1012_v22 = vpop.permute.xlu0 %1011 }
 0x18c   : > { %v873_v37 = vmul.f32 %v3061_v12, %v859_v33  ;;  %v874_v39 = vmul.f32 %v3064_v13, %v857_v32  ;;  %1078 = vmatprep.subr.bf16.mxu1 %v844_v26  ;;  %v903_v60 = vmul.f32 %v3083_v30, %v890_v40  ;;  %v3121_v4 = vrot.slane %v2575_v38, %v3010_v50 }
 0x18d   : > { %1079 = vmatpush1.bf16.msra.mxu1 %v843_v27  ;;  %v3124_v5 = vrot.slane %v2575_v38, %v3012_v51  ;;  %v3171_v27 = vrot.slane %v2577_v20, %v3010_v50  ;;  %v3174_v32 = vrot.slane %v2577_v20, %v3012_v51  ;;  %v990_v40 = vsel %vm987_vm8, %v984_v3, %v980_v41 }
 0x18e   : > { %v886_v46 = vpop.permute.xlu1 %885  ;;  %v876_v52 = vpack.c.bf16 %v874_v39, %v872_v35  ;;  %v875_v54 = vpack.c.bf16 %v873_v37, %v871_v34  ;;  %v939_v49 = vmul.f32 %v3121_v4, %v924_v8  ;;  %v2578_v39 = vld [vmem:[%s3999_s4 + $0x10] ss:$8 sm:$0x3] }
 0x18f   : > { %v889_v58 = vsel %vm887_vm5, %v2998_v42, %v886_v46  ;;  %v891_v59 = vsel %vm887_vm5, %v886_v46, %v2998_v42  ;;  %v940_v17 = vmul.f32 %v3124_v5, %v926_v9 }
 0x190   : > { %v905_v0 = vmul.f32 %v3083_v30, %v891_v59  ;;  %v906_v36 = vmul.f32 %v3086_v31, %v889_v58  ;;  %1080 = vmatprep.subr.bf16.mxu1 %v876_v52  ;;  %v3195_v58 = vrot.slane %v2578_v39, %v3010_v50  ;;  %v3198_v59 = vrot.slane %v2578_v39, %v3012_v51 }
 0x191   : > { %1081 = vmatpush1.bf16.msra.mxu1 %v875_v54 }
 0x192   : > { %v3118_v1 = vpop.permute.xlu1 %1013  ;;  %v908_v2 = vpack.c.bf16 %v906_v36, %v904_v63  ;;  %v907_v42 = vpack.c.bf16 %v905_v0, %v903_v60  ;;  %v1003_v63 = vmul.f32 %v3171_v27, %v988_v43  ;;  %v1004_v0 = vmul.f32 %v3174_v32, %v990_v40 }
 0x194   : > { %1082 = vmatprep.subr.bf16.mxu1 %v908_v2 }
 0x195   : > { %1083 = vmatpush1.bf16.msra.mxu1 %v907_v42 }
 0x196   : > { %v922_v10 = vpop.permute.xlu1 %921  ;;  %1084 = vmatprep.subr.bf16.mxu1 %v912_v7 }
 0x197   : > { %v925_v16 = vsel %vm923_vm6, %v3002_v45, %v922_v10  ;;  %v927_v44 = vsel %vm923_vm6, %v922_v10, %v3002_v45  ;;  %v958_v45 = vsel %vm955_vm7, %v3058_v11, %v3029_v57  ;;  %v971_v11 = vmul.f32 %v3143_v21, %v956_v23 }
 0x198   : > { %v941_v18 = vmul.f32 %v3121_v4, %v925_v16  ;;  %v942_v19 = vmul.f32 %v3124_v5, %v927_v44  ;;  %v972_v34 = vmul.f32 %v3146_v15, %v958_v45  ;;  %v2747_v45 = vmov 0  }
 0x199   : > { %1085 = vmatpush1.bf16.msra.mxu1 %v911_v14  ;;  %2655 = vset.pattern.permute.xlu1 %v2747_v45 }
 0x19a   : > { %v954_v24 = vpop.permute.xlu1 %953  ;;  %v944_v25 = vpack.c.bf16 %v942_v19, %v940_v17  ;;  %v943_v26 = vpack.c.bf16 %v941_v18, %v939_v49  ;;  %v2656_v49 = vld [vmem:[%s3998_s5] ss:$8 sps:$4 sm:$0xff]   ;;  %2654 = vset.pattern.permute.xlu0 %v2747_v45 }
 0x19b   : > { %v957_v33 = vsel %vm955_vm7, %v3006_v48, %v954_v24  ;;  %v959_v57 = vsel %vm955_vm7, %v954_v24, %v3006_v48  ;;  %v1016_v48 = vpop.permute.xlu0 %1015 }
 0x19c   : > { %v973_v35 = vmul.f32 %v3143_v21, %v957_v33  ;;  %v974_v37 = vmul.f32 %v3146_v15, %v959_v57  ;;  %1086 = vmatprep.subr.bf16.mxu1 %v944_v25  ;;  %v1020_v51 = vsel %vm1019_vm9, %v1012_v22, %v1016_v48  ;;  %v1022_v2 = vsel %vm1019_vm9, %v1016_v48, %v1012_v22 }
 0x19d   : > { %1087 = vmatpush1.bf16.msra.mxu1 %v943_v26  ;;  %v1035_v8 = vmul.f32 %v3195_v58, %v1020_v51  ;;  %v1036_v9 = vmul.f32 %v3198_v59, %v1022_v2  ;;  %v1180_v51 = vld [vmem:[%s3958_s7 + $0x8] sm:$0xff] }
 0x19e   : > { %v986_v46 = vpop.permute.xlu1 %985  ;;  %v976_v52 = vpack.c.bf16 %v974_v37, %v972_v34  ;;  %v975_v54 = vpack.c.bf16 %v973_v35, %v971_v11 }
 0x19f   : > { %v989_v60 = vsel %vm987_vm8, %v3018_v53, %v986_v46  ;;  %v991_v41 = vsel %vm987_vm8, %v986_v46, %v3018_v53 }
 0x1a0   : > { %v1005_v36 = vmul.f32 %v3171_v27, %v989_v60  ;;  %v1006_v38 = vmul.f32 %v3174_v32, %v991_v41  ;;  %1088 = vmatprep.subr.bf16.mxu1 %v976_v52 }
 0x1a1   : > { %1089 = vmatpush1.bf16.msra.mxu1 %v975_v54 }
 0x1a2   : > { %v1018_v42 = vpop.permute.xlu1 %1017  ;;  %v1008_v3 = vpack.c.bf16 %v1006_v38, %v1004_v0  ;;  %v1007_v6 = vpack.c.bf16 %v1005_v36, %v1003_v63  ;;  %v1164_v0 = vld [vmem:[%s3957_s6 + $0x8] sm:$0xff]  ;;  %v1163_v36 = vld [vmem:[%s3957_s6] sm:$0xff] }
 0x1a3   : > { %v1021_v53 = vsel %vm1019_vm9, %v3118_v1, %v1018_v42  ;;  %v1023_v7 = vsel %vm1019_vm9, %v1018_v42, %v3118_v1  ;;  %v1179_v38 = vld [vmem:[%s3958_s7] sm:$0xff] }
 0x1a4   : > { %v1037_v10 = vmul.f32 %v3195_v58, %v1021_v53  ;;  %v1038_v14 = vmul.f32 %v3198_v59, %v1023_v7  ;;  %1090 = vmatprep.subr.bf16.mxu1 %v1008_v3 }
 0x1a5   : > { %1091 = vmatpush1.bf16.msra.mxu1 %v1007_v6 }
 0x1a6   : > { %v1040_v16 = vpack.c.bf16 %v1038_v14, %v1036_v9  ;;  %v1039_v44 = vpack.c.bf16 %v1037_v10, %v1035_v8 }
 0x1a8   : > { %1092 = vmatprep.subr.bf16.mxu1 %v1040_v16 }
 0x1a9   : > { %1093 = vmatpush1.bf16.msra.mxu1 %v1039_v44 }
 0x1ac   : > { %1109 = vmatmul.mubr.bf16.vlgmr.msra.gmra.mrb[0].mxu1 %v2656_v49 }
 0x27f   : > { %v1110_v1 = vpop.f32.mrb[0].mxu1 }
 0x280   : > { %v1112_v17 = vpop.f32.mrb[1].mxu1 }
 0x281   : > { %v1119_v20 = vadd.f32 %v1112_v17, %v1110_v1  ;;  %v1114_v18 = vpop.f32.mrb[2].mxu1 }
 0x282   : > { %v1116_v19 = vpop.f32.mrb[3].mxu1 }
 0x283   : > { %v1120_v22 = vadd.f32 %v1119_v20, %v1114_v18 }
 0x285   : > { %v1121_v23 = vadd.f32 %v1120_v22, %v1116_v19 }
 0x287   : > { %1122 = vadd.xlane.f32.xlu0 %v1121_v23 }
 0x29d   : > { %1167 = vperm.xlu0 %2654, %v1163_v36  }
 0x314   : > { %v1123_v24 = vpop.xlane.xlu0 %1122 }
 0x315   : > { %v1124_v25 = vrot.slane %v1123_v24, 4 }
 0x317   : > { %v1125_v26 = vadd.f32 %v1124_v25, %v1123_v24 }
 0x319   : > { %v1126_v33 = vrot.slane %v1125_v26, 2 }
 0x31b   : > { %v1127_v57 = vadd.f32 %v1126_v33, %v1125_v26 }
 0x31c   : > { %v1168_v49 = vpop.permute.xlu0 %1167 }
 0x31d   : > { %v1128_v11 = vrot.slane %v1127_v57, 1 }
 0x31f   : > { %v1129_v34 = vadd.f32 %v1128_v11, %v1127_v57 }
 0x321   : > { %2612 = vpush %v1129_v34 }
 0x352   : > { %s2613_s24 = spop %2612 }
 0x353   : > { %s1131_s3 = smul.f32 0.00024414063, %s2613_s24  ;;  %s4002_s24 = smov 113  }
 0x355   : > { %v1132_v35 = vstv %s1131_s3  ;;  %s4003_s3 = smov 112  }
 0x356   : > { %v1133_v37 = vsub.f32 %v1110_v1, %v1132_v35  ;;  %v1134_v39 = vsub.f32 %v1112_v17, %v1132_v35  ;;  %v1135_v43 = vsub.f32 %v1114_v18, %v1132_v35  ;;  %v1136_v40 = vsub.f32 %v1116_v19, %v1132_v35 }
 0x358   : > { %v1137_v48 = vmul.f32 %v1133_v37, %v1133_v37  ;;  %v1138_v46 = vmul.f32 %v1134_v39, %v1134_v39  ;;  %v1139_v52 = vmul.f32 %v1135_v43, %v1135_v43  ;;  %v1140_v60 = vmul.f32 %v1136_v40, %v1136_v40 }
 0x35a   : > { %v1141_v54 = vadd.f32 %v1138_v46, %v1137_v48 }
 0x35c   : > { %v1142_v41 = vadd.f32 %v1141_v54, %v1139_v52 }
 0x35e   : > { %v1143_v63 = vadd.f32 %v1142_v41, %v1140_v60 }
 0x360   : > { %1144 = vadd.xlane.f32.xlu1 %v1143_v63 }
 0x371   : > { %1172 = vperm.xlu1 %2655, %v1164_v0  }
 0x375   : > { %1183 = vperm.xlu1 %2655, %v1179_v38  }
 0x379   : > { %1188 = vperm.xlu1 %2655, %v1180_v51  }
 0x3ed   : > { %v1145_v2 = vpop.xlane.xlu1 %1144 }
 0x3ee   : > { %v1146_v42 = vrot.slane %v1145_v2, 4 }
 0x3f0   : > { %v1147_v3 = vadd.f32 %v1146_v42, %v1145_v2 }
 0x3f1   : > { %v1173_v14 = vpop.permute.xlu1 %1172 }
 0x3f2   : > { %v1148_v6 = vrot.slane %v1147_v3, 2 }
 0x3f4   : > { %v1149_v53 = vadd.f32 %v1148_v6, %v1147_v3 }
 0x3f5   : > { %v1184_v16 = vpop.permute.xlu1 %1183 }
 0x3f6   : > { %v1150_v7 = vrot.slane %v1149_v53, 1 }
 0x3f8   : > { %v1151_v8 = vadd.f32 %v1150_v7, %v1149_v53 }
 0x3f9   : > { %v1189_v24 = vpop.permute.xlu1 %1188 }
 0x3fa   : > { %2614 = vpush %v1151_v8 }
 0x42b   : > { %s2615_s21 = spop %2614 }
 0x42c   : > { %s1153_s22 = smul.f32 0.00024414063, %s2615_s21  ;;  %s4004_s21 = smov 111  }
 0x42e   : > { %s1154_s23 = sadd.f32 1e-05, %s1153_s22 }
 0x430   : > { %v1155_v9 = vstv %s1154_s23 }
 0x431   : > { %2668 = vrsqrt.f32 %v1155_v9 }
 0x43b   : > { %v2669_v10 = vpop.eup %2668 }
 0x43c   : > { %2616 = vpush %v2669_v10 }
 0x46d   : > { %s2617_s29 = spop %2616 }
 0x46e   : > { %v1158_v44 = vstv %s2617_s29 }
 0x46f   : > { %v1159_v1 = vmul.f32 %v1158_v44, %v1133_v37  ;;  %v1160_v17 = vmul.f32 %v1158_v44, %v1134_v39  ;;  %v1161_v20 = vmul.f32 %v1158_v44, %v1135_v43  ;;  %v1162_v18 = vmul.f32 %v1158_v44, %v1136_v40 }
 0x471   : > { %v1177_v19 = vmul.f32 %v1173_v14, %v1161_v20  ;;  %v1178_v22 = vmul.f32 %v1173_v14, %v1162_v18  ;;  %v1175_v23 = vmul.f32 %v1168_v49, %v1159_v1  ;;  %v1176_v45 = vmul.f32 %v1168_v49, %v1160_v17 }
 0x473   : > { %v3239_v25 = vadd.f32 %v1189_v24, %v1177_v19  ;;  %v3241_v26 = vadd.f32 %v1189_v24, %v1178_v22  ;;  %v3243_v33 = vadd.f32 %v1184_v16, %v1175_v23  ;;  %v3245_v57 = vadd.f32 %v1184_v16, %v1176_v45 }
 0x475   : > { %v3248_v11 = vmul.f32 0.70710677, %v3239_v25  ;;  %v3251_v34 = vmul.f32 0.70710677, %v3241_v26  ;;  %v3254_v35 = vmul.f32 0.70710677, %v3243_v33 }
 0x476   : > { %v3257_v37 = vmul.f32 0.70710677, %v3245_v57 }
 0x477   : > { %v1205_v39 = vand.u32 2147483647, %v3248_v11  ;;  %v1206_v43 = vand.u32 2147483647, %v3251_v34  ;;  %v1203_v40 = vand.u32 2147483647, %v3254_v35 }
 0x478   : > { %v1204_v48 = vand.u32 2147483647, %v3257_v37  ;;  %vm1285_vm10 = vcmp.ge.f32.partialorder %v3248_v11, 0.0  ;;  %vm1283_vm11 = vcmp.ge.f32.partialorder %v3254_v35, 0.0  ;;  %vm1284_vm12 = vcmp.ge.f32.partialorder %v3257_v37, 0.0 }
 0x479   : > { %v1209_v46 = vmul.f32 0.3275911, %v1205_v39  ;;  %v1210_v52 = vmul.f32 0.3275911, %v1206_v43  ;;  %v1207_v54 = vmul.f32 0.3275911, %v1203_v40 }
 0x47a   : > { %v1208_v60 = vmul.f32 0.3275911, %v1204_v48  ;;  %v1261_v38 = vsub.f32 0.0, %v1205_v39  ;;  %v1259_v42 = vsub.f32 0.0, %v1203_v40  ;;  %v1260_v53 = vsub.f32 0.0, %v1204_v48 }
 0x47b   : > { %v1213_v41 = vadd.f32 1.0, %v1209_v46  ;;  %v1214_v63 = vadd.f32 1.0, %v1210_v52  ;;  %v1211_v0 = vadd.f32 1.0, %v1207_v54  ;;  %v1262_v8 = vsub.f32 0.0, %v1206_v43 }
 0x47c   : > { %v1212_v36 = vadd.f32 1.0, %v1208_v60  ;;  %v1265_v2 = vmul.f32 %v1261_v38, %v1205_v39  ;;  %v1263_v44 = vmul.f32 %v1259_v42, %v1203_v40  ;;  %v1264_v20 = vmul.f32 %v1260_v53, %v1204_v48 }
 0x47d   : > { %2670 = vrcp.f32 %v1213_v41  ;;  %v1266_v19 = vmul.f32 %v1262_v8, %v1206_v43  ;;  %v1195_v11 = vmul.f32 0.5, %v3243_v33  ;;  %vm1286_vm13 = vcmp.ge.f32.partialorder %v3251_v34, 0.0 }
 0x47e   : > { %2672 = vrcp.f32 %v1214_v63  ;;  %v1271_v16 = vmul.f32 1.442695, %v1265_v2  ;;  %v1267_v46 = vmul.f32 1.442695, %v1263_v44  ;;  %v1269_v60 = vmul.f32 1.442695, %v1264_v20 }
 0x47f   : > { %2674 = vrcp.f32 %v1211_v0  ;;  %v1273_v63 = vmul.f32 1.442695, %v1266_v19  ;;  %v1198_v37 = vmul.f32 0.5, %v3241_v26  ;;  %v2659_v26 = vld [vmem:[%s3959_s8 + $0x4] ss:$8 sps:$4 sm:$0xff]  }
 0x480   : > { %2676 = vrcp.f32 %v1212_v36  ;;  %2585 = vmatprep.mubr.msk.bf16.mxu0 %vm1072_vm1, %v2659_v26 }
 0x481   : > { %2678 = vpow2.f32 %v1271_v16 }
 0x482   : > { %2680 = vpow2.f32 %v1267_v46 }
 0x483   : > { %2682 = vpow2.f32 %v1269_v60 }
 0x484   : > { %2684 = vpow2.f32 %v1273_v63 }
 0x487   : > { %v2671_v51 = vpop.eup %2670 }
 0x488   : > { %v2673_v3 = vpop.eup %2672  ;;  %v1225_v6 = vmul.f32 1.0614054, %v2671_v51 }
 0x489   : > { %v1226_v7 = vmul.f32 1.0614054, %v2673_v3  ;;  %v2675_v10 = vpop.eup %2674 }
 0x48a   : > { %v1229_v9 = vadd.f32 -1.4531521, %v1225_v6  ;;  %v2677_v49 = vpop.eup %2676  ;;  %v1223_v17 = vmul.f32 1.0614054, %v2675_v10 }
 0x48b   : > { %v1230_v14 = vadd.f32 -1.4531521, %v1226_v7  ;;  %v1224_v22 = vmul.f32 1.0614054, %v2677_v49  ;;  %v2679_v44 = vpop.eup %2678 }
 0x48c   : > { %v1233_v1 = vmul.f32 %v2671_v51, %v1229_v9  ;;  %v1227_v45 = vadd.f32 -1.4531521, %v1223_v17 }
 0x48d   : > { %v1234_v18 = vmul.f32 %v2673_v3, %v1230_v14  ;;  %v1228_v39 = vadd.f32 -1.4531521, %v1224_v22 }
 0x48e   : > { %v1237_v23 = vadd.f32 1.4214138, %v1233_v1  ;;  %v1231_v54 = vmul.f32 %v2675_v10, %v1227_v45  ;;  %v2681_v45 = vpop.eup %2680 }
 0x48f   : > { %v1238_v24 = vadd.f32 1.4214138, %v1234_v18  ;;  %v1232_v0 = vmul.f32 %v2677_v49, %v1228_v39  ;;  %v2683_v39 = vpop.eup %2682 }
 0x490   : > { %v1241_v52 = vmul.f32 %v2671_v51, %v1237_v23  ;;  %v1235_v36 = vadd.f32 1.4214138, %v1231_v54  ;;  %v2685_v54 = vpop.eup %2684 }
 0x491   : > { %v1242_v41 = vmul.f32 %v2673_v3, %v1238_v24  ;;  %v1236_v2 = vadd.f32 1.4214138, %v1232_v0 }
 0x492   : > { %v1245_v40 = vadd.f32 -0.28449672, %v1241_v52  ;;  %v1239_v43 = vmul.f32 %v2675_v10, %v1235_v36 }
 0x493   : > { %v1246_v38 = vadd.f32 -0.28449672, %v1242_v41  ;;  %v1240_v6 = vmul.f32 %v2677_v49, %v1236_v2 }
 0x494   : > { %v1249_v48 = vmul.f32 %v2671_v51, %v1245_v40  ;;  %v1243_v7 = vadd.f32 -0.28449672, %v1239_v43 }
 0x495   : > { %v1250_v42 = vmul.f32 %v2673_v3, %v1246_v38  ;;  %v1244_v8 = vadd.f32 -0.28449672, %v1240_v6  ;;  %v1197_v38 = vmul.f32 0.5, %v3239_v25 }
 0x496   : > { %v1253_v53 = vadd.f32 0.2548296, %v1249_v48  ;;  %v1247_v16 = vmul.f32 %v2675_v10, %v1243_v7  ;;  %v1196_v7 = vmul.f32 0.5, %v3245_v57 }
 0x497   : > { %v1254_v9 = vadd.f32 0.2548296, %v1250_v42  ;;  %v1248_v1 = vmul.f32 %v2677_v49, %v1244_v8 }
 0x498   : > { %v1257_v14 = vmul.f32 %v2671_v51, %v1253_v53  ;;  %v1251_v20 = vadd.f32 0.2548296, %v1247_v16 }
 0x499   : > { %v1252_v18 = vadd.f32 0.2548296, %v1248_v1  ;;  %v1258_v19 = vmul.f32 %v2673_v3, %v1254_v9 }
 0x49a   : > { %v1277_v17 = vmul.f32 %v2679_v44, %v1257_v14  ;;  %v1255_v23 = vmul.f32 %v2675_v10, %v1251_v20 }
 0x49b   : > { %v1256_v24 = vmul.f32 %v2677_v49, %v1252_v18  ;;  %v1278_v41 = vmul.f32 %v2685_v54, %v1258_v19 }
 0x49c   : > { %v1281_v22 = vsub.f32 1.0, %v1277_v17  ;;  %v1275_v52 = vmul.f32 %v2681_v45, %v1255_v23 }
 0x49d   : > { %v1276_v60 = vmul.f32 %v2683_v39, %v1256_v24  ;;  %v1282_v10 = vsub.f32 1.0, %v1278_v41 }
 0x49e   : > { %v1289_v46 = vsub.f32 0.0, %v1281_v22  ;;  %v1279_v63 = vsub.f32 1.0, %v1275_v52 }
 0x49f   : > { %v1280_v40 = vsub.f32 1.0, %v1276_v60  ;;  %v1290_v53 = vsub.f32 0.0, %v1282_v10 }
 0x4a0   : > { %v1293_v51 = vsel %vm1285_vm10, %v1281_v22, %v1289_v46  ;;  %v1287_v36 = vsub.f32 0.0, %v1279_v63 }
 0x4a1   : > { %v1297_v0 = vadd.f32 1.0, %v1293_v51  ;;  %v1288_v3 = vsub.f32 0.0, %v1280_v40  ;;  %v1294_v35 = vsel %vm1286_vm13, %v1282_v10, %v1290_v53 }
 0x4a2   : > { %v1291_v49 = vsel %vm1283_vm11, %v1279_v63, %v1287_v36  ;;  %v1298_v57 = vadd.f32 1.0, %v1294_v35 }
 0x4a3   : > { %v3267_v2 = vmul.f32 %v1297_v0, %v1197_v38  ;;  %v1292_v48 = vsel %vm1284_vm12, %v1280_v40, %v1288_v3  ;;  %v1295_v43 = vadd.f32 1.0, %v1291_v49 }
 0x4a4   : > { %v1296_v42 = vadd.f32 1.0, %v1292_v48  ;;  %v3291_v8 = vmul.f32 %v1298_v57, %v1198_v37 }
 0x4a5   : > { %v3270_v6 = vmul.f32 %v1295_v43, %v1195_v11 }
 0x4a6   : > { %v3280_v33 = vmul.f32 %v1296_v42, %v1196_v7 }
 0x4a7   : > { %1323 = vrot.lane.b32.xlu0 %v3270_v6, %s3984_s2  ;;  %1303 = vrot.lane.b32.xlu1 %v3270_v6, %s3986_s27  ;;  %v1383_v25 = vpack.c.bf16 %v3267_v2, %v3270_v6 }
 0x4ab   : > { %1327 = vrot.lane.b32.xlu0 %v3280_v33, %s3984_s2  ;;  %1305 = vrot.lane.b32.xlu1 %v3267_v2, %s3986_s27 }
 0x4af   : > { %1343 = vrot.lane.b32.xlu0 %v3270_v6, %s3982_s28  ;;  %1307 = vrot.lane.b32.xlu1 %v3280_v33, %s3986_s27 }
 0x4b3   : > { %1347 = vrot.lane.b32.xlu0 %v3280_v33, %s3982_s28  ;;  %1309 = vrot.lane.b32.xlu1 %v3291_v8, %s3986_s27 }
 0x4b7   : > { %1363 = vrot.lane.b32.xlu0 %v3270_v6, %s4000_s20  ;;  %1325 = vrot.lane.b32.xlu1 %v3267_v2, %s3984_s2 }
 0x4bb   : > { %1367 = vrot.lane.b32.xlu0 %v3280_v33, %s4000_s20  ;;  %1329 = vrot.lane.b32.xlu1 %v3291_v8, %s3984_s2  ;;  %s4007_s2 = smov 15  }
 0x4bf   : > { %1387 = vrot.lane.b32.xlu0 %v3270_v6, %s4001_s26  ;;  %1345 = vrot.lane.b32.xlu1 %v3267_v2, %s3982_s28 }
 0x4c3   : > { %1391 = vrot.lane.b32.xlu0 %v3280_v33, %s4001_s26  ;;  %1349 = vrot.lane.b32.xlu1 %v3291_v8, %s3982_s28 }
 0x4c7   : > { %1407 = vrot.lane.b32.xlu0 %v3270_v6, %s4002_s24  ;;  %1365 = vrot.lane.b32.xlu1 %v3267_v2, %s4000_s20 }
 0x4cb   : > { %1411 = vrot.lane.b32.xlu0 %v3280_v33, %s4002_s24  ;;  %1369 = vrot.lane.b32.xlu1 %v3291_v8, %s4000_s20 }
 0x4cf   : > { %1427 = vrot.lane.b32.xlu0 %v3270_v6, %s4003_s3  ;;  %1389 = vrot.lane.b32.xlu1 %v3267_v2, %s4001_s26 }
 0x4d3   : > { %1431 = vrot.lane.b32.xlu0 %v3280_v33, %s4003_s3  ;;  %1393 = vrot.lane.b32.xlu1 %v3291_v8, %s4001_s26 }
 0x4d7   : > { %1447 = vrot.lane.b32.xlu0 %v3270_v6, %s4004_s21  ;;  %1409 = vrot.lane.b32.xlu1 %v3267_v2, %s4002_s24 }
 0x4db   : > { %1451 = vrot.lane.b32.xlu0 %v3280_v33, %s4004_s21  ;;  %1413 = vrot.lane.b32.xlu1 %v3291_v8, %s4002_s24 }
 0x4df   : > { %1429 = vrot.lane.b32.xlu1 %v3267_v2, %s4003_s3 }
 0x4e3   : > { %1433 = vrot.lane.b32.xlu1 %v3291_v8, %s4003_s3 }
 0x4e7   : > { %1449 = vrot.lane.b32.xlu1 %v3267_v2, %s4004_s21 }
 0x4eb   : > { %1453 = vrot.lane.b32.xlu1 %v3291_v8, %s4004_s21 }
 0x519   : > { %v1324_v34 = vpop.permute.xlu0 %1323  ;;  %v1304_v9 = vpop.permute.xlu1 %1303 }
 0x51d   : > { %v1328_v14 = vpop.permute.xlu0 %1327  ;;  %v1306_v16 = vpop.permute.xlu1 %1305 }
 0x51e   : > { %v1331_v51 = vsel %vm823_vm3, %v1324_v34, %v1328_v14  ;;  %v1333_v63 = vsel %vm823_vm3, %v1328_v14, %v1324_v34 }
 0x51f   : > { %v1335_v3 = vmul.f32 %v1333_v63, %v3037_v61  ;;  %v1336_v10 = vmul.f32 %v1331_v51, %v3040_v62 }
 0x521   : > { %v1344_v44 = vpop.permute.xlu0 %1343  ;;  %v1308_v1 = vpop.permute.xlu1 %1307 }
 0x522   : > { %v1311_v17 = vsel %vm791_vm2, %v1304_v9, %v1308_v1  ;;  %v1313_v20 = vsel %vm791_vm2, %v1308_v1, %v1304_v9 }
 0x523   : > { %v1315_v45 = vmul.f32 %v1313_v20, %v3027_v56  ;;  %v1316_v24 = vmul.f32 %v1311_v17, %v3024_v55 }
 0x525   : > { %v1348_v18 = vpop.permute.xlu0 %1347  ;;  %v1310_v19 = vpop.permute.xlu1 %1309 }
 0x526   : > { %v1312_v22 = vsel %vm791_vm2, %v1306_v16, %v1310_v19  ;;  %v1314_v23 = vsel %vm791_vm2, %v1310_v19, %v1306_v16  ;;  %v1351_v7 = vsel %vm855_vm4, %v1344_v44, %v1348_v18  ;;  %v1353_v35 = vsel %vm855_vm4, %v1348_v18, %v1344_v44 }
 0x527   : > { %v1317_v39 = vmul.f32 %v1314_v23, %v3027_v56  ;;  %v1318_v46 = vmul.f32 %v1312_v22, %v3024_v55  ;;  %v1355_v9 = vmul.f32 %v1353_v35, %v3061_v12  ;;  %v1356_v14 = vmul.f32 %v1351_v7, %v3064_v13 }
 0x529   : > { %v1319_v52 = vpack.c.bf16 %v1317_v39, %v1315_v45  ;;  %v1364_v54 = vpop.permute.xlu0 %1363  ;;  %v1326_v60 = vpop.permute.xlu1 %1325  ;;  %v1320_v41 = vpack.c.bf16 %v1318_v46, %v1316_v24 }
 0x52b   : > { %1499 = vmatprep.subr.bf16.mxu0 %v1320_v41 }
 0x52c   : > { %1500 = vmatpush1.bf16.msra.mxu0 %v1319_v52 }
 0x52d   : > { %v1368_v0 = vpop.permute.xlu0 %1367  ;;  %v1330_v40 = vpop.permute.xlu1 %1329 }
 0x52e   : > { %v1332_v36 = vsel %vm823_vm3, %v1326_v60, %v1330_v40  ;;  %v1334_v38 = vsel %vm823_vm3, %v1330_v40, %v1326_v60  ;;  %v1371_v19 = vsel %vm887_vm5, %v1364_v54, %v1368_v0  ;;  %v1373_v22 = vsel %vm887_vm5, %v1368_v0, %v1364_v54 }
 0x52f   : > { %v1337_v49 = vmul.f32 %v1334_v38, %v3037_v61  ;;  %v1338_v11 = vmul.f32 %v1332_v36, %v3040_v62  ;;  %v1375_v39 = vmul.f32 %v1373_v22, %v3083_v30  ;;  %v1376_v46 = vmul.f32 %v1371_v19, %v3086_v31 }
 0x530   : > { %v1384_v0 = vpack.c.bf16 %v3291_v8, %v3280_v33 }
 0x531   : > { %v1339_v48 = vpack.c.bf16 %v1337_v49, %v1335_v3  ;;  %v1388_v43 = vpop.permute.xlu0 %1387  ;;  %v1346_v42 = vpop.permute.xlu1 %1345  ;;  %v1340_v53 = vpack.c.bf16 %v1338_v11, %v1336_v10 }
 0x533   : > { %1501 = vmatprep.subr.bf16.mxu0 %v1340_v53 }
 0x534   : > { %1502 = vmatpush1.bf16.msra.mxu0 %v1339_v48 }
 0x535   : > { %v1392_v57 = vpop.permute.xlu0 %1391  ;;  %v1350_v37 = vpop.permute.xlu1 %1349 }
 0x536   : > { %v1352_v26 = vsel %vm855_vm4, %v1346_v42, %v1350_v37  ;;  %v1354_v34 = vsel %vm855_vm4, %v1350_v37, %v1346_v42  ;;  %v1395_v40 = vsel %vm923_vm6, %v1388_v43, %v1392_v57  ;;  %v1397_v36 = vsel %vm923_vm6, %v1392_v57, %v1388_v43 }
 0x537   : > { %v1357_v16 = vmul.f32 %v1354_v34, %v3061_v12  ;;  %v1358_v1 = vmul.f32 %v1352_v26, %v3064_v13  ;;  %v1399_v49 = vmul.f32 %v1395_v40, %v3121_v4  ;;  %v1400_v11 = vmul.f32 %v1397_v36, %v3124_v5 }
 0x539   : > { %v1359_v17 = vpack.c.bf16 %v1357_v16, %v1355_v9  ;;  %v1366_v20 = vpop.permute.xlu1 %1365  ;;  %v1360_v44 = vpack.c.bf16 %v1358_v1, %v1356_v14  ;;  %v1408_v18 = vpop.permute.xlu0 %1407 }
 0x53b   : > { %1503 = vmatprep.subr.bf16.mxu0 %v1360_v44 }
 0x53c   : > { %1504 = vmatpush1.bf16.msra.mxu0 %v1359_v17 }
 0x53d   : > { %v1370_v23 = vpop.permute.xlu1 %1369  ;;  %v1412_v41 = vpop.permute.xlu0 %1411 }
 0x53e   : > { %v1372_v45 = vsel %vm887_vm5, %v1366_v20, %v1370_v23  ;;  %v1374_v24 = vsel %vm887_vm5, %v1370_v23, %v1366_v20  ;;  %v1415_v7 = vsel %vm955_vm7, %v1408_v18, %v1412_v41  ;;  %v1417_v35 = vsel %vm955_vm7, %v1412_v41, %v1408_v18 }
 0x53f   : > { %v1377_v52 = vmul.f32 %v1374_v24, %v3083_v30  ;;  %v1378_v60 = vmul.f32 %v1372_v45, %v3086_v31  ;;  %v1419_v6 = vmul.f32 %v1415_v7, %v3143_v21 }
 0x541   : > { %v1379_v51 = vpack.c.bf16 %v1377_v52, %v1375_v39  ;;  %v1390_v63 = vpop.permute.xlu1 %1389  ;;  %v1380_v54 = vpack.c.bf16 %v1378_v60, %v1376_v46  ;;  %v1428_v33 = vpop.permute.xlu0 %1427 }
 0x543   : > { %1505 = vmatprep.subr.bf16.mxu0 %v1380_v54 }
 0x544   : > { %1506 = vmatpush1.bf16.msra.mxu0 %v1379_v51 }
 0x545   : > { %1507 = vmatprep.subr.bf16.mxu0 %v1384_v0  ;;  %v1394_v38 = vpop.permute.xlu1 %1393  ;;  %v1432_v57 = vpop.permute.xlu0 %1431 }
 0x546   : > { %v1396_v3 = vsel %vm923_vm6, %v1390_v63, %v1394_v38  ;;  %v1398_v10 = vsel %vm923_vm6, %v1394_v38, %v1390_v63  ;;  %v1435_v20 = vsel %vm987_vm8, %v1428_v33, %v1432_v57  ;;  %v1437_v44 = vsel %vm987_vm8, %v1432_v57, %v1428_v33  ;;  %v2661_v33 = vld [vmem:[%s3959_s8] ss:$8 sps:$4 sm:$0xff]  }
 0x547   : > { %v1401_v8 = vmul.f32 %v1396_v3, %v3121_v4  ;;  %v1402_v48 = vmul.f32 %v1398_v10, %v3124_v5  ;;  %v1439_v23 = vmul.f32 %v1435_v20, %v3171_v27  ;;  %v1440_v45 = vmul.f32 %v1437_v44, %v3174_v32  ;;  %v1586_v57 = vld [vmem:[%s3960_s9] sm:$0xff] }
 0x548   : > { %1508 = vmatpush1.bf16.msra.mxu0 %v1383_v25  ;;  %v1420_v25 = vmul.f32 %v1417_v35, %v3146_v15 }
 0x549   : > { %v1403_v43 = vpack.c.bf16 %v1401_v8, %v1399_v49  ;;  %v1410_v42 = vpop.permute.xlu1 %1409  ;;  %v1404_v53 = vpack.c.bf16 %v1402_v48, %v1400_v11  ;;  %v1448_v17 = vpop.permute.xlu0 %1447 }
 0x54b   : > { %1509 = vmatprep.subr.bf16.mxu0 %v1404_v53 }
 0x54c   : > { %1510 = vmatpush1.bf16.msra.mxu0 %v1403_v43 }
 0x54d   : > { %v1414_v37 = vpop.permute.xlu1 %1413  ;;  %v1452_v46 = vpop.permute.xlu0 %1451 }
 0x54e   : > { %v1416_v26 = vsel %vm955_vm7, %v1410_v42, %v1414_v37  ;;  %v1418_v2 = vsel %vm955_vm7, %v1414_v37, %v1410_v42  ;;  %v1455_v51 = vsel %vm1019_vm9, %v1448_v17, %v1452_v46  ;;  %v1457_v63 = vsel %vm1019_vm9, %v1452_v46, %v1448_v17  ;;  %v1602_v37 = vld [vmem:[%s3961_s10] sm:$0xff]  ;;  %v1587_v46 = vld [vmem:[%s3960_s9 + $0x8] sm:$0xff] }
 0x54f   : > { %v1421_v34 = vmul.f32 %v1416_v26, %v3143_v21  ;;  %v1422_v9 = vmul.f32 %v1418_v2, %v3146_v15  ;;  %v1459_v36 = vmul.f32 %v1455_v51, %v3195_v58  ;;  %v1460_v38 = vmul.f32 %v1457_v63, %v3198_v59 }
 0x551   : > { %v1423_v14 = vpack.c.bf16 %v1421_v34, %v1419_v6  ;;  %v1430_v16 = vpop.permute.xlu1 %1429  ;;  %v1424_v1 = vpack.c.bf16 %v1422_v9, %v1420_v25 }
 0x553   : > { %1511 = vmatprep.subr.bf16.mxu0 %v1424_v1 }
 0x554   : > { %1512 = vmatpush1.bf16.msra.mxu0 %v1423_v14 }
 0x555   : > { %v1434_v18 = vpop.permute.xlu1 %1433 }
 0x556   : > { %v1436_v19 = vsel %vm987_vm8, %v1430_v16, %v1434_v18  ;;  %v1438_v22 = vsel %vm987_vm8, %v1434_v18, %v1430_v16 }
 0x557   : > { %v1441_v24 = vmul.f32 %v1436_v19, %v3171_v27  ;;  %v1442_v39 = vmul.f32 %v1438_v22, %v3174_v32 }
 0x559   : > { %v1443_v52 = vpack.c.bf16 %v1441_v24, %v1439_v23  ;;  %v1450_v60 = vpop.permute.xlu1 %1449  ;;  %v1444_v41 = vpack.c.bf16 %v1442_v39, %v1440_v45 }
 0x55b   : > { %1513 = vmatprep.subr.bf16.mxu0 %v1444_v41 }
 0x55c   : > { %1514 = vmatpush1.bf16.msra.mxu0 %v1443_v52  ;;  %v1603_v52 = vld [vmem:[%s3961_s10 + $0x8] sm:$0xff] }
 0x55d   : > { %v1454_v54 = vpop.permute.xlu1 %1453 }
 0x55e   : > { %v1456_v0 = vsel %vm1019_vm9, %v1450_v60, %v1454_v54  ;;  %v1458_v40 = vsel %vm1019_vm9, %v1454_v54, %v1450_v60 }
 0x55f   : > { %v1461_v3 = vmul.f32 %v1456_v0, %v3195_v58  ;;  %v1462_v10 = vmul.f32 %v1458_v40, %v3198_v59 }
 0x561   : > { %v1463_v49 = vpack.c.bf16 %v1461_v3, %v1459_v36  ;;  %v1464_v11 = vpack.c.bf16 %v1462_v10, %v1460_v38 }
 0x563   : > { %1515 = vmatprep.subr.bf16.mxu0 %v1464_v11 }
 0x564   : > { %1516 = vmatpush1.bf16.msra.mxu0 %v1463_v49 }
 0x567   : > { %1532 = vmatmul.mubr.bf16.vlgmr.msra.gmra.mrb[4].mxu0 %v2661_v33 }
 0x63a   : > { %v1533_v8 = vpop.f32.mrb[4].mxu0 }
 0x63b   : > { %v1535_v48 = vpop.f32.mrb[5].mxu0 }
 0x63c   : > { %v1542_v43 = vadd.f32 %v1535_v48, %v1533_v8  ;;  %v1537_v42 = vpop.f32.mrb[6].mxu0 }
 0x63d   : > { %v1539_v53 = vpop.f32.mrb[7].mxu0 }
 0x63e   : > { %v1543_v7 = vadd.f32 %v1542_v43, %v1537_v42 }
 0x640   : > { %v1544_v35 = vadd.f32 %v1543_v7, %v1539_v53 }
 0x642   : > { %1545 = vadd.xlane.f32.xlu0 %v1544_v35 }
 0x658   : > { %1590 = vperm.xlu0 %2654, %v1586_v57  }
 0x65c   : > { %1606 = vperm.xlu0 %2654, %v1602_v37  }
 0x6cf   : > { %v1546_v26 = vpop.xlane.xlu0 %1545 }
 0x6d0   : > { %v1547_v2 = vrot.slane %v1546_v26, 4 }
 0x6d2   : > { %v1548_v6 = vadd.f32 %v1547_v2, %v1546_v26 }
 0x6d4   : > { %v1549_v25 = vrot.slane %v1548_v6, 2 }
 0x6d6   : > { %v1550_v34 = vadd.f32 %v1549_v25, %v1548_v6  ;;  %v2728_v25 = vld [vmem:[%s2901_s25] sm:$0xff] }
 0x6d7   : > { %v1591_v3 = vpop.permute.xlu0 %1590 }
 0x6d8   : > { %v1551_v9 = vrot.slane %v1550_v34, 1 }
 0x6da   : > { %v1552_v14 = vadd.f32 %v1551_v9, %v1550_v34  ;;  %v2729_v9 = vld [vmem:[%s2901_s25 + $0x8] sm:$0xff]  ;;  %s4006_s25 = smov 16  }
 0x6db   : > { %v1607_v35 = vpop.permute.xlu0 %1606 }
 0x6dc   : > { %2618 = vpush %v1552_v14 }
 0x70d   : > { %s2619_s29 = spop %2618 }
 0x70e   : > { %s1554_s22 = smul.f32 0.00024414063, %s2619_s29 }
 0x710   : > { %v1555_v16 = vstv %s1554_s22 }
 0x711   : > { %v1556_v1 = vsub.f32 %v1533_v8, %v1555_v16  ;;  %v1557_v17 = vsub.f32 %v1535_v48, %v1555_v16  ;;  %v1558_v20 = vsub.f32 %v1537_v42, %v1555_v16  ;;  %v1559_v44 = vsub.f32 %v1539_v53, %v1555_v16 }
 0x713   : > { %v1560_v18 = vmul.f32 %v1556_v1, %v1556_v1  ;;  %v1561_v19 = vmul.f32 %v1557_v17, %v1557_v17  ;;  %v1562_v22 = vmul.f32 %v1558_v20, %v1558_v20  ;;  %v1563_v45 = vmul.f32 %v1559_v44, %v1559_v44 }
 0x715   : > { %v1564_v23 = vadd.f32 %v1561_v19, %v1560_v18 }
 0x717   : > { %v1565_v24 = vadd.f32 %v1564_v23, %v1562_v22 }
 0x719   : > { %v1566_v39 = vadd.f32 %v1565_v24, %v1563_v45 }
 0x71b   : > { %1567 = vadd.xlane.f32.xlu1 %v1566_v39 }
 0x72c   : > { %1595 = vperm.xlu1 %2655, %v1587_v46  }
 0x730   : > { %1611 = vperm.xlu1 %2655, %v1603_v52  }
 0x7a8   : > { %v1568_v60 = vpop.xlane.xlu1 %1567 }
 0x7a9   : > { %v1569_v41 = vrot.slane %v1568_v60, 4 }
 0x7ab   : > { %v1570_v51 = vadd.f32 %v1569_v41, %v1568_v60 }
 0x7ac   : > { %v1596_v10 = vpop.permute.xlu1 %1595 }
 0x7ad   : > { %v1571_v63 = vrot.slane %v1570_v51, 2 }
 0x7af   : > { %v1572_v54 = vadd.f32 %v1571_v63, %v1570_v51 }
 0x7b0   : > { %v1612_v57 = vpop.permute.xlu1 %1611 }
 0x7b1   : > { %v1573_v0 = vrot.slane %v1572_v54, 1 }
 0x7b3   : > { %v1574_v40 = vadd.f32 %v1573_v0, %v1572_v54 }
 0x7b5   : > { %2620 = vpush %v1574_v40 }
 0x7e6   : > { %s2621_s29 = spop %2620 }
 0x7e7   : > { %s1576_s22 = smul.f32 0.00024414063, %s2621_s29 }
 0x7e9   : > { %s1577_s1 = sadd.f32 1e-05, %s1576_s22 }
 0x7eb   : > { %v1578_v36 = vstv %s1577_s1  ;;  %s4005_s1 = smov 17  }
 0x7ec   : > { %2686 = vrsqrt.f32 %v1578_v36 }
 0x7f6   : > { %v2687_v38 = vpop.eup %2686 }
 0x7f7   : > { %2622 = vpush %v2687_v38 }
 0x828   : > { %s2623_s27 = spop %2622 }
 0x829   : > { %v1581_v49 = vstv %s2623_s27 }
 0x82a   : > { %v1582_v11 = vmul.f32 %v1581_v49, %v1556_v1  ;;  %v1583_v33 = vmul.f32 %v1581_v49, %v1557_v17  ;;  %v1584_v8 = vmul.f32 %v1581_v49, %v1558_v20  ;;  %v1585_v48 = vmul.f32 %v1581_v49, %v1559_v44 }
 0x82c   : > { %v1598_v43 = vmul.f32 %v1591_v3, %v1582_v11  ;;  %v1599_v42 = vmul.f32 %v1591_v3, %v1583_v33  ;;  %v1600_v53 = vmul.f32 %v1596_v10, %v1584_v8  ;;  %v1601_v7 = vmul.f32 %v1596_v10, %v1585_v48 }
 0x82e   : > { %v1614_v37 = vadd.f32 %v1607_v35, %v1598_v43  ;;  %v1615_v26 = vadd.f32 %v1607_v35, %v1599_v42  ;;  %v1616_v2 = vadd.f32 %v1612_v57, %v1600_v53  ;;  %v1617_v6 = vadd.f32 %v1612_v57, %v1601_v7 }
 0x830   : > { %v3466_v34 = vadd.f32 %v2728_v25, %v1614_v37  ;;  %v3469_v14 = vadd.f32 %v2729_v9, %v1615_v26  ;;  %v3472_v16 = vadd.f32 %v1616_v2, %v2938_v28  ;;  %v3475_v1 = vadd.f32 %v1617_v6, %v2944_v29 }
 0x832   : > { %v3478_v17 = vmul.f32 0.70710677, %v3466_v34  ;;  %v3481_v20 = vmul.f32 0.70710677, %v3469_v14  ;;  %v3484_v44 = vmul.f32 0.70710677, %v3472_v16 }
 0x833   : > { %v3487_v18 = vmul.f32 0.70710677, %v3475_v1 }
 0x834   : > { %v1630_v19 = vand.u32 2147483647, %v3478_v17  ;;  %v1631_v28 = vand.u32 2147483647, %v3481_v20  ;;  %v1632_v22 = vand.u32 2147483647, %v3484_v44 }
 0x835   : > { %v1633_v29 = vand.u32 2147483647, %v3487_v18  ;;  %vm1710_vm14 = vcmp.ge.f32.partialorder %v3478_v17, 0.0  ;;  %vm1711_vm15 = vcmp.ge.f32.partialorder %v3481_v20, 0.0  ;;  %vm1712_vm0 = vcmp.ge.f32.partialorder %v3484_v44, 0.0 }
 0x836   : > { %v1634_v23 = vmul.f32 0.3275911, %v1630_v19  ;;  %v1635_v45 = vmul.f32 0.3275911, %v1631_v28  ;;  %v1636_v24 = vmul.f32 0.3275911, %v1632_v22 }
 0x837   : > { %v1637_v39 = vmul.f32 0.3275911, %v1633_v29  ;;  %v1686_v51 = vsub.f32 0.0, %v1630_v19  ;;  %v1687_v63 = vsub.f32 0.0, %v1631_v28  ;;  %v1688_v54 = vsub.f32 0.0, %v1632_v22 }
 0x838   : > { %v1638_v46 = vadd.f32 1.0, %v1634_v23  ;;  %v1639_v52 = vadd.f32 1.0, %v1635_v45  ;;  %v1640_v60 = vadd.f32 1.0, %v1636_v24  ;;  %v1689_v0 = vsub.f32 0.0, %v1633_v29 }
 0x839   : > { %v1641_v41 = vadd.f32 1.0, %v1637_v39  ;;  %v1690_v36 = vmul.f32 %v1686_v51, %v1630_v19  ;;  %v1691_v10 = vmul.f32 %v1687_v63, %v1631_v28  ;;  %v1692_v33 = vmul.f32 %v1688_v54, %v1632_v22 }
 0x83a   : > { %2688 = vrcp.f32 %v1638_v46  ;;  %v1693_v42 = vmul.f32 %v1689_v0, %v1633_v29  ;;  %vm1713_vm10 = vcmp.ge.f32.partialorder %v3487_v18, 0.0  ;;  %v1624_v17 = vmul.f32 0.5, %v3472_v16 }
 0x83b   : > { %2690 = vrcp.f32 %v1639_v52  ;;  %v1694_v35 = vmul.f32 1.442695, %v1690_v36  ;;  %v1696_v26 = vmul.f32 1.442695, %v1691_v10  ;;  %v1698_v25 = vmul.f32 1.442695, %v1692_v33 }
 0x83c   : > { %2692 = vrcp.f32 %v1640_v60  ;;  %v1700_v23 = vmul.f32 1.442695, %v1693_v42  ;;  %v1625_v20 = vmul.f32 0.5, %v3475_v1  ;;  %v2662_v1 = vld [vmem:[%s3962_s11 + $0x4] ss:$8 sps:$4 sm:$0xff]  }
 0x83d   : > { %2694 = vrcp.f32 %v1641_v41  ;;  %2588 = vmatprep.mubr.msk.bf16.mxu1 %vm1072_vm1, %v2662_v1 }
 0x83e   : > { %2696 = vpow2.f32 %v1694_v35 }
 0x83f   : > { %2698 = vpow2.f32 %v1696_v26 }
 0x840   : > { %2700 = vpow2.f32 %v1698_v25 }
 0x841   : > { %2702 = vpow2.f32 %v1700_v23 }
 0x844   : > { %v2689_v40 = vpop.eup %2688 }
 0x845   : > { %v2691_v38 = vpop.eup %2690  ;;  %v1650_v3 = vmul.f32 1.0614054, %v2689_v40 }
 0x846   : > { %v2693_v49 = vpop.eup %2692  ;;  %v1651_v11 = vmul.f32 1.0614054, %v2691_v38 }
 0x847   : > { %v2695_v8 = vpop.eup %2694  ;;  %v1652_v48 = vmul.f32 1.0614054, %v2693_v49  ;;  %v1654_v43 = vadd.f32 -1.4531521, %v1650_v3 }
 0x848   : > { %v1653_v53 = vmul.f32 1.0614054, %v2695_v8  ;;  %v1655_v7 = vadd.f32 -1.4531521, %v1651_v11 }
 0x849   : > { %v1656_v57 = vadd.f32 -1.4531521, %v1652_v48  ;;  %v1658_v37 = vmul.f32 %v2689_v40, %v1654_v43  ;;  %v2697_v43 = vpop.eup %2696 }
 0x84a   : > { %v1657_v2 = vadd.f32 -1.4531521, %v1653_v53  ;;  %v1659_v6 = vmul.f32 %v2691_v38, %v1655_v7  ;;  %v2699_v7 = vpop.eup %2698 }
 0x84b   : > { %v1660_v9 = vmul.f32 %v2693_v49, %v1656_v57  ;;  %v1662_v19 = vadd.f32 1.4214138, %v1658_v37  ;;  %v2701_v37 = vpop.eup %2700 }
 0x84c   : > { %v1661_v28 = vmul.f32 %v2695_v8, %v1657_v2  ;;  %v1663_v45 = vadd.f32 1.4214138, %v1659_v6  ;;  %v2703_v6 = vpop.eup %2702 }
 0x84d   : > { %v1664_v22 = vadd.f32 1.4214138, %v1660_v9  ;;  %v1666_v24 = vmul.f32 %v2689_v40, %v1662_v19 }
 0x84e   : > { %v1665_v39 = vadd.f32 1.4214138, %v1661_v28  ;;  %v1667_v29 = vmul.f32 %v2691_v38, %v1663_v45 }
 0x84f   : > { %v1668_v46 = vmul.f32 %v2693_v49, %v1664_v22  ;;  %v1670_v52 = vadd.f32 -0.28449672, %v1666_v24  ;;  %v1622_v24 = vmul.f32 0.5, %v3466_v34 }
 0x850   : > { %v1669_v60 = vmul.f32 %v2695_v8, %v1665_v39  ;;  %v1671_v41 = vadd.f32 -0.28449672, %v1667_v29 }
 0x851   : > { %v1672_v51 = vadd.f32 -0.28449672, %v1668_v46  ;;  %v1674_v63 = vmul.f32 %v2689_v40, %v1670_v52  ;;  %v1623_v46 = vmul.f32 0.5, %v3469_v14 }
 0x852   : > { %v1673_v54 = vadd.f32 -0.28449672, %v1669_v60  ;;  %v1675_v0 = vmul.f32 %v2691_v38, %v1671_v41 }
 0x853   : > { %v1676_v36 = vmul.f32 %v2693_v49, %v1672_v51  ;;  %v1678_v3 = vadd.f32 0.2548296, %v1674_v63 }
 0x854   : > { %v1677_v10 = vmul.f32 %v2695_v8, %v1673_v54  ;;  %v1679_v11 = vadd.f32 0.2548296, %v1675_v0 }
 0x855   : > { %v1680_v33 = vadd.f32 0.2548296, %v1676_v36  ;;  %v1682_v48 = vmul.f32 %v2689_v40, %v1678_v3 }
 0x856   : > { %v1681_v42 = vadd.f32 0.2548296, %v1677_v10  ;;  %v1683_v53 = vmul.f32 %v2691_v38, %v1679_v11 }
 0x857   : > { %v1684_v35 = vmul.f32 %v2693_v49, %v1680_v33  ;;  %v1702_v57 = vmul.f32 %v2697_v43, %v1682_v48 }
 0x858   : > { %v1685_v26 = vmul.f32 %v2695_v8, %v1681_v42  ;;  %v1703_v2 = vmul.f32 %v2699_v7, %v1683_v53 }
 0x859   : > { %v1704_v25 = vmul.f32 %v2701_v37, %v1684_v35  ;;  %v1706_v9 = vsub.f32 1.0, %v1702_v57 }
 0x85a   : > { %v1705_v19 = vmul.f32 %v2703_v6, %v1685_v26  ;;  %v1707_v23 = vsub.f32 1.0, %v1703_v2 }
 0x85b   : > { %v1708_v28 = vsub.f32 1.0, %v1704_v25  ;;  %v1714_v45 = vsub.f32 0.0, %v1706_v9 }
 0x85c   : > { %v1709_v22 = vsub.f32 1.0, %v1705_v19  ;;  %v1715_v40 = vsub.f32 0.0, %v1707_v23 }
 0x85d   : > { %v1716_v38 = vsub.f32 0.0, %v1708_v28  ;;  %v1718_v49 = vsel %vm1710_vm14, %v1706_v9, %v1714_v45 }
 0x85e   : > { %v1717_v8 = vsub.f32 0.0, %v1709_v22  ;;  %v1719_v39 = vsel %vm1711_vm15, %v1707_v23, %v1715_v40  ;;  %v1722_v29 = vadd.f32 1.0, %v1718_v49 }
 0x85f   : > { %v1720_v52 = vsel %vm1712_vm0, %v1708_v28, %v1716_v38  ;;  %v1723_v60 = vadd.f32 1.0, %v1719_v39 }
 0x860   : > { %v1721_v41 = vsel %vm1713_vm10, %v1709_v22, %v1717_v8  ;;  %v1724_v51 = vadd.f32 1.0, %v1720_v52  ;;  %v3500_v34 = vmul.f32 %v1722_v29, %v1622_v24 }
 0x861   : > { %v1725_v63 = vadd.f32 1.0, %v1721_v41  ;;  %v3503_v54 = vmul.f32 %v1723_v60, %v1623_v46 }
 0x862   : > { %v3505_v44 = vmul.f32 %v1724_v51, %v1624_v17  ;;  %1730 = vrot.lane.b32.xlu0 %v3500_v34, %s4005_s1 }
 0x863   : > { %v3509_v14 = vmul.f32 %v1725_v63, %v1625_v20 }
 0x864   : > { %1732 = vrot.lane.b32.xlu1 %v3505_v44, %s4005_s1  ;;  %v1810_v16 = vpack.c.bf16 %v3505_v44, %v3500_v34 }
 0x865   : > { %v1811_v18 = vpack.c.bf16 %v3509_v14, %v3503_v54 }
 0x866   : > { %1734 = vrot.lane.b32.xlu0 %v3503_v54, %s4005_s1 }
 0x868   : > { %1736 = vrot.lane.b32.xlu1 %v3509_v14, %s4005_s1 }
 0x86a   : > { %1750 = vrot.lane.b32.xlu0 %v3500_v34, %s4006_s25 }
 0x86c   : > { %1752 = vrot.lane.b32.xlu1 %v3505_v44, %s4006_s25 }
 0x86e   : > { %1754 = vrot.lane.b32.xlu0 %v3503_v54, %s4006_s25 }
 0x870   : > { %1756 = vrot.lane.b32.xlu1 %v3509_v14, %s4006_s25 }
 0x872   : > { %1770 = vrot.lane.b32.xlu0 %v3500_v34, %s4007_s2 }
 0x874   : > { %1772 = vrot.lane.b32.xlu1 %v3505_v44, %s4007_s2 }
 0x876   : > { %1774 = vrot.lane.b32.xlu0 %v3503_v54, %s4007_s2 }
 0x878   : > { %1776 = vrot.lane.b32.xlu1 %v3509_v14, %s4007_s2 }
 0x87a   : > { %1790 = vrot.lane.b32.xlu0 %v3500_v34, %s4000_s20 }
 0x87c   : > { %1792 = vrot.lane.b32.xlu1 %v3505_v44, %s4000_s20 }
 0x87e   : > { %1794 = vrot.lane.b32.xlu0 %v3503_v54, %s4000_s20 }
 0x880   : > { %1796 = vrot.lane.b32.xlu1 %v3509_v14, %s4000_s20 }
 0x882   : > { %1814 = vrot.lane.b32.xlu0 %v3500_v34, %s4001_s26 }
 0x884   : > { %1816 = vrot.lane.b32.xlu1 %v3505_v44, %s4001_s26 }
 0x886   : > { %1818 = vrot.lane.b32.xlu0 %v3503_v54, %s4001_s26 }
 0x888   : > { %1820 = vrot.lane.b32.xlu1 %v3509_v14, %s4001_s26 }
 0x88a   : > { %1834 = vrot.lane.b32.xlu0 %v3500_v34, %s4002_s24 }
 0x88c   : > { %1836 = vrot.lane.b32.xlu1 %v3505_v44, %s4002_s24 }
 0x88e   : > { %1838 = vrot.lane.b32.xlu0 %v3503_v54, %s4002_s24 }
 0x890   : > { %1840 = vrot.lane.b32.xlu1 %v3509_v14, %s4002_s24 }
 0x892   : > { %1854 = vrot.lane.b32.xlu0 %v3500_v34, %s4003_s3 }
 0x894   : > { %1856 = vrot.lane.b32.xlu1 %v3505_v44, %s4003_s3 }
 0x896   : > { %1858 = vrot.lane.b32.xlu0 %v3503_v54, %s4003_s3 }
 0x898   : > { %1860 = vrot.lane.b32.xlu1 %v3509_v14, %s4003_s3 }
 0x89a   : > { %1874 = vrot.lane.b32.xlu0 %v3500_v34, %s4004_s21 }
 0x89c   : > { %1876 = vrot.lane.b32.xlu1 %v3505_v44, %s4004_s21 }
 0x89e   : > { %1878 = vrot.lane.b32.xlu0 %v3503_v54, %s4004_s21 }
 0x8a0   : > { %1880 = vrot.lane.b32.xlu1 %v3509_v14, %s4004_s21 }
 0x8d4   : > { %v1731_v0 = vpop.permute.xlu0 %1730 }
 0x8d6   : > { %v1733_v36 = vpop.permute.xlu1 %1732 }
 0x8d8   : > { %v1735_v3 = vpop.permute.xlu0 %1734 }
 0x8d9   : > { %v1738_v10 = vsel %vm791_vm2, %v1731_v0, %v1735_v3  ;;  %v1740_v11 = vsel %vm791_vm2, %v1735_v3, %v1731_v0 }
 0x8da   : > { %v1737_v33 = vpop.permute.xlu1 %1736  ;;  %v1742_v48 = vmul.f32 %v1740_v11, %v3027_v56  ;;  %v1743_v43 = vmul.f32 %v1738_v10, %v3024_v55 }
 0x8db   : > { %v1739_v42 = vsel %vm791_vm2, %v1733_v36, %v1737_v33  ;;  %v1741_v53 = vsel %vm791_vm2, %v1737_v33, %v1733_v36 }
 0x8dc   : > { %v1744_v7 = vmul.f32 %v1741_v53, %v3027_v56  ;;  %v1745_v35 = vmul.f32 %v1739_v42, %v3024_v55  ;;  %v1751_v57 = vpop.permute.xlu0 %1750 }
 0x8de   : > { %v1746_v37 = vpack.c.bf16 %v1744_v7, %v1742_v48  ;;  %v1753_v26 = vpop.permute.xlu1 %1752  ;;  %v1747_v2 = vpack.c.bf16 %v1745_v35, %v1743_v43 }
 0x8e0   : > { %1926 = vmatprep.subr.bf16.mxu1 %v1747_v2  ;;  %v1755_v6 = vpop.permute.xlu0 %1754 }
 0x8e1   : > { %1927 = vmatpush1.bf16.msra.mxu1 %v1746_v37  ;;  %v1758_v25 = vsel %vm823_vm3, %v1751_v57, %v1755_v6  ;;  %v1760_v9 = vsel %vm823_vm3, %v1755_v6, %v1751_v57 }
 0x8e2   : > { %v1757_v19 = vpop.permute.xlu1 %1756  ;;  %v1762_v23 = vmul.f32 %v1760_v9, %v3037_v61  ;;  %v1763_v28 = vmul.f32 %v1758_v25, %v3040_v62 }
 0x8e3   : > { %v1759_v45 = vsel %vm823_vm3, %v1753_v26, %v1757_v19  ;;  %v1761_v22 = vsel %vm823_vm3, %v1757_v19, %v1753_v26 }
 0x8e4   : > { %v1764_v40 = vmul.f32 %v1761_v22, %v3037_v61  ;;  %v1765_v24 = vmul.f32 %v1759_v45, %v3040_v62  ;;  %v1771_v38 = vpop.permute.xlu0 %1770 }
 0x8e6   : > { %v1766_v49 = vpack.c.bf16 %v1764_v40, %v1762_v23  ;;  %v1773_v8 = vpop.permute.xlu1 %1772  ;;  %v1767_v39 = vpack.c.bf16 %v1765_v24, %v1763_v28 }
 0x8e8   : > { %1928 = vmatprep.subr.bf16.mxu1 %v1767_v39  ;;  %v1775_v29 = vpop.permute.xlu0 %1774 }
 0x8e9   : > { %1929 = vmatpush1.bf16.msra.mxu1 %v1766_v49  ;;  %v1778_v46 = vsel %vm855_vm4, %v1771_v38, %v1775_v29  ;;  %v1780_v52 = vsel %vm855_vm4, %v1775_v29, %v1771_v38 }
 0x8ea   : > { %v1777_v60 = vpop.permute.xlu1 %1776  ;;  %v1782_v17 = vmul.f32 %v1780_v52, %v3061_v12  ;;  %v1783_v41 = vmul.f32 %v1778_v46, %v3064_v13 }
 0x8eb   : > { %v1779_v51 = vsel %vm855_vm4, %v1773_v8, %v1777_v60  ;;  %v1781_v20 = vsel %vm855_vm4, %v1777_v60, %v1773_v8 }
 0x8ec   : > { %v1784_v63 = vmul.f32 %v1781_v20, %v3061_v12  ;;  %v1785_v1 = vmul.f32 %v1779_v51, %v3064_v13  ;;  %v1791_v0 = vpop.permute.xlu0 %1790 }
 0x8ee   : > { %v1786_v36 = vpack.c.bf16 %v1784_v63, %v1782_v17  ;;  %v1793_v3 = vpop.permute.xlu1 %1792  ;;  %v1787_v10 = vpack.c.bf16 %v1785_v1, %v1783_v41 }
 0x8f0   : > { %1930 = vmatprep.subr.bf16.mxu1 %v1787_v10  ;;  %v1795_v11 = vpop.permute.xlu0 %1794 }
 0x8f1   : > { %1931 = vmatpush1.bf16.msra.mxu1 %v1786_v36  ;;  %v1798_v33 = vsel %vm887_vm5, %v1791_v0, %v1795_v11  ;;  %v1800_v48 = vsel %vm887_vm5, %v1795_v11, %v1791_v0 }
 0x8f2   : > { %v1797_v43 = vpop.permute.xlu1 %1796  ;;  %v1802_v42 = vmul.f32 %v1800_v48, %v3083_v30  ;;  %v1803_v53 = vmul.f32 %v1798_v33, %v3086_v31 }
 0x8f3   : > { %v1799_v7 = vsel %vm887_vm5, %v1793_v3, %v1797_v43  ;;  %v1801_v35 = vsel %vm887_vm5, %v1797_v43, %v1793_v3 }
 0x8f4   : > { %v1804_v57 = vmul.f32 %v1801_v35, %v3083_v30  ;;  %v1805_v37 = vmul.f32 %v1799_v7, %v3086_v31  ;;  %v1815_v26 = vpop.permute.xlu0 %1814 }
 0x8f6   : > { %v1806_v2 = vpack.c.bf16 %v1804_v57, %v1802_v42  ;;  %v1817_v6 = vpop.permute.xlu1 %1816  ;;  %v1807_v25 = vpack.c.bf16 %v1805_v37, %v1803_v53 }
 0x8f8   : > { %1932 = vmatprep.subr.bf16.mxu1 %v1807_v25  ;;  %v1819_v9 = vpop.permute.xlu0 %1818 }
 0x8f9   : > { %1933 = vmatpush1.bf16.msra.mxu1 %v1806_v2  ;;  %v1822_v19 = vsel %vm923_vm6, %v1815_v26, %v1819_v9  ;;  %v1824_v23 = vsel %vm923_vm6, %v1819_v9, %v1815_v26 }
 0x8fa   : > { %v1821_v28 = vpop.permute.xlu1 %1820  ;;  %1934 = vmatprep.subr.bf16.mxu1 %v1811_v18  ;;  %v1826_v45 = vmul.f32 %v1822_v19, %v3121_v4  ;;  %v1827_v22 = vmul.f32 %v1824_v23, %v3124_v5 }
 0x8fb   : > { %v1823_v40 = vsel %vm923_vm6, %v1817_v6, %v1821_v28  ;;  %v1825_v24 = vsel %vm923_vm6, %v1821_v28, %v1817_v6 }
 0x8fc   : > { %v1828_v38 = vmul.f32 %v1823_v40, %v3121_v4  ;;  %v1829_v49 = vmul.f32 %v1825_v24, %v3124_v5  ;;  %v1835_v8 = vpop.permute.xlu0 %1834 }
 0x8fd   : > { %1935 = vmatpush1.bf16.msra.mxu1 %v1810_v16 }
 0x8fe   : > { %v1830_v54 = vpack.c.bf16 %v1828_v38, %v1826_v45  ;;  %v1837_v14 = vpop.permute.xlu1 %1836  ;;  %v1831_v18 = vpack.c.bf16 %v1829_v49, %v1827_v22  ;;  %v2664_v38 = vld [vmem:[%s3962_s11] ss:$8 sps:$4 sm:$0xff]  }
 0x900   : > { %1936 = vmatprep.subr.bf16.mxu1 %v1831_v18  ;;  %v1839_v39 = vpop.permute.xlu0 %1838 }
 0x901   : > { %1937 = vmatpush1.bf16.msra.mxu1 %v1830_v54  ;;  %v1842_v29 = vsel %vm955_vm7, %v1835_v8, %v1839_v39  ;;  %v1844_v46 = vsel %vm955_vm7, %v1839_v39, %v1835_v8 }
 0x902   : > { %v1841_v52 = vpop.permute.xlu1 %1840  ;;  %v1846_v60 = vmul.f32 %v1842_v29, %v3143_v21  ;;  %v1847_v17 = vmul.f32 %v1844_v46, %v3146_v15  ;;  %v2013_v46 = vld [vmem:[%s3963_s12] sm:$0xff] }
 0x903   : > { %v1843_v34 = vsel %vm955_vm7, %v1837_v14, %v1841_v52  ;;  %v1845_v44 = vsel %vm955_vm7, %v1841_v52, %v1837_v14  ;;  %v2029_v52 = vld [vmem:[%s3964_s13] sm:$0xff] }
 0x904   : > { %v1848_v16 = vmul.f32 %v1843_v34, %v3143_v21  ;;  %v1849_v41 = vmul.f32 %v1845_v44, %v3146_v15  ;;  %v1855_v51 = vpop.permute.xlu0 %1854 }
 0x906   : > { %v1850_v20 = vpack.c.bf16 %v1848_v16, %v1846_v60  ;;  %v1857_v63 = vpop.permute.xlu1 %1856  ;;  %v1851_v1 = vpack.c.bf16 %v1849_v41, %v1847_v17 }
 0x908   : > { %1938 = vmatprep.subr.bf16.mxu1 %v1851_v1  ;;  %v1859_v0 = vpop.permute.xlu0 %1858 }
 0x909   : > { %1939 = vmatpush1.bf16.msra.mxu1 %v1850_v20  ;;  %v1862_v36 = vsel %vm987_vm8, %v1855_v51, %v1859_v0  ;;  %v1864_v3 = vsel %vm987_vm8, %v1859_v0, %v1855_v51 }
 0x90a   : > { %v1861_v10 = vpop.permute.xlu1 %1860  ;;  %v1866_v11 = vmul.f32 %v1862_v36, %v3171_v27  ;;  %v1867_v33 = vmul.f32 %v1864_v3, %v3174_v32 }
 0x90b   : > { %v1863_v48 = vsel %vm987_vm8, %v1857_v63, %v1861_v10  ;;  %v1865_v43 = vsel %vm987_vm8, %v1861_v10, %v1857_v63 }
 0x90c   : > { %v1868_v42 = vmul.f32 %v1863_v48, %v3171_v27  ;;  %v1869_v53 = vmul.f32 %v1865_v43, %v3174_v32  ;;  %v1875_v7 = vpop.permute.xlu0 %1874 }
 0x90e   : > { %v1870_v35 = vpack.c.bf16 %v1868_v42, %v1866_v11  ;;  %v1877_v57 = vpop.permute.xlu1 %1876  ;;  %v1871_v37 = vpack.c.bf16 %v1869_v53, %v1867_v33  ;;  %v2014_v53 = vld [vmem:[%s3963_s12 + $0x8] sm:$0xff] }
 0x910   : > { %1940 = vmatprep.subr.bf16.mxu1 %v1871_v37  ;;  %v1879_v26 = vpop.permute.xlu0 %1878 }
 0x911   : > { %1941 = vmatpush1.bf16.msra.mxu1 %v1870_v35  ;;  %v1882_v2 = vsel %vm1019_vm9, %v1875_v7, %v1879_v26  ;;  %v1884_v6 = vsel %vm1019_vm9, %v1879_v26, %v1875_v7  ;;  %v2030_v7 = vld [vmem:[%s3964_s13 + $0x8] sm:$0xff] }
 0x912   : > { %v1881_v25 = vpop.permute.xlu1 %1880  ;;  %v1886_v9 = vmul.f32 %v1882_v2, %v3195_v58  ;;  %v1887_v19 = vmul.f32 %v1884_v6, %v3198_v59 }
 0x913   : > { %v1883_v23 = vsel %vm1019_vm9, %v1877_v57, %v1881_v25  ;;  %v1885_v28 = vsel %vm1019_vm9, %v1881_v25, %v1877_v57 }
 0x914   : > { %v1888_v45 = vmul.f32 %v1883_v23, %v3195_v58  ;;  %v1889_v22 = vmul.f32 %v1885_v28, %v3198_v59 }
 0x916   : > { %v1890_v40 = vpack.c.bf16 %v1888_v45, %v1886_v9  ;;  %v1891_v24 = vpack.c.bf16 %v1889_v22, %v1887_v19 }
 0x918   : > { %1942 = vmatprep.subr.bf16.mxu1 %v1891_v24 }
 0x919   : > { %1943 = vmatpush1.bf16.msra.mxu1 %v1890_v40 }
 0x91c   : > { %1959 = vmatmul.mubr.bf16.vlgmr.msra.gmra.mrb[4].mxu1 %v2664_v38 }
 0x9ef   : > { %v1960_v49 = vpop.f32.mrb[4].mxu1 }
 0x9f0   : > { %v1962_v8 = vpop.f32.mrb[5].mxu1 }
 0x9f1   : > { %v1969_v54 = vadd.f32 %v1962_v8, %v1960_v49  ;;  %v1964_v14 = vpop.f32.mrb[6].mxu1 }
 0x9f2   : > { %v1966_v18 = vpop.f32.mrb[7].mxu1 }
 0x9f3   : > { %v1970_v39 = vadd.f32 %v1969_v54, %v1964_v14 }
 0x9f5   : > { %v1971_v29 = vadd.f32 %v1970_v39, %v1966_v18 }
 0x9f7   : > { %1972 = vadd.xlane.f32.xlu0 %v1971_v29 }
 0xa0d   : > { %2017 = vperm.xlu0 %2654, %v2013_v46  }
 0xa11   : > { %2033 = vperm.xlu0 %2654, %v2029_v52  }
 0xa84   : > { %v1973_v60 = vpop.xlane.xlu0 %1972 }
 0xa85   : > { %v1974_v17 = vrot.slane %v1973_v60, 4 }
 0xa87   : > { %v1975_v34 = vadd.f32 %v1974_v17, %v1973_v60 }
 0xa89   : > { %v1976_v44 = vrot.slane %v1975_v34, 2 }
 0xa8b   : > { %v1977_v16 = vadd.f32 %v1976_v44, %v1975_v34 }
 0xa8c   : > { %v2018_v23 = vpop.permute.xlu0 %2017 }
 0xa8d   : > { %v1978_v41 = vrot.slane %v1977_v16, 1 }
 0xa8f   : > { %v1979_v51 = vadd.f32 %v1978_v41, %v1977_v16 }
 0xa91   : > { %2624 = vpush %v1979_v51 }
 0xac2   : > { %s2625_s29 = spop %2624 }
 0xac3   : > { %s1981_s22 = smul.f32 0.00024414063, %s2625_s29 }
 0xac5   : > { %v1982_v20 = vstv %s1981_s22 }
 0xac6   : > { %v1983_v63 = vsub.f32 %v1960_v49, %v1982_v20  ;;  %v1984_v1 = vsub.f32 %v1962_v8, %v1982_v20  ;;  %v1985_v0 = vsub.f32 %v1964_v14, %v1982_v20  ;;  %v1986_v36 = vsub.f32 %v1966_v18, %v1982_v20  ;;  %v2034_v18 = vpop.permute.xlu0 %2033 }
 0xac8   : > { %v1987_v3 = vmul.f32 %v1983_v63, %v1983_v63  ;;  %v1988_v10 = vmul.f32 %v1984_v1, %v1984_v1  ;;  %v1989_v11 = vmul.f32 %v1985_v0, %v1985_v0  ;;  %v1990_v48 = vmul.f32 %v1986_v36, %v1986_v36 }
 0xaca   : > { %v1991_v33 = vadd.f32 %v1988_v10, %v1987_v3 }
 0xacc   : > { %v1992_v43 = vadd.f32 %v1991_v33, %v1989_v11 }
 0xace   : > { %v1993_v42 = vadd.f32 %v1992_v43, %v1990_v48 }
 0xad0   : > { %1994 = vadd.xlane.f32.xlu1 %v1993_v42 }
 0xae1   : > { %2022 = vperm.xlu1 %2655, %v2014_v53  }
 0xae5   : > { %2038 = vperm.xlu1 %2655, %v2030_v7  }
 0xb5d   : > { %v1995_v35 = vpop.xlane.xlu1 %1994 }
 0xb5e   : > { %v1996_v57 = vrot.slane %v1995_v35, 4 }
 0xb60   : > { %v1997_v37 = vadd.f32 %v1996_v57, %v1995_v35 }
 0xb61   : > { %v2023_v28 = vpop.permute.xlu1 %2022 }
 0xb62   : > { %v1998_v26 = vrot.slane %v1997_v37, 2 }
 0xb64   : > { %v1999_v2 = vadd.f32 %v1998_v26, %v1997_v37 }
 0xb65   : > { %v2039_v39 = vpop.permute.xlu1 %2038 }
 0xb66   : > { %v2000_v6 = vrot.slane %v1999_v2, 1 }
 0xb68   : > { %v2001_v25 = vadd.f32 %v2000_v6, %v1999_v2 }
 0xb6a   : > { %2626 = vpush %v2001_v25 }
 0xb9b   : > { %s2627_s29 = spop %2626 }
 0xb9c   : > { %s2003_s22 = smul.f32 0.00024414063, %s2627_s29 }
 0xb9e   : > { %s2004_s5 = sadd.f32 1e-05, %s2003_s22 }
 0xba0   : > { %v2005_v9 = vstv %s2004_s5  ;;  %s2595_s5 = sshll.u32 %s4010_s30, 5 }
 0xba1   : > { %2704 = vrsqrt.f32 %v2005_v9 }
 0xbab   : > { %v2705_v19 = vpop.eup %2704 }
 0xbac   : > { %2628 = vpush %v2705_v19 }
 0xbdd   : > { %s2629_s4 = spop %2628 }
 0xbde   : > { %v2008_v45 = vstv %s2629_s4 }
 0xbdf   : > { %v2009_v22 = vmul.f32 %v2008_v45, %v1983_v63  ;;  %v2010_v40 = vmul.f32 %v2008_v45, %v1984_v1  ;;  %v2011_v24 = vmul.f32 %v2008_v45, %v1985_v0  ;;  %v2012_v38 = vmul.f32 %v2008_v45, %v1986_v36 }
 0xbe1   : > { %v2025_v49 = vmul.f32 %v2018_v23, %v2009_v22  ;;  %v2026_v8 = vmul.f32 %v2018_v23, %v2010_v40  ;;  %v2027_v54 = vmul.f32 %v2023_v28, %v2011_v24  ;;  %v2028_v14 = vmul.f32 %v2023_v28, %v2012_v38 }
 0xbe3   : > { %v3698_v29 = vadd.f32 %v2034_v18, %v2025_v49  ;;  %v3700_v46 = vadd.f32 %v2034_v18, %v2026_v8  ;;  %v3702_v52 = vadd.f32 %v2039_v39, %v2027_v54  ;;  %v3704_v60 = vadd.f32 %v2039_v39, %v2028_v14 }
 0xbe5   : > { %v3707_v17 = vmul.f32 0.70710677, %v3698_v29  ;;  %v3710_v34 = vmul.f32 0.70710677, %v3700_v46  ;;  %v3713_v44 = vmul.f32 0.70710677, %v3702_v52 }
 0xbe6   : > { %v3716_v16 = vmul.f32 0.70710677, %v3704_v60 }
 0xbe7   : > { %v2053_v41 = vand.u32 2147483647, %v3707_v17  ;;  %v2054_v51 = vand.u32 2147483647, %v3710_v34  ;;  %v2055_v20 = vand.u32 2147483647, %v3713_v44 }
 0xbe8   : > { %v2056_v63 = vand.u32 2147483647, %v3716_v16  ;;  %vm2133_vm11 = vcmp.ge.f32.partialorder %v3707_v17, 0.0  ;;  %vm2134_vm12 = vcmp.ge.f32.partialorder %v3710_v34, 0.0  ;;  %vm2135_vm13 = vcmp.ge.f32.partialorder %v3713_v44, 0.0 }
 0xbe9   : > { %v2057_v1 = vmul.f32 0.3275911, %v2053_v41  ;;  %v2058_v0 = vmul.f32 0.3275911, %v2054_v51  ;;  %v2059_v36 = vmul.f32 0.3275911, %v2055_v20 }
 0xbea   : > { %v2060_v3 = vmul.f32 0.3275911, %v2056_v63  ;;  %v2109_v43 = vsub.f32 0.0, %v2053_v41  ;;  %v2110_v42 = vsub.f32 0.0, %v2054_v51  ;;  %v2111_v53 = vsub.f32 0.0, %v2055_v20 }
 0xbeb   : > { %v2061_v10 = vadd.f32 1.0, %v2057_v1  ;;  %v2062_v11 = vadd.f32 1.0, %v2058_v0  ;;  %v2063_v33 = vadd.f32 1.0, %v2059_v36  ;;  %v2112_v7 = vsub.f32 0.0, %v2056_v63 }
 0xbec   : > { %v2064_v48 = vadd.f32 1.0, %v2060_v3  ;;  %v2113_v57 = vmul.f32 %v2109_v43, %v2053_v41  ;;  %v2114_v2 = vmul.f32 %v2110_v42, %v2054_v51  ;;  %v2115_v9 = vmul.f32 %v2111_v53, %v2055_v20 }
 0xbed   : > { %2706 = vrcp.f32 %v2061_v10  ;;  %v2116_v45 = vmul.f32 %v2112_v7, %v2056_v63  ;;  %vm2136_vm14 = vcmp.ge.f32.partialorder %v3716_v16, 0.0  ;;  %v2047_v17 = vmul.f32 0.5, %v3702_v52 }
 0xbee   : > { %2708 = vrcp.f32 %v2062_v11  ;;  %v2117_v24 = vmul.f32 1.442695, %v2113_v57  ;;  %v2119_v8 = vmul.f32 1.442695, %v2114_v2  ;;  %v2121_v18 = vmul.f32 1.442695, %v2115_v9 }
 0xbef   : > { %2710 = vrcp.f32 %v2063_v33  ;;  %v2123_v1 = vmul.f32 1.442695, %v2116_v45  ;;  %v2048_v34 = vmul.f32 0.5, %v3704_v60  ;;  %v2665_v60 = vld [vmem:[%s3965_s14 + $0x4] ss:$8 sps:$4 sm:$0xff]  }
 0xbf0   : > { %2712 = vrcp.f32 %v2064_v48  ;;  %2591 = vmatprep.mubr.msk.bf16.mxu0 %vm1072_vm1, %v2665_v60  ;;  %vm668_vm1 = vcmask 261120  }
 0xbf1   : > { %2714 = vpow2.f32 %v2117_v24 }
 0xbf2   : > { %2716 = vpow2.f32 %v2119_v8 }
 0xbf3   : > { %2718 = vpow2.f32 %v2121_v18 }
 0xbf4   : > { %2720 = vpow2.f32 %v2123_v1 }
 0xbf7   : > { %v2707_v35 = vpop.eup %2706 }
 0xbf8   : > { %v2709_v37 = vpop.eup %2708  ;;  %v2073_v26 = vmul.f32 1.0614054, %v2707_v35 }
 0xbf9   : > { %v2711_v6 = vpop.eup %2710  ;;  %v2074_v25 = vmul.f32 1.0614054, %v2709_v37 }
 0xbfa   : > { %v2713_v19 = vpop.eup %2712  ;;  %v2075_v23 = vmul.f32 1.0614054, %v2711_v6  ;;  %v2077_v28 = vadd.f32 -1.4531521, %v2073_v26 }
 0xbfb   : > { %v2076_v22 = vmul.f32 1.0614054, %v2713_v19  ;;  %v2078_v40 = vadd.f32 -1.4531521, %v2074_v25 }
 0xbfc   : > { %v2079_v38 = vadd.f32 -1.4531521, %v2075_v23  ;;  %v2081_v49 = vmul.f32 %v2707_v35, %v2077_v28  ;;  %v2715_v28 = vpop.eup %2714 }
 0xbfd   : > { %v2080_v54 = vadd.f32 -1.4531521, %v2076_v22  ;;  %v2082_v14 = vmul.f32 %v2709_v37, %v2078_v40  ;;  %v2717_v40 = vpop.eup %2716 }
 0xbfe   : > { %v2083_v39 = vmul.f32 %v2711_v6, %v2079_v38  ;;  %v2085_v41 = vadd.f32 1.4214138, %v2081_v49  ;;  %v2719_v49 = vpop.eup %2718 }
 0xbff   : > { %v2084_v51 = vmul.f32 %v2713_v19, %v2080_v54  ;;  %v2086_v0 = vadd.f32 1.4214138, %v2082_v14  ;;  %v2721_v14 = vpop.eup %2720 }
 0xc00   : > { %v2087_v20 = vadd.f32 1.4214138, %v2083_v39  ;;  %v2089_v36 = vmul.f32 %v2707_v35, %v2085_v41 }
 0xc01   : > { %v2088_v3 = vadd.f32 1.4214138, %v2084_v51  ;;  %v2090_v63 = vmul.f32 %v2709_v37, %v2086_v0 }
 0xc02   : > { %v2091_v10 = vmul.f32 %v2711_v6, %v2087_v20  ;;  %v2093_v11 = vadd.f32 -0.28449672, %v2089_v36  ;;  %v2045_v36 = vmul.f32 0.5, %v3698_v29 }
 0xc03   : > { %v2092_v33 = vmul.f32 %v2713_v19, %v2088_v3  ;;  %v2094_v48 = vadd.f32 -0.28449672, %v2090_v63 }
 0xc04   : > { %v2095_v43 = vadd.f32 -0.28449672, %v2091_v10  ;;  %v2097_v42 = vmul.f32 %v2707_v35, %v2093_v11  ;;  %v2046_v10 = vmul.f32 0.5, %v3700_v46 }
 0xc05   : > { %v2096_v53 = vadd.f32 -0.28449672, %v2092_v33  ;;  %v2098_v7 = vmul.f32 %v2709_v37, %v2094_v48 }
 0xc06   : > { %v2099_v57 = vmul.f32 %v2711_v6, %v2095_v43  ;;  %v2101_v26 = vadd.f32 0.2548296, %v2097_v42 }
 0xc07   : > { %v2100_v2 = vmul.f32 %v2713_v19, %v2096_v53  ;;  %v2102_v25 = vadd.f32 0.2548296, %v2098_v7 }
 0xc08   : > { %v2103_v9 = vadd.f32 0.2548296, %v2099_v57  ;;  %v2105_v23 = vmul.f32 %v2707_v35, %v2101_v26 }
 0xc09   : > { %v2104_v45 = vadd.f32 0.2548296, %v2100_v2  ;;  %v2106_v22 = vmul.f32 %v2709_v37, %v2102_v25 }
 0xc0a   : > { %v2107_v24 = vmul.f32 %v2711_v6, %v2103_v9  ;;  %v2125_v38 = vmul.f32 %v2715_v28, %v2105_v23 }
 0xc0b   : > { %v2108_v8 = vmul.f32 %v2713_v19, %v2104_v45  ;;  %v2126_v54 = vmul.f32 %v2717_v40, %v2106_v22 }
 0xc0c   : > { %v2127_v18 = vmul.f32 %v2719_v49, %v2107_v24  ;;  %v2129_v39 = vsub.f32 1.0, %v2125_v38 }
 0xc0d   : > { %v2128_v41 = vmul.f32 %v2721_v14, %v2108_v8  ;;  %v2130_v1 = vsub.f32 1.0, %v2126_v54 }
 0xc0e   : > { %v2131_v51 = vsub.f32 1.0, %v2127_v18  ;;  %v2137_v0 = vsub.f32 0.0, %v2129_v39 }
 0xc0f   : > { %v2132_v20 = vsub.f32 1.0, %v2128_v41  ;;  %v2138_v35 = vsub.f32 0.0, %v2130_v1 }
 0xc10   : > { %v2139_v37 = vsub.f32 0.0, %v2131_v51  ;;  %v2141_v6 = vsel %vm2133_vm11, %v2129_v39, %v2137_v0 }
 0xc11   : > { %v2140_v19 = vsub.f32 0.0, %v2132_v20  ;;  %v2142_v3 = vsel %vm2134_vm12, %v2130_v1, %v2138_v35  ;;  %v2145_v63 = vadd.f32 1.0, %v2141_v6 }
 0xc12   : > { %v2143_v11 = vsel %vm2135_vm13, %v2131_v51, %v2139_v37  ;;  %v2146_v33 = vadd.f32 1.0, %v2142_v3 }
 0xc13   : > { %v2144_v48 = vsel %vm2136_vm14, %v2132_v20, %v2140_v19  ;;  %v2147_v43 = vadd.f32 1.0, %v2143_v11  ;;  %v3729_v29 = vmul.f32 %v2145_v63, %v2045_v36 }
 0xc14   : > { %v2148_v42 = vadd.f32 1.0, %v2144_v48  ;;  %v3732_v53 = vmul.f32 %v2146_v33, %v2046_v10 }
 0xc15   : > { %v3734_v44 = vmul.f32 %v2147_v43, %v2047_v17  ;;  %2153 = vrot.lane.b32.xlu0 %v3729_v29, %s4005_s1 }
 0xc16   : > { %v3738_v46 = vmul.f32 %v2148_v42, %v2048_v34 }
 0xc17   : > { %2155 = vrot.lane.b32.xlu1 %v3734_v44, %s4005_s1  ;;  %v2233_v52 = vpack.c.bf16 %v3734_v44, %v3729_v29 }
 0xc18   : > { %v2234_v16 = vpack.c.bf16 %v3738_v46, %v3732_v53 }
 0xc19   : > { %2157 = vrot.lane.b32.xlu0 %v3732_v53, %s4005_s1 }
 0xc1b   : > { %2159 = vrot.lane.b32.xlu1 %v3738_v46, %s4005_s1  ;;  %s4008_s1 = sld [smem:[#allocation6_spill]] }
 0xc1d   : > { %2173 = vrot.lane.b32.xlu0 %v3729_v29, %s4006_s25 }
 0xc1f   : > { %2175 = vrot.lane.b32.xlu1 %v3734_v44, %s4006_s25 }
 0xc21   : > { %2177 = vrot.lane.b32.xlu0 %v3732_v53, %s4006_s25 }
 0xc23   : > { %2179 = vrot.lane.b32.xlu1 %v3738_v46, %s4006_s25  ;;  %s628_s25 = scalar_lea.vmem %s4008_s1, %s4010_s30 }
 0xc25   : > { %2193 = vrot.lane.b32.xlu0 %v3729_v29, %s4007_s2 }
 0xc27   : > { %2195 = vrot.lane.b32.xlu1 %v3734_v44, %s4007_s2 }
 0xc29   : > { %2197 = vrot.lane.b32.xlu0 %v3732_v53, %s4007_s2 }
 0xc2b   : > { %2199 = vrot.lane.b32.xlu1 %v3738_v46, %s4007_s2 }
 0xc2d   : > { %2213 = vrot.lane.b32.xlu0 %v3729_v29, %s4000_s20 }
 0xc2f   : > { %2215 = vrot.lane.b32.xlu1 %v3734_v44, %s4000_s20 }
 0xc31   : > { %2217 = vrot.lane.b32.xlu0 %v3732_v53, %s4000_s20 }
 0xc33   : > { %2219 = vrot.lane.b32.xlu1 %v3738_v46, %s4000_s20 }
 0xc35   : > { %2237 = vrot.lane.b32.xlu0 %v3729_v29, %s4001_s26 }
 0xc37   : > { %2239 = vrot.lane.b32.xlu1 %v3734_v44, %s4001_s26 }
 0xc39   : > { %2241 = vrot.lane.b32.xlu0 %v3732_v53, %s4001_s26 }
 0xc3b   : > { %2243 = vrot.lane.b32.xlu1 %v3738_v46, %s4001_s26 }
 0xc3d   : > { %2257 = vrot.lane.b32.xlu0 %v3729_v29, %s4002_s24 }
 0xc3f   : > { %2259 = vrot.lane.b32.xlu1 %v3734_v44, %s4002_s24 }
 0xc41   : > { %2261 = vrot.lane.b32.xlu0 %v3732_v53, %s4002_s24 }
 0xc43   : > { %2263 = vrot.lane.b32.xlu1 %v3738_v46, %s4002_s24  ;;  %s633_s24 = scalar_lea.vmem %s3970_s19, %s2595_s5 }
 0xc45   : > { %2277 = vrot.lane.b32.xlu0 %v3729_v29, %s4003_s3 }
 0xc47   : > { %2279 = vrot.lane.b32.xlu1 %v3734_v44, %s4003_s3 }
 0xc49   : > { %2281 = vrot.lane.b32.xlu0 %v3732_v53, %s4003_s3 }
 0xc4b   : > { %2283 = vrot.lane.b32.xlu1 %v3738_v46, %s4003_s3 }
 0xc4d   : > { %2297 = vrot.lane.b32.xlu0 %v3729_v29, %s4004_s21 }
 0xc4f   : > { %2299 = vrot.lane.b32.xlu1 %v3734_v44, %s4004_s21 }
 0xc51   : > { %2301 = vrot.lane.b32.xlu0 %v3732_v53, %s4004_s21 }
 0xc53   : > { %2303 = vrot.lane.b32.xlu1 %v3738_v46, %s4004_s21 }
 0xc87   : > { %v2154_v7 = vpop.permute.xlu0 %2153 }
 0xc89   : > { %v2156_v57 = vpop.permute.xlu1 %2155 }
 0xc8b   : > { %v2158_v26 = vpop.permute.xlu0 %2157 }
 0xc8c   : > { %v2161_v2 = vsel %vm791_vm2, %v2154_v7, %v2158_v26  ;;  %v2163_v25 = vsel %vm791_vm2, %v2158_v26, %v2154_v7 }
 0xc8d   : > { %v2160_v9 = vpop.permute.xlu1 %2159  ;;  %v2165_v23 = vmul.f32 %v2163_v25, %v3027_v56  ;;  %v2166_v28 = vmul.f32 %v2161_v2, %v3024_v55 }
 0xc8e   : > { %v2162_v45 = vsel %vm791_vm2, %v2156_v57, %v2160_v9  ;;  %v2164_v22 = vsel %vm791_vm2, %v2160_v9, %v2156_v57 }
 0xc8f   : > { %v2167_v40 = vmul.f32 %v2164_v22, %v3027_v56  ;;  %v2168_v24 = vmul.f32 %v2162_v45, %v3024_v55  ;;  %v2174_v38 = vpop.permute.xlu0 %2173 }
 0xc91   : > { %v2169_v49 = vpack.c.bf16 %v2167_v40, %v2165_v23  ;;  %v2176_v8 = vpop.permute.xlu1 %2175  ;;  %v2170_v54 = vpack.c.bf16 %v2168_v24, %v2166_v28 }
 0xc93   : > { %2349 = vmatprep.subr.bf16.mxu0 %v2170_v54  ;;  %v2178_v14 = vpop.permute.xlu0 %2177 }
 0xc94   : > { %2350 = vmatpush1.bf16.msra.mxu0 %v2169_v49  ;;  %v2181_v18 = vsel %vm823_vm3, %v2174_v38, %v2178_v14  ;;  %v2183_v39 = vsel %vm823_vm3, %v2178_v14, %v2174_v38 }
 0xc95   : > { %v2180_v41 = vpop.permute.xlu1 %2179  ;;  %v2185_v1 = vmul.f32 %v2183_v39, %v3037_v61  ;;  %v2186_v56 = vmul.f32 %v2181_v18, %v3040_v62 }
 0xc96   : > { %v2182_v55 = vsel %vm823_vm3, %v2176_v8, %v2180_v41  ;;  %v2184_v51 = vsel %vm823_vm3, %v2180_v41, %v2176_v8 }
 0xc97   : > { %v2187_v0 = vmul.f32 %v2184_v51, %v3037_v61  ;;  %v2188_v20 = vmul.f32 %v2182_v55, %v3040_v62  ;;  %v2194_v35 = vpop.permute.xlu0 %2193 }
 0xc99   : > { %v2189_v36 = vpack.c.bf16 %v2187_v0, %v2185_v1  ;;  %v2196_v37 = vpop.permute.xlu1 %2195  ;;  %v2190_v6 = vpack.c.bf16 %v2188_v20, %v2186_v56 }
 0xc9b   : > { %2351 = vmatprep.subr.bf16.mxu0 %v2190_v6  ;;  %v2198_v19 = vpop.permute.xlu0 %2197 }
 0xc9c   : > { %2352 = vmatpush1.bf16.msra.mxu0 %v2189_v36  ;;  %v2201_v3 = vsel %vm855_vm4, %v2194_v35, %v2198_v19  ;;  %v2203_v63 = vsel %vm855_vm4, %v2198_v19, %v2194_v35 }
 0xc9d   : > { %v2200_v10 = vpop.permute.xlu1 %2199  ;;  %v2205_v11 = vmul.f32 %v2203_v63, %v3061_v12  ;;  %v2206_v61 = vmul.f32 %v2201_v3, %v3064_v13 }
 0xc9e   : > { %v2202_v62 = vsel %vm855_vm4, %v2196_v37, %v2200_v10  ;;  %v2204_v33 = vsel %vm855_vm4, %v2200_v10, %v2196_v37 }
 0xc9f   : > { %v2207_v17 = vmul.f32 %v2204_v33, %v3061_v12  ;;  %v2208_v48 = vmul.f32 %v2202_v62, %v3064_v13  ;;  %v2214_v43 = vpop.permute.xlu0 %2213 }
 0xca1   : > { %v2209_v34 = vpack.c.bf16 %v2207_v17, %v2205_v11  ;;  %v2216_v42 = vpop.permute.xlu1 %2215  ;;  %v2210_v60 = vpack.c.bf16 %v2208_v48, %v2206_v61 }
 0xca3   : > { %2353 = vmatprep.subr.bf16.mxu0 %v2210_v60  ;;  %v2218_v7 = vpop.permute.xlu0 %2217 }
 0xca4   : > { %2354 = vmatpush1.bf16.msra.mxu0 %v2209_v34  ;;  %v2221_v57 = vsel %vm887_vm5, %v2214_v43, %v2218_v7  ;;  %v2223_v26 = vsel %vm887_vm5, %v2218_v7, %v2214_v43 }
 0xca5   : > { %v2220_v2 = vpop.permute.xlu1 %2219  ;;  %v2225_v25 = vmul.f32 %v2223_v26, %v3083_v30  ;;  %v2226_v12 = vmul.f32 %v2221_v57, %v3086_v31 }
 0xca6   : > { %v2222_v13 = vsel %vm887_vm5, %v2216_v42, %v2220_v2  ;;  %v2224_v9 = vsel %vm887_vm5, %v2220_v2, %v2216_v42 }
 0xca7   : > { %v2227_v23 = vmul.f32 %v2224_v9, %v3083_v30  ;;  %v2228_v28 = vmul.f32 %v2222_v13, %v3086_v31  ;;  %v2238_v45 = vpop.permute.xlu0 %2237 }
 0xca9   : > { %v2229_v22 = vpack.c.bf16 %v2227_v23, %v2225_v25  ;;  %v2240_v40 = vpop.permute.xlu1 %2239  ;;  %v2230_v24 = vpack.c.bf16 %v2228_v28, %v2226_v12  ;;  %v2667_v23 = vld [vmem:[%s3965_s14] ss:$8 sps:$4 sm:$0xff]  }
 0xcaa   : > { %v652_v28 = vld [vmem:[%s628_s25] sm:$0x1] }
 0xcab   : > { %2355 = vmatprep.subr.bf16.mxu0 %v2230_v24  ;;  %v2242_v38 = vpop.permute.xlu0 %2241  ;;  %v653_v47 = vsub.f32 0.0, %v652_v28 }
 0xcac   : > { %2356 = vmatpush1.bf16.msra.mxu0 %v2229_v22  ;;  %v2245_v49 = vsel %vm923_vm6, %v2238_v45, %v2242_v38  ;;  %v2247_v8 = vsel %vm923_vm6, %v2242_v38, %v2238_v45 }
 0xcad   : > { %v2244_v54 = vpop.permute.xlu1 %2243  ;;  %2357 = vmatprep.subr.bf16.mxu0 %v2234_v16  ;;  %v2249_v30 = vmul.f32 %v2245_v49, %v3121_v4  ;;  %v2250_v31 = vmul.f32 %v2247_v8, %v3124_v5  ;;  %v654_v45 = vmul.f32 1.442695, %v653_v47 }
 0xcae   : > { %v2246_v14 = vsel %vm923_vm6, %v2240_v40, %v2244_v54  ;;  %v2248_v18 = vsel %vm923_vm6, %v2244_v54, %v2240_v40 }
 0xcaf   : > { %v2251_v39 = vmul.f32 %v2246_v14, %v3121_v4  ;;  %v2252_v41 = vmul.f32 %v2248_v18, %v3124_v5  ;;  %v2258_v1 = vpop.permute.xlu0 %2257  ;;  %2722 = vpow2.f32 %v654_v45 }
 0xcb0   : > { %2358 = vmatpush1.bf16.msra.mxu0 %v2233_v52 }
 0xcb1   : > { %v2253_v53 = vpack.c.bf16 %v2251_v39, %v2249_v30  ;;  %v2260_v46 = vpop.permute.xlu1 %2259  ;;  %v2254_v16 = vpack.c.bf16 %v2252_v41, %v2250_v31  ;;  %v650_v30 = vld [vmem:[%s3968_s17] sm:$0xff]  ;;  %v651_v41 = vld [vmem:[%s3968_s17 + $0x8] sm:$0xff] }
 0xcb3   : > { %2359 = vmatprep.subr.bf16.mxu0 %v2254_v16  ;;  %v2262_v56 = vpop.permute.xlu0 %2261 }
 0xcb4   : > { %2360 = vmatpush1.bf16.msra.mxu0 %v2253_v53  ;;  %v2265_v55 = vsel %vm955_vm7, %v2258_v1, %v2262_v56  ;;  %v2267_v51 = vsel %vm955_vm7, %v2262_v56, %v2258_v1 }
 0xcb5   : > { %v2264_v4 = vpop.permute.xlu1 %2263  ;;  %v2269_v5 = vmul.f32 %v2265_v55, %v3143_v21  ;;  %v2270_v0 = vmul.f32 %v2267_v51, %v3146_v15  ;;  %v675_v55 = vld [vmem:[%s3969_s18] sm:$0xff] }
 0xcb6   : > { %v2266_v29 = vsel %vm955_vm7, %v2260_v46, %v2264_v4  ;;  %v2268_v44 = vsel %vm955_vm7, %v2264_v4, %v2260_v46  ;;  %v2437_v46 = vld [vmem:[%s3966_s15 + $0x8] sm:$0xff] }
 0xcb7   : > { %v2271_v52 = vmul.f32 %v2266_v29, %v3143_v21  ;;  %v2272_v20 = vmul.f32 %v2268_v44, %v3146_v15  ;;  %v2278_v35 = vpop.permute.xlu0 %2277 }
 0xcb9   : > { %v2273_v36 = vpack.c.bf16 %v2271_v52, %v2269_v5  ;;  %v2280_v37 = vpop.permute.xlu1 %2279  ;;  %v2274_v6 = vpack.c.bf16 %v2272_v20, %v2270_v0 }
 0xcbb   : > { %2361 = vmatprep.subr.bf16.mxu0 %v2274_v6  ;;  %v2282_v19 = vpop.permute.xlu0 %2281 }
 0xcbc   : > { %2362 = vmatpush1.bf16.msra.mxu0 %v2273_v36  ;;  %v2285_v3 = vsel %vm987_vm8, %v2278_v35, %v2282_v19  ;;  %v2287_v63 = vsel %vm987_vm8, %v2282_v19, %v2278_v35 }
 0xcbd   : > { %v2284_v10 = vpop.permute.xlu1 %2283  ;;  %v2289_v11 = vmul.f32 %v2285_v3, %v3171_v27  ;;  %v2290_v21 = vmul.f32 %v2287_v63, %v3174_v32 }
 0xcbe   : > { %v2286_v15 = vsel %vm987_vm8, %v2280_v37, %v2284_v10  ;;  %v2288_v61 = vsel %vm987_vm8, %v2284_v10, %v2280_v37 }
 0xcbf   : > { %v2291_v62 = vmul.f32 %v2286_v15, %v3171_v27  ;;  %v2292_v33 = vmul.f32 %v2288_v61, %v3174_v32  ;;  %v2298_v17 = vpop.permute.xlu0 %2297  ;;  %v2436_v61 = vld [vmem:[%s3966_s15] sm:$0xff] }
 0xcc1   : > { %v2293_v48 = vpack.c.bf16 %v2291_v62, %v2289_v11  ;;  %v2300_v43 = vpop.permute.xlu1 %2299  ;;  %v2294_v34 = vpack.c.bf16 %v2292_v33, %v2290_v21  ;;  %v2452_v62 = vld [vmem:[%s3967_s16] sm:$0xff]  ;;  %v676_v33 = vld [vmem:[%s3969_s18 + $0x8] sm:$0xff] }
 0xcc3   : > { %2363 = vmatprep.subr.bf16.mxu0 %v2294_v34  ;;  %v2302_v42 = vpop.permute.xlu0 %2301 }
 0xcc4   : > { %2364 = vmatpush1.bf16.msra.mxu0 %v2293_v48  ;;  %v2305_v60 = vsel %vm1019_vm9, %v2298_v17, %v2302_v42  ;;  %v2307_v7 = vsel %vm1019_vm9, %v2302_v42, %v2298_v17  ;;  %v2453_v17 = vld [vmem:[%s3967_s16 + $0x8] sm:$0xff] }
 0xcc5   : > { %v2304_v57 = vpop.permute.xlu1 %2303  ;;  %v2309_v26 = vmul.f32 %v2305_v60, %v3195_v58  ;;  %v2310_v27 = vmul.f32 %v2307_v7, %v3198_v59 }
 0xcc6   : > { %v2306_v32 = vsel %vm1019_vm9, %v2300_v43, %v2304_v57  ;;  %v2308_v2 = vsel %vm1019_vm9, %v2304_v57, %v2300_v43 }
 0xcc7   : > { %v2311_v25 = vmul.f32 %v2306_v32, %v3195_v58  ;;  %v2312_v12 = vmul.f32 %v2308_v2, %v3198_v59  ;;  %v2723_v58 = vpop.eup %2722 }
 0xcc8   : > { %v656_v22 = vadd.f32 1.0, %v2723_v58 }
 0xcc9   : > { %v2313_v13 = vpack.c.bf16 %v2311_v25, %v2309_v26  ;;  %v2314_v9 = vpack.c.bf16 %v2312_v12, %v2310_v27 }
 0xcca   : > { %2724 = vrcp.f32 %v656_v22 }
 0xccb   : > { %2365 = vmatprep.subr.bf16.mxu0 %v2314_v9 }
 0xccc   : > { %2366 = vmatpush1.bf16.msra.mxu0 %v2313_v13 }
 0xccf   : > { %2382 = vmatmul.mubr.bf16.vlgmr.msra.gmra.mrb[8].mxu0 %v2667_v23 }
 0xcd4   : > { %v2725_v59 = vpop.eup %2724 }
 0xcd5   : > { %v659_v40 = vmul.f32 %v2725_v59, %v652_v28 }
 0xcd7   : > { %v664_v49 = vrot.slane %v659_v40, %v3010_v50 }
 0xcd9   : > { %v666_v18 = vmul.f32 %v664_v49, %v650_v30  ;;  %v667_v53 = vmul.f32 %v664_v49, %v651_v41 }
 0xcdb   : > { %v669_v1 = vsel %vm668_vm1, %v666_v18, 0.0  ;;  %v672_v50 = vsel %vm668_vm1, %v667_v53, 0.0 }
 0xda2   : > { %v2383_v24 = vpop.f32.mrb[8].mxu0 }
 0xda3   : > { %v2385_v38 = vpop.f32.mrb[9].mxu0 }
 0xda4   : > { %v2392_v8 = vadd.f32 %v2385_v38, %v2383_v24  ;;  %v2387_v54 = vpop.f32.mrb[10].mxu0 }
 0xda5   : > { %v2389_v31 = vpop.f32.mrb[11].mxu0 }
 0xda6   : > { %v2393_v14 = vadd.f32 %v2392_v8, %v2387_v54 }
 0xda8   : > { %v2394_v39 = vadd.f32 %v2393_v14, %v2389_v31 }
 0xdaa   : > { %2395 = vadd.xlane.f32.xlu0 %v2394_v39 }
 0xdae   : > { %670 = vadd.xlane.f32.xlu0 %v669_v1 }
 0xdb2   : > { %673 = vadd.xlane.f32.xlu0 %v672_v50 }
 0xdc8   : > { %2445 = vperm.xlu0 %2654, %v2437_v46  }
 0xe37   : > { %v2396_v16 = vpop.xlane.xlu0 %2395 }
 0xe38   : > { %v2397_v56 = vrot.slane %v2396_v16, 4 }
 0xe3a   : > { %v2398_v51 = vadd.f32 %v2397_v56, %v2396_v16 }
 0xe3b   : > { %v671_v4 = vpop.xlane.xlu0 %670 }
 0xe3c   : > { %v2399_v5 = vrot.slane %v2398_v51, 2  ;;  %v677_v0 = vadd.f32 %v675_v55, %v671_v4 }
 0xe3e   : > { %2470 = vperm.xlu0 %2654, %v677_v0   ;;  %v2400_v29 = vadd.f32 %v2399_v5, %v2398_v51 }
 0xe3f   : > { %v674_v48 = vpop.xlane.xlu0 %673 }
 0xe40   : > { %v2401_v44 = vrot.slane %v2400_v29, 1  ;;  %v678_v43 = vadd.f32 %v676_v33, %v674_v48 }
 0xe42   : > { %v2402_v52 = vadd.f32 %v2401_v44, %v2400_v29 }
 0xe44   : > { %2630 = vpush %v2402_v52 }
 0xe47   : > { %v2446_v58 = vpop.permute.xlu0 %2445 }
 0xe75   : > { %s2631_s20 = spop %2630 }
 0xe76   : > { %s2404_s26 = smul.f32 0.00024414063, %s2631_s20 }
 0xe78   : > { %v2405_v20 = vstv %s2404_s26 }
 0xe79   : > { %v2406_v35 = vsub.f32 %v2383_v24, %v2405_v20  ;;  %v2407_v36 = vsub.f32 %v2385_v38, %v2405_v20  ;;  %v2408_v37 = vsub.f32 %v2387_v54, %v2405_v20  ;;  %v2409_v6 = vsub.f32 %v2389_v31, %v2405_v20 }
 0xe7b   : > { %v2410_v19 = vmul.f32 %v2406_v35, %v2406_v35  ;;  %v2411_v3 = vmul.f32 %v2407_v36, %v2407_v36  ;;  %v2412_v63 = vmul.f32 %v2408_v37, %v2408_v37  ;;  %v2413_v11 = vmul.f32 %v2409_v6, %v2409_v6 }
 0xe7d   : > { %v2414_v10 = vadd.f32 %v2411_v3, %v2410_v19 }
 0xe7f   : > { %v2415_v21 = vadd.f32 %v2414_v10, %v2412_v63 }
 0xe81   : > { %v2416_v15 = vadd.f32 %v2415_v21, %v2413_v11 }
 0xe83   : > { %2417 = vadd.xlane.f32.xlu1 %v2416_v15 }
 0xe94   : > { %2440 = vperm.xlu1 %2655, %v2436_v61  }
 0xe98   : > { %2456 = vperm.xlu1 %2655, %v2452_v62  }
 0xe9c   : > { %2461 = vperm.xlu1 %2655, %v2453_v17  }
 0xea0   : > { %2475 = vperm.xlu1 %2655, %v678_v43  }
 0xebd   : > { %v2471_v30 = vpop.permute.xlu0 %2470 }
 0xf10   : > { %v2418_v34 = vpop.xlane.xlu1 %2417 }
 0xf11   : > { %v2419_v42 = vrot.slane %v2418_v34, 4 }
 0xf13   : > { %v2420_v60 = vadd.f32 %v2419_v42, %v2418_v34 }
 0xf14   : > { %v2441_v25 = vpop.permute.xlu1 %2440 }
 0xf15   : > { %v2421_v7 = vrot.slane %v2420_v60, 2 }
 0xf17   : > { %v2422_v57 = vadd.f32 %v2421_v7, %v2420_v60 }
 0xf18   : > { %v2457_v12 = vpop.permute.xlu1 %2456 }
 0xf19   : > { %v2423_v26 = vrot.slane %v2422_v57, 1 }
 0xf1b   : > { %v2424_v27 = vadd.f32 %v2423_v26, %v2422_v57 }
 0xf1c   : > { %v2462_v13 = vpop.permute.xlu1 %2461 }
 0xf1d   : > { %2632 = vpush %v2424_v27 }
 0xf20   : > { %v2476_v31 = vpop.permute.xlu1 %2475 }
 0xf4e   : > { %s2633_s23 = spop %2632 }
 0xf4f   : > { %s2426_s29 = smul.f32 0.00024414063, %s2633_s23 }
 0xf51   : > { %s2427_s22 = sadd.f32 1e-05, %s2426_s29 }
 0xf53   : > { %v2428_v32 = vstv %s2427_s22 }
 0xf54   : > { %2726 = vrsqrt.f32 %v2428_v32 }
 0xf5e   : > { %v2727_v2 = vpop.eup %2726 }
 0xf5f   : > { %2634 = vpush %v2727_v2 }
 0xf90   : > { %s2635_s4 = spop %2634 }
 0xf91   : > { %v2431_v9 = vstv %s2635_s4 }
 0xf92   : > { %v2432_v23 = vmul.f32 %v2431_v9, %v2406_v35  ;;  %v2433_v28 = vmul.f32 %v2431_v9, %v2407_v36  ;;  %v2434_v47 = vmul.f32 %v2431_v9, %v2408_v37  ;;  %v2435_v45 = vmul.f32 %v2431_v9, %v2409_v6 }
 0xf94   : > { %v2448_v22 = vmul.f32 %v2441_v25, %v2432_v23  ;;  %v2449_v59 = vmul.f32 %v2441_v25, %v2433_v28  ;;  %v2450_v40 = vmul.f32 %v2446_v58, %v2434_v47  ;;  %v2451_v24 = vmul.f32 %v2446_v58, %v2435_v45 }
 0xf96   : > { %v2464_v38 = vadd.f32 %v2457_v12, %v2448_v22  ;;  %v2465_v49 = vadd.f32 %v2457_v12, %v2449_v59  ;;  %v2466_v8 = vadd.f32 %v2462_v13, %v2450_v40  ;;  %v2467_v54 = vadd.f32 %v2462_v13, %v2451_v24 }
 0xf98   : > { %v2478_v14 = vadd.f32 %v2471_v30, %v2464_v38  ;;  %v2479_v18 = vadd.f32 %v2471_v30, %v2465_v49  ;;  %v2480_v39 = vadd.f32 %v2476_v31, %v2466_v8  ;;  %v2481_v41 = vadd.f32 %v2476_v31, %v2467_v54 }
 0xf9a   : > { %2482 = vst [vmem:[%s633_s24] sm:$0xff] %v2478_v14  ;;  %2483 = vst [vmem:[%s633_s24 + $0x8] sm:$0xff] %v2479_v18 }
 0xf9b   : > { %2484 = vst [vmem:[%s633_s24 + $0x10] sm:$0xff] %v2480_v39  ;;  %2485 = vst [vmem:[%s633_s24 + $0x18] sm:$0xff] %v2481_v41 }
 0xf9c PF: > { %s29_s0 = sadd.s32 1, %s2736_s0  }
 0xf9d   : > { %p26_p4 = scmp.ge.s32.totalorder %s29_s0, 4  }
 0xf9f   :  { %28 = sbr.rel (!%p26_p4) target bundleno = 7 (0x7), region = 139 }

</bundles_post_ra>
